<compile_context>
chip_gen: v6e
topology: v6e:2x2x1
jax: 0.10.0
libtpu: 0.0.40
codegen_flags: <defaults>
</compile_context>

<pallas_src>
import functools
import math

import jax
import jax.numpy as jnp
from jax.experimental import pallas as pl
from jax.experimental.pallas import tpu as pltpu


# ----------------------------------------------------------------------------
# In-kernel helpers
# ----------------------------------------------------------------------------
def _ln_rows(x, g, b):
    """Row-wise LayerNorm over the last dim (eps = 1e-5, PyTorch default)."""
    mean = jnp.mean(x, axis=-1, keepdims=True)
    var = jnp.mean(jnp.square(x - mean), axis=-1, keepdims=True)
    inv = jax.lax.rsqrt(var + 1e-5)
    return (x - mean) * inv * g + b


# ----------------------------------------------------------------------------
# Fused Pallas kernels
# ----------------------------------------------------------------------------
def _attn_block_kernel(xq_ref, xkv_ref,
                       lnq_g_ref, lnq_b_ref, lnkv_g_ref, lnkv_b_ref,
                       wq_ref, bq_ref, wkv_ref, bkv_ref, wo_ref, bo_ref,
                       o_ref, *, scale, dq):
    """out = x_q + Wo @ softmax(Q K^T) V   with pre-LN on both inputs.

    One batch element per grid step; everything stays in VMEM/vregs."""
    xq = xq_ref[0].astype(jnp.float32)          # (Tq, Dq)
    xkv = xkv_ref[0].astype(jnp.float32)        # (Tk, Dkv)

    nq = _ln_rows(xq, lnq_g_ref[...], lnq_b_ref[...])
    nkv = _ln_rows(xkv, lnkv_g_ref[...], lnkv_b_ref[...])

    # Q projection + packed KV projection (single wider matmul, sliced in-kernel).
    q = jnp.dot(nq, wq_ref[...], preferred_element_type=jnp.float32) + bq_ref[...]
    kv = jnp.dot(nkv, wkv_ref[...], preferred_element_type=jnp.float32) + bkv_ref[...]
    k = kv[:, :dq]                              # (Tk, Dq)
    v = kv[:, dq:]                              # (Tk, Dq)

    s = jnp.dot(q, k.T, preferred_element_type=jnp.float32) * scale
    s = s - jnp.max(s, axis=-1, keepdims=True)
    p = jnp.exp(s)
    p = p * pl.reciprocal(jnp.sum(p, axis=-1, keepdims=True), approx=True)
    attn = jnp.dot(p, v, preferred_element_type=jnp.float32)

    out = jnp.dot(attn, wo_ref[...], preferred_element_type=jnp.float32) + bo_ref[...]
    o_ref[0] = (xq + out).astype(o_ref.dtype)


def _ffn_block_kernel(x_ref, g_ref, b_ref, w1_ref, b1_ref, w2_ref, b2_ref, o_ref):
    """out = x + fc2(GELU(fc1(LN(x)))) — LN + FFN + residual, fully fused."""
    x = x_ref[0].astype(jnp.float32)            # (T, D)
    n = _ln_rows(x, g_ref[...], b_ref[...])
    h = jnp.dot(n, w1_ref[...], preferred_element_type=jnp.float32) + b1_ref[...]
    # TODO(synk): tanh GELU; switch to exact erf GELU if bit parity with nn.GELU matters.
    h = jax.nn.gelu(h, approximate=True)
    y = jnp.dot(h, w2_ref[...], preferred_element_type=jnp.float32) + b2_ref[...]
    o_ref[0] = (x + y).astype(o_ref.dtype)


def _embed_kernel(p_ref, w_ref, b_ref, pos_ref, o_ref):
    """out = patches @ W + b + pos_embedding   (input linear fused with pos add)."""
    y = jnp.dot(p_ref[0], w_ref[...], preferred_element_type=jnp.float32) + b_ref[...]
    o_ref[0] = (y + pos_ref[0]).astype(o_ref.dtype)


def _scalar_embed_kernel(t_ref, w1_ref, b1_ref, w2_ref, b2_ref, o_ref):
    """ScalarEmbedding: Linear(1, D) -> GELU -> Linear(D, D), one kernel."""
    t = t_ref[...].astype(jnp.float32)          # (B, 1)
    h = jnp.dot(t, w1_ref[...], preferred_element_type=jnp.float32) + b1_ref[...]
    h = jax.nn.gelu(h, approximate=True)
    y = jnp.dot(h, w2_ref[...], preferred_element_type=jnp.float32) + b2_ref[...]
    o_ref[...] = y.astype(o_ref.dtype)


def _linear_kernel(x_ref, w_ref, b_ref, o_ref):
    """Plain y = x @ W + b on a (rows, features) slab (output projection)."""
    y = jnp.dot(x_ref[...], w_ref[...], preferred_element_type=jnp.float32) + b_ref[...]
    o_ref[...] = y.astype(o_ref.dtype)


# ----------------------------------------------------------------------------
# Pallas-backed ops (thin wrappers)
# ----------------------------------------------------------------------------
def _rep2d(shape):
    """BlockSpec for a batch-invariant 2-D operand (same full block every grid step)."""
    return pl.BlockSpec(shape, lambda b: (0, 0))


_PARALLEL_B = pltpu.CompilerParams(dimension_semantics=("parallel",))


def fused_cross_attn_residual(x_q, x_kv, p):
    """x_q + XAttn(LN(x_q), LN(x_kv)), gridded (parallel) over batch."""
    B, Tq, Dq = x_q.shape
    _, Tk, Dkv = x_kv.shape
    scale = 1.0 / math.sqrt(Dq)
    a = p["attn"]
    return pl.pallas_call(
        functools.partial(_attn_block_kernel, scale=scale, dq=Dq),
        out_shape=jax.ShapeDtypeStruct((B, Tq, Dq), jnp.float32),
        grid=(B,),
        in_specs=[
            pl.BlockSpec((1, Tq, Dq), lambda b: (b, 0, 0)),
            pl.BlockSpec((1, Tk, Dkv), lambda b: (b, 0, 0)),
            _rep2d((1, Dq)), _rep2d((1, Dq)),          # LN(q) gamma/beta
            _rep2d((1, Dkv)), _rep2d((1, Dkv)),        # LN(kv) gamma/beta
            _rep2d((Dq, Dq)), _rep2d((1, Dq)),         # Wq, bq
            _rep2d((Dkv, 2 * Dq)), _rep2d((1, 2 * Dq)),  # packed Wkv, bkv
            _rep2d((Dq, Dq)), _rep2d((1, Dq)),         # Wo, bo
        ],
        out_specs=pl.BlockSpec((1, Tq, Dq), lambda b: (b, 0, 0)),
        compiler_params=_PARALLEL_B,
    )(x_q, x_kv,
      p["ln_q"]["g"], p["ln_q"]["b"], p["ln_kv"]["g"], p["ln_kv"]["b"],
      a["wq"], a["bq"], a["wkv"], a["bkv"], a["wo"], a["bo"])


def fused_ffn_residual(x, p):
    """x + FFN(LN(x)), gridded (parallel) over batch."""
    B, T, D = x.shape
    H = p["w1"].shape[1]
    return pl.pallas_call(
        _ffn_block_kernel,
        out_shape=jax.ShapeDtypeStruct((B, T, D), jnp.float32),
        grid=(B,),
        in_specs=[
            pl.BlockSpec((1, T, D), lambda b: (b, 0, 0)),
            _rep2d((1, D)), _rep2d((1, D)),            # LN gamma/beta
            _rep2d((D, H)), _rep2d((1, H)),            # fc1
            _rep2d((H, D)), _rep2d((1, D)),            # fc2
        ],
        out_specs=pl.BlockSpec((1, T, D), lambda b: (b, 0, 0)),
        compiler_params=_PARALLEL_B,
    )(x, p["ln"]["g"], p["ln"]["b"], p["w1"], p["b1"], p["w2"], p["b2"])


def input_embed(patches, p, pos):
    """input_linear + pos_embedding add, fused, gridded (parallel) over batch."""
    B, T, F = patches.shape
    E = p["w"].shape[1]
    return pl.pallas_call(
        _embed_kernel,
        out_shape=jax.ShapeDtypeStruct((B, T, E), jnp.float32),
        grid=(B,),
        in_specs=[
            pl.BlockSpec((1, T, F), lambda b: (b, 0, 0)),
            _rep2d((F, E)), _rep2d((1, E)),
            pl.BlockSpec((1, T, E), lambda b: (0, 0, 0)),
        ],
        out_specs=pl.BlockSpec((1, T, E), lambda b: (b, 0, 0)),
        compiler_params=_PARALLEL_B,
    )(patches, p["w"], p["b"], pos)


def scalar_embed(ts, p):
    B = ts.shape[0]
    D = p["w2"].shape[1]
    return pl.pallas_call(
        _scalar_embed_kernel,
        out_shape=jax.ShapeDtypeStruct((B, D), jnp.float32),
    )(ts, p["w1"], p["b1"], p["w2"], p["b2"])


def output_linear(x, p):
    B, T, D = x.shape
    N = p["w"].shape[1]
    out = pl.pallas_call(
        _linear_kernel,
        out_shape=jax.ShapeDtypeStruct((B * T, N), jnp.float32),
    )(x.reshape(B * T, D), p["w"], p["b"])
    return out.reshape(B, T, N)


# ----------------------------------------------------------------------------
# Model building blocks
# ----------------------------------------------------------------------------
def read_block(p, emb, lat):
    lat = fused_cross_attn_residual(lat, emb, p)
    lat = fused_ffn_residual(lat, p["ffn"])
    return lat


def write_block(p, emb, lat):
    emb = fused_cross_attn_residual(emb, lat, p)
    emb = fused_ffn_residual(emb, p["ffn"])
    return emb


def computation_block(p, lat):
    lat = fused_cross_attn_residual(lat, lat, p)    # self-attention (shared LN params)
    lat = fused_ffn_residual(lat, p["ffn"])
    return lat


def rin_block(p, emb, lat):
    lat = read_block(p["read"], emb, lat)
    for cp in p["comp"]:
        lat = computation_block(cp, lat)
    emb = write_block(p["write"], emb, lat)
    return emb, lat


def rin_forward(params, cfg, x, timestep, condition):
    B, C, H, W = x.shape
    ps = cfg["patch_size"]
    h = H // ps
    w = W // ps

    # input rearrange: b c (h p1) (w p2) -> b (h w) (c p1 p2)
    patches = x.reshape(B, C, h, ps, w, ps).transpose(0, 2, 4, 1, 3, 5)
    patches = patches.reshape(B, h * w, C * ps * ps)

    emb = input_embed(patches, params["input_linear"], params["pos_embedding"])

    lat = jnp.broadcast_to(params["latents"],
                           (B, cfg["num_latents"], cfg["latent_dim"]))

    # prev_latents is None -> prev_latents_ffn / prev_latents_ln branch skipped.
    # TODO(synk): prev_latents path not exercised (forward called with prev_latents=None).

    # timestep embedding: scalar -> (B, 1, latent_dim)
    ts = timestep.astype(jnp.float32)[:, None]                  # (B, 1)
    ts_e = scalar_embed(ts, params["ts_embed"])[:, None, :]     # (B, 1, D)
    lat = jnp.concatenate([lat, ts_e], axis=1)

    # condition embedding (table gather kept in plain JAX)
    cond_e = jnp.take(params["condition_embedding"], condition, axis=0)[:, None, :]
    lat = jnp.concatenate([lat, cond_e], axis=1)

    for blk in params["blocks"]:
        emb, lat = rin_block(blk, emb, lat)

    patches_out = output_linear(emb, params["output_linear"])   # (B, hw, C*ps*ps)

    # output rearrange: b (h w) (c p1 p2) -> b c (h p1) (w p2)
    img = patches_out.reshape(B, h, w, C, ps, ps).transpose(0, 3, 1, 4, 2, 5)
    img = img.reshape(B, C, H, W)

    return img, lat[:, :-2]


# ----------------------------------------------------------------------------
# Deterministic parameter initialization
# ----------------------------------------------------------------------------
def init_params(key, cfg):
    keys = iter(jax.random.split(key, 512))

    def w_(d_in, d_out):
        return 0.02 * jax.random.normal(next(keys), (d_in, d_out), jnp.float32)

    def b_(d_out):
        return jnp.zeros((1, d_out), jnp.float32)

    def ln(d):
        return {"g": jnp.ones((1, d), jnp.float32), "b": jnp.zeros((1, d), jnp.float32)}

    def attn(dq, dkv):
        # K and V weights packed along the output (lane) dim for one wide matmul.
        return {"wq": w_(dq, dq), "bq": b_(dq),
                "wkv": w_(dkv, 2 * dq), "bkv": b_(2 * dq),
                "wo": w_(dq, dq), "bo": b_(dq)}

    def ffn(d):
        return {"ln": ln(d), "w1": w_(d, 4 * d), "b1": b_(4 * d),
                "w2": w_(4 * d, d), "b2": b_(d)}

    E, L = cfg["embed_dim"], cfg["latent_dim"]
    size = cfg["img_size"] // cfg["patch_size"]
    patch_feats = 3 * cfg["patch_size"] * cfg["patch_size"]

    def read_p():
        return {"ln_q": ln(L), "ln_kv": ln(E), "attn": attn(L, E), "ffn": ffn(L)}

    def write_p():
        return {"ln_q": ln(E), "ln_kv": ln(L), "attn": attn(E, L), "ffn": ffn(E)}

    def comp_p():
        shared = ln(L)   # self-attention: single pre-LN used for both q and kv
        return {"ln_q": shared, "ln_kv": shared, "attn": attn(L, L), "ffn": ffn(L)}

    params = {
        "input_linear": {"w": w_(patch_feats, E), "b": b_(E)},
        "output_linear": {"w": w_(E, patch_feats), "b": b_(patch_feats)},
        "pos_embedding": 0.01 * jax.random.truncated_normal(
            next(keys), -2.0, 2.0, (1, size * size, E), jnp.float32),
        "latents": 0.01 * jax.random.truncated_normal(
            next(keys), -2.0, 2.0, (1, cfg["num_latents"], L), jnp.float32),
        "ts_embed": {"w1": w_(1, L), "b1": b_(L), "w2": w_(L, L), "b2": b_(L)},
        "condition_embedding": 0.02 * jax.random.normal(next(keys), (10, L), jnp.float32),
        "blocks": [
            {"read": read_p(),
             "write": write_p(),
             "comp": [comp_p() for _ in range(cfg["num_layers_per_block"])]}
            for _ in range(cfg["num_blocks"])
        ],
    }
    return params


# ----------------------------------------------------------------------------
# Main
# ----------------------------------------------------------------------------
if __name__ == "__main__":
    cfg = dict(img_size=16, patch_size=4, num_latents=8, latent_dim=32,
               embed_dim=32, num_blocks=2, num_layers_per_block=1)

    key = jax.random.PRNGKey(0)
    k_param, k_x, k_t, k_c = jax.random.split(key, 4)

    params = init_params(k_param, cfg)

    B = 2
    x = jax.random.normal(k_x, (B, 3, cfg["img_size"], cfg["img_size"]), jnp.float32)
    timestep = jax.random.uniform(k_t, (B,), jnp.float32)
    condition = jax.random.randint(k_c, (B,), 0, 10, jnp.int32)

    fwd = jax.jit(functools.partial(rin_forward, params, cfg))
    image, latents = fwd(x, timestep, condition)
    jax.block_until_ready((image, latents))

    assert image.shape == (B, 3, cfg["img_size"], cfg["img_size"])
    assert latents.shape == (B, cfg["num_latents"], cfg["latent_dim"])
    assert bool(jnp.all(jnp.isfinite(image))) and bool(jnp.all(jnp.isfinite(latents)))
    print("KERNEL_OK")
</pallas_src>

<mosaic_0001>
module attributes {stable_mosaic.version = 11 : i64} {
  func.func @_embed_kernel(%arg0: i32, %arg1: memref<1x16x48xf32, #tpu.memory_space<vmem>>, %arg2: memref<48x32xf32, #tpu.memory_space<vmem>>, %arg3: memref<1x32xf32, #tpu.memory_space<vmem>>, %arg4: memref<1x16x32xf32, #tpu.memory_space<vmem>>, %arg5: memref<1x16x32xf32, #tpu.memory_space<vmem>>) attributes {dimension_semantics = [#tpu.dimension_semantics<parallel>], iteration_bounds = array<i64: 2>, scalar_prefetch = 0 : i64, scratch_operands = 0 : i64, tpu.core_type = #tpu.core_type<tc>, window_params = [{transform_indices = @transform_0, window_bounds = array<i64: 1, 16, 48>}, {pipeline_mode = #tpu.pipeline_mode<synchronous>, transform_indices = @transform_1, window_bounds = array<i64: 48, 32>}, {pipeline_mode = #tpu.pipeline_mode<synchronous>, transform_indices = @transform_2, window_bounds = array<i64: 1, 32>}, {pipeline_mode = #tpu.pipeline_mode<synchronous>, transform_indices = @transform_3, window_bounds = array<i64: 1, 16, 32>}, {transform_indices = @transform_4, window_bounds = array<i64: 1, 16, 32>}]} {
    %c0 = arith.constant 0 : index
    %c0_0 = arith.constant 0 : index
    %c0_1 = arith.constant 0 : index
    %0 = vector.load %arg1[%c0, %c0_0, %c0_1] : memref<1x16x48xf32, #tpu.memory_space<vmem>>, vector<1x16x48xf32>
    %1 = vector.shape_cast %0 : vector<1x16x48xf32> to vector<16x48xf32>
    %c0_2 = arith.constant 0 : index
    %c0_3 = arith.constant 0 : index
    %2 = vector.load %arg2[%c0_2, %c0_3] : memref<48x32xf32, #tpu.memory_space<vmem>>, vector<48x32xf32>
    %cst = arith.constant dense<0.000000e+00> : vector<16x32xf32>
    %3 = tpu.matmul %1, %2, %cst {dimension_numbers = #tpu.dot_dimension_numbers<[1], [0], [0], [1], [0, 0, 1, 1], [], []>} : vector<16x48xf32>, vector<48x32xf32>, vector<16x32xf32> -> vector<16x32xf32>
    %c0_4 = arith.constant 0 : index
    %c0_5 = arith.constant 0 : index
    %4 = vector.load %arg3[%c0_4, %c0_5] : memref<1x32xf32, #tpu.memory_space<vmem>>, vector<1x32xf32>
    %5 = vector.broadcast %4 : vector<1x32xf32> to vector<16x32xf32>
    %6 = arith.addf %3, %5 : vector<16x32xf32>
    %c0_6 = arith.constant 0 : index
    %c0_7 = arith.constant 0 : index
    %c0_8 = arith.constant 0 : index
    %7 = vector.load %arg4[%c0_6, %c0_7, %c0_8] : memref<1x16x32xf32, #tpu.memory_space<vmem>>, vector<1x16x32xf32>
    %8 = vector.shape_cast %7 : vector<1x16x32xf32> to vector<16x32xf32>
    %9 = arith.addf %6, %8 : vector<16x32xf32>
    %c0_9 = arith.constant 0 : index
    %c0_10 = arith.constant 0 : index
    %c0_11 = arith.constant 0 : index
    %10 = vector.load %arg5[%c0_9, %c0_10, %c0_11] : memref<1x16x32xf32, #tpu.memory_space<vmem>>, vector<1x16x32xf32>
    %11 = vector.shape_cast %10 : vector<1x16x32xf32> to vector<16x32xf32>
    %12 = vector.shape_cast %9 : vector<16x32xf32> to vector<1x16x32xf32>
    tpu.vector_store %arg5[%c0_9, %c0_10, %c0_11], %12 {strides = array<i32>} : memref<1x16x32xf32, #tpu.memory_space<vmem>>, vector<1x16x32xf32>,
    return
  }
  func.func @transform_0(%arg0: i32) -> (i32, i32, i32) {
    %c0_i32 = arith.constant 0 : i32
    %c0_i32_0 = arith.constant 0 : i32
    %c0_i32_1 = arith.constant 0 : i32
    return %arg0, %c0_i32, %c0_i32_0 : i32, i32, i32
  }
  func.func @transform_1(%arg0: i32) -> (i32, i32) {
    %c0_i32 = arith.constant 0 : i32
    %c0_i32_0 = arith.constant 0 : i32
    %c0_i32_1 = arith.constant 0 : i32
    return %c0_i32, %c0_i32_0 : i32, i32
  }
  func.func @transform_2(%arg0: i32) -> (i32, i32) {
    %c0_i32 = arith.constant 0 : i32
    %c0_i32_0 = arith.constant 0 : i32
    %c0_i32_1 = arith.constant 0 : i32
    return %c0_i32, %c0_i32_0 : i32, i32
  }
  func.func @transform_3(%arg0: i32) -> (i32, i32, i32) {
    %c0_i32 = arith.constant 0 : i32
    %c0_i32_0 = arith.constant 0 : i32
    %c0_i32_1 = arith.constant 0 : i32
    %c0_i32_2 = arith.constant 0 : i32
    return %c0_i32, %c0_i32_0, %c0_i32_1 : i32, i32, i32
  }
  func.func @transform_4(%arg0: i32) -> (i32, i32, i32) {
    %c0_i32 = arith.constant 0 : i32
    %c0_i32_0 = arith.constant 0 : i32
    %c0_i32_1 = arith.constant 0 : i32
    return %arg0, %c0_i32, %c0_i32_0 : i32, i32, i32
  }
}

module attributes {stable_mosaic.version = 11 : i64} {
  func.func @_scalar_embed_kernel(%arg0: memref<2x1xf32, #tpu.memory_space<vmem>>, %arg1: memref<1x32xf32, #tpu.memory_space<vmem>>, %arg2: memref<1x32xf32, #tpu.memory_space<vmem>>, %arg3: memref<32x32xf32, #tpu.memory_space<vmem>>, %arg4: memref<1x32xf32, #tpu.memory_space<vmem>>, %arg5: memref<2x32xf32, #tpu.memory_space<vmem>>) attributes {dimension_semantics = [], scalar_prefetch = 0 : i64, scratch_operands = 0 : i64, tpu.core_type = #tpu.core_type<tc>} {
    %c0 = arith.constant 0 : index
    %c0_0 = arith.constant 0 : index
    %0 = vector.load %arg0[%c0, %c0_0] : memref<2x1xf32, #tpu.memory_space<vmem>>, vector<2x1xf32>
    %c0_1 = arith.constant 0 : index
    %c0_2 = arith.constant 0 : index
    %1 = vector.load %arg1[%c0_1, %c0_2] : memref<1x32xf32, #tpu.memory_space<vmem>>, vector<1x32xf32>
    %cst = arith.constant dense<0.000000e+00> : vector<2x32xf32>
    %2 = tpu.matmul %0, %1, %cst {dimension_numbers = #tpu.dot_dimension_numbers<[1], [0], [0], [1], [0, 0, 1, 1], [], []>} : vector<2x1xf32>, vector<1x32xf32>, vector<2x32xf32> -> vector<2x32xf32>
    %c0_3 = arith.constant 0 : index
    %c0_4 = arith.constant 0 : index
    %3 = vector.load %arg2[%c0_3, %c0_4] : memref<1x32xf32, #tpu.memory_space<vmem>>, vector<1x32xf32>
    %4 = vector.broadcast %3 : vector<1x32xf32> to vector<2x32xf32>
    %5 = arith.addf %2, %4 : vector<2x32xf32>
    %6 = arith.mulf %5, %5 : vector<2x32xf32>
    %7 = arith.mulf %5, %6 : vector<2x32xf32>
    %cst_5 = arith.constant 4.471500e-02 : f32
    %8 = vector.broadcast %cst_5 : f32 to vector<2x32xf32>
    %9 = arith.mulf %8, %7 : vector<2x32xf32>
    %10 = arith.addf %5, %9 : vector<2x32xf32>
    %cst_6 = arith.constant 0.797884583 : f32
    %11 = vector.broadcast %cst_6 : f32 to vector<2x32xf32>
    %12 = arith.mulf %11, %10 : vector<2x32xf32>
    %13 = math.tanh %12 : vector<2x32xf32>
    %cst_7 = arith.constant 1.000000e+00 : f32
    %14 = vector.broadcast %cst_7 : f32 to vector<2x32xf32>
    %15 = arith.addf %14, %13 : vector<2x32xf32>
    %cst_8 = arith.constant 5.000000e-01 : f32
    %16 = vector.broadcast %cst_8 : f32 to vector<2x32xf32>
    %17 = arith.mulf %16, %15 : vector<2x32xf32>
    %18 = arith.mulf %5, %17 : vector<2x32xf32>
    %c0_9 = arith.constant 0 : index
    %c0_10 = arith.constant 0 : index
    %19 = vector.load %arg3[%c0_9, %c0_10] : memref<32x32xf32, #tpu.memory_space<vmem>>, vector<32x32xf32>
    %cst_11 = arith.constant dense<0.000000e+00> : vector<2x32xf32>
    %20 = tpu.matmul %18, %19, %cst_11 {dimension_numbers = #tpu.dot_dimension_numbers<[1], [0], [0], [1], [0, 0, 1, 1], [], []>} : vector<2x32xf32>, vector<32x32xf32>, vector<2x32xf32> -> vector<2x32xf32>
    %c0_12 = arith.constant 0 : index
    %c0_13 = arith.constant 0 : index
    %21 = vector.load %arg4[%c0_12, %c0_13] : memref<1x32xf32, #tpu.memory_space<vmem>>, vector<1x32xf32>
    %22 = vector.broadcast %21 : vector<1x32xf32> to vector<2x32xf32>
    %23 = arith.addf %20, %22 : vector<2x32xf32>
    %c0_14 = arith.constant 0 : index
    %c0_15 = arith.constant 0 : index
    %24 = vector.load %arg5[%c0_14, %c0_15] : memref<2x32xf32, #tpu.memory_space<vmem>>, vector<2x32xf32>
    tpu.vector_store %arg5[%c0_14, %c0_15], %23 {strides = array<i32>} : memref<2x32xf32, #tpu.memory_space<vmem>>, vector<2x32xf32>,
    return
  }
}

module attributes {stable_mosaic.version = 11 : i64} {
  func.func @_attn_block_kernel(%arg0: i32, %arg1: memref<1x10x32xf32, #tpu.memory_space<vmem>>, %arg2: memref<1x16x32xf32, #tpu.memory_space<vmem>>, %arg3: memref<1x32xf32, #tpu.memory_space<vmem>>, %arg4: memref<1x32xf32, #tpu.memory_space<vmem>>, %arg5: memref<1x32xf32, #tpu.memory_space<vmem>>, %arg6: memref<1x32xf32, #tpu.memory_space<vmem>>, %arg7: memref<32x32xf32, #tpu.memory_space<vmem>>, %arg8: memref<1x32xf32, #tpu.memory_space<vmem>>, %arg9: memref<32x64xf32, #tpu.memory_space<vmem>>, %arg10: memref<1x64xf32, #tpu.memory_space<vmem>>, %arg11: memref<32x32xf32, #tpu.memory_space<vmem>>, %arg12: memref<1x32xf32, #tpu.memory_space<vmem>>, %arg13: memref<1x10x32xf32, #tpu.memory_space<vmem>>) attributes {dimension_semantics = [#tpu.dimension_semantics<parallel>], iteration_bounds = array<i64: 2>, scalar_prefetch = 0 : i64, scratch_operands = 0 : i64, tpu.core_type = #tpu.core_type<tc>, window_params = [{transform_indices = @transform_0, window_bounds = array<i64: 1, 10, 32>}, {transform_indices = @transform_1, window_bounds = array<i64: 1, 16, 32>}, {pipeline_mode = #tpu.pipeline_mode<synchronous>, transform_indices = @transform_2, window_bounds = array<i64: 1, 32>}, {pipeline_mode = #tpu.pipeline_mode<synchronous>, transform_indices = @transform_3, window_bounds = array<i64: 1, 32>}, {pipeline_mode = #tpu.pipeline_mode<synchronous>, transform_indices = @transform_4, window_bounds = array<i64: 1, 32>}, {pipeline_mode = #tpu.pipeline_mode<synchronous>, transform_indices = @transform_5, window_bounds = array<i64: 1, 32>}, {pipeline_mode = #tpu.pipeline_mode<synchronous>, transform_indices = @transform_6, window_bounds = array<i64: 32, 32>}, {pipeline_mode = #tpu.pipeline_mode<synchronous>, transform_indices = @transform_7, window_bounds = array<i64: 1, 32>}, {pipeline_mode = #tpu.pipeline_mode<synchronous>, transform_indices = @transform_8, window_bounds = array<i64: 32, 64>}, {pipeline_mode = #tpu.pipeline_mode<synchronous>, transform_indices = @transform_9, window_bounds = array<i64: 1, 64>}, {pipeline_mode = #tpu.pipeline_mode<synchronous>, transform_indices = @transform_10, window_bounds = array<i64: 32, 32>}, {pipeline_mode = #tpu.pipeline_mode<synchronous>, transform_indices = @transform_11, window_bounds = array<i64: 1, 32>}, {transform_indices = @transform_12, window_bounds = array<i64: 1, 10, 32>}]} {
    %c0 = arith.constant 0 : index
    %c0_0 = arith.constant 0 : index
    %c0_1 = arith.constant 0 : index
    %0 = vector.load %arg1[%c0, %c0_0, %c0_1] : memref<1x10x32xf32, #tpu.memory_space<vmem>>, vector<1x10x32xf32>
    %1 = vector.shape_cast %0 : vector<1x10x32xf32> to vector<10x32xf32>
    %c0_2 = arith.constant 0 : index
    %c0_3 = arith.constant 0 : index
    %c0_4 = arith.constant 0 : index
    %2 = vector.load %arg2[%c0_2, %c0_3, %c0_4] : memref<1x16x32xf32, #tpu.memory_space<vmem>>, vector<1x16x32xf32>
    %3 = vector.shape_cast %2 : vector<1x16x32xf32> to vector<16x32xf32>
    %c0_5 = arith.constant 0 : index
    %c0_6 = arith.constant 0 : index
    %4 = vector.load %arg3[%c0_5, %c0_6] : memref<1x32xf32, #tpu.memory_space<vmem>>, vector<1x32xf32>
    %c0_7 = arith.constant 0 : index
    %c0_8 = arith.constant 0 : index
    %5 = vector.load %arg4[%c0_7, %c0_8] : memref<1x32xf32, #tpu.memory_space<vmem>>, vector<1x32xf32>
    %cst = arith.constant dense<0.000000e+00> : vector<10xf32>
    %6 = vector.multi_reduction <add>, %1, %cst [1] : vector<10x32xf32> to vector<10xf32>
    %7 = vector.shape_cast %6 : vector<10xf32> to vector<10x1xf32>
    %cst_9 = arith.constant 3.200000e+01 : f32
    %8 = vector.broadcast %cst_9 : f32 to vector<10x1xf32>
    %9 = arith.divf %7, %8 : vector<10x1xf32>
    %10 = vector.broadcast %9 : vector<10x1xf32> to vector<10x32xf32>
    %11 = arith.subf %1, %10 : vector<10x32xf32>
    %12 = arith.mulf %11, %11 : vector<10x32xf32>
    %cst_10 = arith.constant dense<0.000000e+00> : vector<10xf32>
    %13 = vector.multi_reduction <add>, %12, %cst_10 [1] : vector<10x32xf32> to vector<10xf32>
    %14 = vector.shape_cast %13 : vector<10xf32> to vector<10x1xf32>
    %cst_11 = arith.constant 3.200000e+01 : f32
    %15 = vector.broadcast %cst_11 : f32 to vector<10x1xf32>
    %16 = arith.divf %14, %15 : vector<10x1xf32>
    %cst_12 = arith.constant 9.99999974E-6 : f32
    %17 = vector.broadcast %cst_12 : f32 to vector<10x1xf32>
    %18 = arith.addf %16, %17 : vector<10x1xf32>
    %19 = math.rsqrt %18 : vector<10x1xf32>
    %20 = vector.broadcast %9 : vector<10x1xf32> to vector<10x32xf32>
    %21 = arith.subf %1, %20 : vector<10x32xf32>
    %22 = vector.broadcast %19 : vector<10x1xf32> to vector<10x32xf32>
    %23 = arith.mulf %21, %22 : vector<10x32xf32>
    %24 = vector.broadcast %4 : vector<1x32xf32> to vector<10x32xf32>
    %25 = arith.mulf %23, %24 : vector<10x32xf32>
    %26 = vector.broadcast %5 : vector<1x32xf32> to vector<10x32xf32>
    %27 = arith.addf %25, %26 : vector<10x32xf32>
    %c0_13 = arith.constant 0 : index
    %c0_14 = arith.constant 0 : index
    %28 = vector.load %arg5[%c0_13, %c0_14] : memref<1x32xf32, #tpu.memory_space<vmem>>, vector<1x32xf32>
    %c0_15 = arith.constant 0 : index
    %c0_16 = arith.constant 0 : index
    %29 = vector.load %arg6[%c0_15, %c0_16] : memref<1x32xf32, #tpu.memory_space<vmem>>, vector<1x32xf32>
    %cst_17 = arith.constant dense<0.000000e+00> : vector<16xf32>
    %30 = vector.multi_reduction <add>, %3, %cst_17 [1] : vector<16x32xf32> to vector<16xf32>
    %31 = vector.shape_cast %30 : vector<16xf32> to vector<16x1xf32>
    %cst_18 = arith.constant 3.200000e+01 : f32
    %32 = vector.broadcast %cst_18 : f32 to vector<16x1xf32>
    %33 = arith.divf %31, %32 : vector<16x1xf32>
    %34 = vector.broadcast %33 : vector<16x1xf32> to vector<16x32xf32>
    %35 = arith.subf %3, %34 : vector<16x32xf32>
    %36 = arith.mulf %35, %35 : vector<16x32xf32>
    %cst_19 = arith.constant dense<0.000000e+00> : vector<16xf32>
    %37 = vector.multi_reduction <add>, %36, %cst_19 [1] : vector<16x32xf32> to vector<16xf32>
    %38 = vector.shape_cast %37 : vector<16xf32> to vector<16x1xf32>
    %cst_20 = arith.constant 3.200000e+01 : f32
    %39 = vector.broadcast %cst_20 : f32 to vector<16x1xf32>
    %40 = arith.divf %38, %39 : vector<16x1xf32>
    %cst_21 = arith.constant 9.99999974E-6 : f32
    %41 = vector.broadcast %cst_21 : f32 to vector<16x1xf32>
    %42 = arith.addf %40, %41 : vector<16x1xf32>
    %43 = math.rsqrt %42 : vector<16x1xf32>
    %44 = vector.broadcast %33 : vector<16x1xf32> to vector<16x32xf32>
    %45 = arith.subf %3, %44 : vector<16x32xf32>
    %46 = vector.broadcast %43 : vector<16x1xf32> to vector<16x32xf32>
    %47 = arith.mulf %45, %46 : vector<16x32xf32>
    %48 = vector.broadcast %28 : vector<1x32xf32> to vector<16x32xf32>
    %49 = arith.mulf %47, %48 : vector<16x32xf32>
    %50 = vector.broadcast %29 : vector<1x32xf32> to vector<16x32xf32>
    %51 = arith.addf %49, %50 : vector<16x32xf32>
    %c0_22 = arith.constant 0 : index
    %c0_23 = arith.constant 0 : index
    %52 = vector.load %arg7[%c0_22, %c0_23] : memref<32x32xf32, #tpu.memory_space<vmem>>, vector<32x32xf32>
    %cst_24 = arith.constant dense<0.000000e+00> : vector<10x32xf32>
    %53 = tpu.matmul %27, %52, %cst_24 {dimension_numbers = #tpu.dot_dimension_numbers<[1], [0], [0], [1], [0, 0, 1, 1], [], []>} : vector<10x32xf32>, vector<32x32xf32>, vector<10x32xf32> -> vector<10x32xf32>
    %c0_25 = arith.constant 0 : index
    %c0_26 = arith.constant 0 : index
    %54 = vector.load %arg8[%c0_25, %c0_26] : memref<1x32xf32, #tpu.memory_space<vmem>>, vector<1x32xf32>
    %55 = vector.broadcast %54 : vector<1x32xf32> to vector<10x32xf32>
    %56 = arith.addf %53, %55 : vector<10x32xf32>
    %c0_27 = arith.constant 0 : index
    %c0_28 = arith.constant 0 : index
    %57 = vector.load %arg9[%c0_27, %c0_28] : memref<32x64xf32, #tpu.memory_space<vmem>>, vector<32x64xf32>
    %cst_29 = arith.constant dense<0.000000e+00> : vector<16x64xf32>
    %58 = tpu.matmul %51, %57, %cst_29 {dimension_numbers = #tpu.dot_dimension_numbers<[1], [0], [0], [1], [0, 0, 1, 1], [], []>} : vector<16x32xf32>, vector<32x64xf32>, vector<16x64xf32> -> vector<16x64xf32>
    %c0_30 = arith.constant 0 : index
    %c0_31 = arith.constant 0 : index
    %59 = vector.load %arg10[%c0_30, %c0_31] : memref<1x64xf32, #tpu.memory_space<vmem>>, vector<1x64xf32>
    %60 = vector.broadcast %59 : vector<1x64xf32> to vector<16x64xf32>
    %61 = arith.addf %58, %60 : vector<16x64xf32>
    %62 = vector.extract_strided_slice %61 {offsets = [0, 0], sizes = [16, 32], strides = [1, 1]} : vector<16x64xf32> to vector<16x32xf32>
    %63 = vector.extract_strided_slice %61 {offsets = [0, 32], sizes = [16, 32], strides = [1, 1]} : vector<16x64xf32> to vector<16x32xf32>
    %64 = tpu.transpose %62, [1, 0] : vector<16x32xf32> -> vector<32x16xf32>
    %cst_32 = arith.constant dense<0.000000e+00> : vector<10x16xf32>
    %65 = tpu.matmul %56, %64, %cst_32 {dimension_numbers = #tpu.dot_dimension_numbers<[1], [0], [0], [1], [0, 0, 1, 1], [], []>} : vector<10x32xf32>, vector<32x16xf32>, vector<10x16xf32> -> vector<10x16xf32>
    %cst_33 = arith.constant 0.176776692 : f32
    %66 = vector.broadcast %cst_33 : f32 to vector<10x16xf32>
    %67 = arith.mulf %65, %66 : vector<10x16xf32>
    %cst_34 = arith.constant dense<0xFF800000> : vector<10xf32>
    %68 = vector.multi_reduction <maximumf>, %67, %cst_34 [1] : vector<10x16xf32> to vector<10xf32>
    %69 = vector.shape_cast %68 : vector<10xf32> to vector<10x1xf32>
    %70 = vector.broadcast %69 : vector<10x1xf32> to vector<10x16xf32>
    %71 = arith.subf %67, %70 : vector<10x16xf32>
    %72 = math.exp %71 : vector<10x16xf32>
    %cst_35 = arith.constant dense<0.000000e+00> : vector<10xf32>
    %73 = vector.multi_reduction <add>, %72, %cst_35 [1] : vector<10x16xf32> to vector<10xf32>
    %74 = vector.shape_cast %73 : vector<10xf32> to vector<10x1xf32>
    %75 = tpu.reciprocal %74 {approx = true} : vector<10x1xf32> -> vector<10x1xf32>
    %76 = vector.broadcast %75 : vector<10x1xf32> to vector<10x16xf32>
    %77 = arith.mulf %72, %76 : vector<10x16xf32>
    %cst_36 = arith.constant dense<0.000000e+00> : vector<10x32xf32>
    %78 = tpu.matmul %77, %63, %cst_36 {dimension_numbers = #tpu.dot_dimension_numbers<[1], [0], [0], [1], [0, 0, 1, 1], [], []>} : vector<10x16xf32>, vector<16x32xf32>, vector<10x32xf32> -> vector<10x32xf32>
    %c0_37 = arith.constant 0 : index
    %c0_38 = arith.constant 0 : index
    %79 = vector.load %arg11[%c0_37, %c0_38] : memref<32x32xf32, #tpu.memory_space<vmem>>, vector<32x32xf32>
    %cst_39 = arith.constant dense<0.000000e+00> : vector<10x32xf32>
    %80 = tpu.matmul %78, %79, %cst_39 {dimension_numbers = #tpu.dot_dimension_numbers<[1], [0], [0], [1], [0, 0, 1, 1], [], []>} : vector<10x32xf32>, vector<32x32xf32>, vector<10x32xf32> -> vector<10x32xf32>
    %c0_40 = arith.constant 0 : index
    %c0_41 = arith.constant 0 : index
    %81 = vector.load %arg12[%c0_40, %c0_41] : memref<1x32xf32, #tpu.memory_space<vmem>>, vector<1x32xf32>
    %82 = vector.broadcast %81 : vector<1x32xf32> to vector<10x32xf32>
    %83 = arith.addf %80, %82 : vector<10x32xf32>
    %84 = arith.addf %1, %83 : vector<10x32xf32>
    %c0_42 = arith.constant 0 : index
    %c0_43 = arith.constant 0 : index
    %c0_44 = arith.constant 0 : index
    %85 = vector.load %arg13[%c0_42, %c0_43, %c0_44] : memref<1x10x32xf32, #tpu.memory_space<vmem>>, vector<1x10x32xf32>
    %86 = vector.shape_cast %85 : vector<1x10x32xf32> to vector<10x32xf32>
    %87 = vector.shape_cast %84 : vector<10x32xf32> to vector<1x10x32xf32>
    tpu.vector_store %arg13[%c0_42, %c0_43, %c0_44], %87 {strides = array<i32>} : memref<1x10x32xf32, #tpu.memory_space<vmem>>, vector<1x10x32xf32>,
    return
  }
  func.func @transform_0(%arg0: i32) -> (i32, i32, i32) {
    %c0_i32 = arith.constant 0 : i32
    %c0_i32_0 = arith.constant 0 : i32
    %c0_i32_1 = arith.constant 0 : i32
    return %arg0, %c0_i32, %c0_i32_0 : i32, i32, i32
  }
  func.func @transform_1(%arg0: i32) -> (i32, i32, i32) {
    %c0_i32 = arith.constant 0 : i32
    %c0_i32_0 = arith.constant 0 : i32
    %c0_i32_1 = arith.constant 0 : i32
    return %arg0, %c0_i32, %c0_i32_0 : i32, i32, i32
  }
  func.func @transform_2(%arg0: i32) -> (i32, i32) {
    %c0_i32 = arith.constant 0 : i32
    %c0_i32_0 = arith.constant 0 : i32
    %c0_i32_1 = arith.constant 0 : i32
    return %c0_i32, %c0_i32_0 : i32, i32
  }
  func.func @transform_3(%arg0: i32) -> (i32, i32) {
    %c0_i32 = arith.constant 0 : i32
    %c0_i32_0 = arith.constant 0 : i32
    %c0_i32_1 = arith.constant 0 : i32
    return %c0_i32, %c0_i32_0 : i32, i32
  }
  func.func @transform_4(%arg0: i32) -> (i32, i32) {
    %c0_i32 = arith.constant 0 : i32
    %c0_i32_0 = arith.constant 0 : i32
    %c0_i32_1 = arith.constant 0 : i32
    return %c0_i32, %c0_i32_0 : i32, i32
  }
  func.func @transform_5(%arg0: i32) -> (i32, i32) {
    %c0_i32 = arith.constant 0 : i32
    %c0_i32_0 = arith.constant 0 : i32
    %c0_i32_1 = arith.constant 0 : i32
    return %c0_i32, %c0_i32_0 : i32, i32
  }
  func.func @transform_6(%arg0: i32) -> (i32, i32) {
    %c0_i32 = arith.constant 0 : i32
    %c0_i32_0 = arith.constant 0 : i32
    %c0_i32_1 = arith.constant 0 : i32
    return %c0_i32, %c0_i32_0 : i32, i32
  }
  func.func @transform_7(%arg0: i32) -> (i32, i32) {
    %c0_i32 = arith.constant 0 : i32
    %c0_i32_0 = arith.constant 0 : i32
    %c0_i32_1 = arith.constant 0 : i32
    return %c0_i32, %c0_i32_0 : i32, i32
  }
  func.func @transform_8(%arg0: i32) -> (i32, i32) {
    %c0_i32 = arith.constant 0 : i32
    %c0_i32_0 = arith.constant 0 : i32
    %c0_i32_1 = arith.constant 0 : i32
    return %c0_i32, %c0_i32_0 : i32, i32
  }
  func.func @transform_9(%arg0: i32) -> (i32, i32) {
    %c0_i32 = arith.constant 0 : i32
    %c0_i32_0 = arith.constant 0 : i32
    %c0_i32_1 = arith.constant 0 : i32
    return %c0_i32, %c0_i32_0 : i32, i32
  }
  func.func @transform_10(%arg0: i32) -> (i32, i32) {
    %c0_i32 = arith.constant 0 : i32
    %c0_i32_0 = arith.constant 0 : i32
    %c0_i32_1 = arith.constant 0 : i32
    return %c0_i32, %c0_i32_0 : i32, i32
  }
  func.func @transform_11(%arg0: i32) -> (i32, i32) {
    %c0_i32 = arith.constant 0 : i32
    %c0_i32_0 = arith.constant 0 : i32
    %c0_i32_1 = arith.constant 0 : i32
    return %c0_i32, %c0_i32_0 : i32, i32
  }
  func.func @transform_12(%arg0: i32) -> (i32, i32, i32) {
    %c0_i32 = arith.constant 0 : i32
    %c0_i32_0 = arith.constant 0 : i32
    %c0_i32_1 = arith.constant 0 : i32
    return %arg0, %c0_i32, %c0_i32_0 : i32, i32, i32
  }
}

module attributes {stable_mosaic.version = 11 : i64} {
  func.func @_ffn_block_kernel(%arg0: i32, %arg1: memref<1x10x32xf32, #tpu.memory_space<vmem>>, %arg2: memref<1x32xf32, #tpu.memory_space<vmem>>, %arg3: memref<1x32xf32, #tpu.memory_space<vmem>>, %arg4: memref<32x128xf32, #tpu.memory_space<vmem>>, %arg5: memref<1x128xf32, #tpu.memory_space<vmem>>, %arg6: memref<128x32xf32, #tpu.memory_space<vmem>>, %arg7: memref<1x32xf32, #tpu.memory_space<vmem>>, %arg8: memref<1x10x32xf32, #tpu.memory_space<vmem>>) attributes {dimension_semantics = [#tpu.dimension_semantics<parallel>], iteration_bounds = array<i64: 2>, scalar_prefetch = 0 : i64, scratch_operands = 0 : i64, tpu.core_type = #tpu.core_type<tc>, window_params = [{transform_indices = @transform_0, window_bounds = array<i64: 1, 10, 32>}, {pipeline_mode = #tpu.pipeline_mode<synchronous>, transform_indices = @transform_1, window_bounds = array<i64: 1, 32>}, {pipeline_mode = #tpu.pipeline_mode<synchronous>, transform_indices = @transform_2, window_bounds = array<i64: 1, 32>}, {pipeline_mode = #tpu.pipeline_mode<synchronous>, transform_indices = @transform_3, window_bounds = array<i64: 32, 128>}, {pipeline_mode = #tpu.pipeline_mode<synchronous>, transform_indices = @transform_4, window_bounds = array<i64: 1, 128>}, {pipeline_mode = #tpu.pipeline_mode<synchronous>, transform_indices = @transform_5, window_bounds = array<i64: 128, 32>}, {pipeline_mode = #tpu.pipeline_mode<synchronous>, transform_indices = @transform_6, window_bounds = array<i64: 1, 32>}, {transform_indices = @transform_7, window_bounds = array<i64: 1, 10, 32>}]} {
    %c0 = arith.constant 0 : index
    %c0_0 = arith.constant 0 : index
    %c0_1 = arith.constant 0 : index
    %0 = vector.load %arg1[%c0, %c0_0, %c0_1] : memref<1x10x32xf32, #tpu.memory_space<vmem>>, vector<1x10x32xf32>
    %1 = vector.shape_cast %0 : vector<1x10x32xf32> to vector<10x32xf32>
    %c0_2 = arith.constant 0 : index
    %c0_3 = arith.constant 0 : index
    %2 = vector.load %arg2[%c0_2, %c0_3] : memref<1x32xf32, #tpu.memory_space<vmem>>, vector<1x32xf32>
    %c0_4 = arith.constant 0 : index
    %c0_5 = arith.constant 0 : index
    %3 = vector.load %arg3[%c0_4, %c0_5] : memref<1x32xf32, #tpu.memory_space<vmem>>, vector<1x32xf32>
    %cst = arith.constant dense<0.000000e+00> : vector<10xf32>
    %4 = vector.multi_reduction <add>, %1, %cst [1] : vector<10x32xf32> to vector<10xf32>
    %5 = vector.shape_cast %4 : vector<10xf32> to vector<10x1xf32>
    %cst_6 = arith.constant 3.200000e+01 : f32
    %6 = vector.broadcast %cst_6 : f32 to vector<10x1xf32>
    %7 = arith.divf %5, %6 : vector<10x1xf32>
    %8 = vector.broadcast %7 : vector<10x1xf32> to vector<10x32xf32>
    %9 = arith.subf %1, %8 : vector<10x32xf32>
    %10 = arith.mulf %9, %9 : vector<10x32xf32>
    %cst_7 = arith.constant dense<0.000000e+00> : vector<10xf32>
    %11 = vector.multi_reduction <add>, %10, %cst_7 [1] : vector<10x32xf32> to vector<10xf32>
    %12 = vector.shape_cast %11 : vector<10xf32> to vector<10x1xf32>
    %cst_8 = arith.constant 3.200000e+01 : f32
    %13 = vector.broadcast %cst_8 : f32 to vector<10x1xf32>
    %14 = arith.divf %12, %13 : vector<10x1xf32>
    %cst_9 = arith.constant 9.99999974E-6 : f32
    %15 = vector.broadcast %cst_9 : f32 to vector<10x1xf32>
    %16 = arith.addf %14, %15 : vector<10x1xf32>
    %17 = math.rsqrt %16 : vector<10x1xf32>
    %18 = vector.broadcast %7 : vector<10x1xf32> to vector<10x32xf32>
    %19 = arith.subf %1, %18 : vector<10x32xf32>
    %20 = vector.broadcast %17 : vector<10x1xf32> to vector<10x32xf32>
    %21 = arith.mulf %19, %20 : vector<10x32xf32>
    %22 = vector.broadcast %2 : vector<1x32xf32> to vector<10x32xf32>
    %23 = arith.mulf %21, %22 : vector<10x32xf32>
    %24 = vector.broadcast %3 : vector<1x32xf32> to vector<10x32xf32>
    %25 = arith.addf %23, %24 : vector<10x32xf32>
    %c0_10 = arith.constant 0 : index
    %c0_11 = arith.constant 0 : index
    %26 = vector.load %arg4[%c0_10, %c0_11] : memref<32x128xf32, #tpu.memory_space<vmem>>, vector<32x128xf32>
    %cst_12 = arith.constant dense<0.000000e+00> : vector<10x128xf32>
    %27 = tpu.matmul %25, %26, %cst_12 {dimension_numbers = #tpu.dot_dimension_numbers<[1], [0], [0], [1], [0, 0, 1, 1], [], []>} : vector<10x32xf32>, vector<32x128xf32>, vector<10x128xf32> -> vector<10x128xf32>
    %c0_13 = arith.constant 0 : index
    %c0_14 = arith.constant 0 : index
    %28 = vector.load %arg5[%c0_13, %c0_14] : memref<1x128xf32, #tpu.memory_space<vmem>>, vector<1x128xf32>
    %29 = vector.broadcast %28 : vector<1x128xf32> to vector<10x128xf32>
    %30 = arith.addf %27, %29 : vector<10x128xf32>
    %31 = arith.mulf %30, %30 : vector<10x128xf32>
    %32 = arith.mulf %30, %31 : vector<10x128xf32>
    %cst_15 = arith.constant 4.471500e-02 : f32
    %33 = vector.broadcast %cst_15 : f32 to vector<10x128xf32>
    %34 = arith.mulf %33, %32 : vector<10x128xf32>
    %35 = arith.addf %30, %34 : vector<10x128xf32>
    %cst_16 = arith.constant 0.797884583 : f32
    %36 = vector.broadcast %cst_16 : f32 to vector<10x128xf32>
    %37 = arith.mulf %36, %35 : vector<10x128xf32>
    %38 = math.tanh %37 : vector<10x128xf32>
    %cst_17 = arith.constant 1.000000e+00 : f32
    %39 = vector.broadcast %cst_17 : f32 to vector<10x128xf32>
    %40 = arith.addf %39, %38 : vector<10x128xf32>
    %cst_18 = arith.constant 5.000000e-01 : f32
    %41 = vector.broadcast %cst_18 : f32 to vector<10x128xf32>
    %42 = arith.mulf %41, %40 : vector<10x128xf32>
    %43 = arith.mulf %30, %42 : vector<10x128xf32>
    %c0_19 = arith.constant 0 : index
    %c0_20 = arith.constant 0 : index
    %44 = vector.load %arg6[%c0_19, %c0_20] : memref<128x32xf32, #tpu.memory_space<vmem>>, vector<128x32xf32>
    %cst_21 = arith.constant dense<0.000000e+00> : vector<10x32xf32>
    %45 = tpu.matmul %43, %44, %cst_21 {dimension_numbers = #tpu.dot_dimension_numbers<[1], [0], [0], [1], [0, 0, 1, 1], [], []>} : vector<10x128xf32>, vector<128x32xf32>, vector<10x32xf32> -> vector<10x32xf32>
    %c0_22 = arith.constant 0 : index
    %c0_23 = arith.constant 0 : index
    %46 = vector.load %arg7[%c0_22, %c0_23] : memref<1x32xf32, #tpu.memory_space<vmem>>, vector<1x32xf32>
    %47 = vector.broadcast %46 : vector<1x32xf32> to vector<10x32xf32>
    %48 = arith.addf %45, %47 : vector<10x32xf32>
    %49 = arith.addf %1, %48 : vector<10x32xf32>
    %c0_24 = arith.constant 0 : index
    %c0_25 = arith.constant 0 : index
    %c0_26 = arith.constant 0 : index
    %50 = vector.load %arg8[%c0_24, %c0_25, %c0_26] : memref<1x10x32xf32, #tpu.memory_space<vmem>>, vector<1x10x32xf32>
    %51 = vector.shape_cast %50 : vector<1x10x32xf32> to vector<10x32xf32>
    %52 = vector.shape_cast %49 : vector<10x32xf32> to vector<1x10x32xf32>
    tpu.vector_store %arg8[%c0_24, %c0_25, %c0_26], %52 {strides = array<i32>} : memref<1x10x32xf32, #tpu.memory_space<vmem>>, vector<1x10x32xf32>,
    return
  }
  func.func @transform_0(%arg0: i32) -> (i32, i32, i32) {
    %c0_i32 = arith.constant 0 : i32
    %c0_i32_0 = arith.constant 0 : i32
    %c0_i32_1 = arith.constant 0 : i32
    return %arg0, %c0_i32, %c0_i32_0 : i32, i32, i32
  }
  func.func @transform_1(%arg0: i32) -> (i32, i32) {
    %c0_i32 = arith.constant 0 : i32
    %c0_i32_0 = arith.constant 0 : i32
    %c0_i32_1 = arith.constant 0 : i32
    return %c0_i32, %c0_i32_0 : i32, i32
  }
  func.func @transform_2(%arg0: i32) -> (i32, i32) {
    %c0_i32 = arith.constant 0 : i32
    %c0_i32_0 = arith.constant 0 : i32
    %c0_i32_1 = arith.constant 0 : i32
    return %c0_i32, %c0_i32_0 : i32, i32
  }
  func.func @transform_3(%arg0: i32) -> (i32, i32) {
    %c0_i32 = arith.constant 0 : i32
    %c0_i32_0 = arith.constant 0 : i32
    %c0_i32_1 = arith.constant 0 : i32
    return %c0_i32, %c0_i32_0 : i32, i32
  }
  func.func @transform_4(%arg0: i32) -> (i32, i32) {
    %c0_i32 = arith.constant 0 : i32
    %c0_i32_0 = arith.constant 0 : i32
    %c0_i32_1 = arith.constant 0 : i32
    return %c0_i32, %c0_i32_0 : i32, i32
  }
  func.func @transform_5(%arg0: i32) -> (i32, i32) {
    %c0_i32 = arith.constant 0 : i32
    %c0_i32_0 = arith.constant 0 : i32
    %c0_i32_1 = arith.constant 0 : i32
    return %c0_i32, %c0_i32_0 : i32, i32
  }
  func.func @transform_6(%arg0: i32) -> (i32, i32) {
    %c0_i32 = arith.constant 0 : i32
    %c0_i32_0 = arith.constant 0 : i32
    %c0_i32_1 = arith.constant 0 : i32
    return %c0_i32, %c0_i32_0 : i32, i32
  }
  func.func @transform_7(%arg0: i32) -> (i32, i32, i32) {
    %c0_i32 = arith.constant 0 : i32
    %c0_i32_0 = arith.constant 0 : i32
    %c0_i32_1 = arith.constant 0 : i32
    return %arg0, %c0_i32, %c0_i32_0 : i32, i32, i32
  }
}

module attributes {stable_mosaic.version = 11 : i64} {
  func.func @_attn_block_kernel(%arg0: i32, %arg1: memref<1x10x32xf32, #tpu.memory_space<vmem>>, %arg2: memref<1x10x32xf32, #tpu.memory_space<vmem>>, %arg3: memref<1x32xf32, #tpu.memory_space<vmem>>, %arg4: memref<1x32xf32, #tpu.memory_space<vmem>>, %arg5: memref<1x32xf32, #tpu.memory_space<vmem>>, %arg6: memref<1x32xf32, #tpu.memory_space<vmem>>, %arg7: memref<32x32xf32, #tpu.memory_space<vmem>>, %arg8: memref<1x32xf32, #tpu.memory_space<vmem>>, %arg9: memref<32x64xf32, #tpu.memory_space<vmem>>, %arg10: memref<1x64xf32, #tpu.memory_space<vmem>>, %arg11: memref<32x32xf32, #tpu.memory_space<vmem>>, %arg12: memref<1x32xf32, #tpu.memory_space<vmem>>, %arg13: memref<1x10x32xf32, #tpu.memory_space<vmem>>) attributes {dimension_semantics = [#tpu.dimension_semantics<parallel>], iteration_bounds = array<i64: 2>, scalar_prefetch = 0 : i64, scratch_operands = 0 : i64, tpu.core_type = #tpu.core_type<tc>, window_params = [{transform_indices = @transform_0, window_bounds = array<i64: 1, 10, 32>}, {transform_indices = @transform_1, window_bounds = array<i64: 1, 10, 32>}, {pipeline_mode = #tpu.pipeline_mode<synchronous>, transform_indices = @transform_2, window_bounds = array<i64: 1, 32>}, {pipeline_mode = #tpu.pipeline_mode<synchronous>, transform_indices = @transform_3, window_bounds = array<i64: 1, 32>}, {pipeline_mode = #tpu.pipeline_mode<synchronous>, transform_indices = @transform_4, window_bounds = array<i64: 1, 32>}, {pipeline_mode = #tpu.pipeline_mode<synchronous>, transform_indices = @transform_5, window_bounds = array<i64: 1, 32>}, {pipeline_mode = #tpu.pipeline_mode<synchronous>, transform_indices = @transform_6, window_bounds = array<i64: 32, 32>}, {pipeline_mode = #tpu.pipeline_mode<synchronous>, transform_indices = @transform_7, window_bounds = array<i64: 1, 32>}, {pipeline_mode = #tpu.pipeline_mode<synchronous>, transform_indices = @transform_8, window_bounds = array<i64: 32, 64>}, {pipeline_mode = #tpu.pipeline_mode<synchronous>, transform_indices = @transform_9, window_bounds = array<i64: 1, 64>}, {pipeline_mode = #tpu.pipeline_mode<synchronous>, transform_indices = @transform_10, window_bounds = array<i64: 32, 32>}, {pipeline_mode = #tpu.pipeline_mode<synchronous>, transform_indices = @transform_11, window_bounds = array<i64: 1, 32>}, {transform_indices = @transform_12, window_bounds = array<i64: 1, 10, 32>}]} {
    %c0 = arith.constant 0 : index
    %c0_0 = arith.constant 0 : index
    %c0_1 = arith.constant 0 : index
    %0 = vector.load %arg1[%c0, %c0_0, %c0_1] : memref<1x10x32xf32, #tpu.memory_space<vmem>>, vector<1x10x32xf32>
    %1 = vector.shape_cast %0 : vector<1x10x32xf32> to vector<10x32xf32>
    %c0_2 = arith.constant 0 : index
    %c0_3 = arith.constant 0 : index
    %c0_4 = arith.constant 0 : index
    %2 = vector.load %arg2[%c0_2, %c0_3, %c0_4] : memref<1x10x32xf32, #tpu.memory_space<vmem>>, vector<1x10x32xf32>
    %3 = vector.shape_cast %2 : vector<1x10x32xf32> to vector<10x32xf32>
    %c0_5 = arith.constant 0 : index
    %c0_6 = arith.constant 0 : index
    %4 = vector.load %arg3[%c0_5, %c0_6] : memref<1x32xf32, #tpu.memory_space<vmem>>, vector<1x32xf32>
    %c0_7 = arith.constant 0 : index
    %c0_8 = arith.constant 0 : index
    %5 = vector.load %arg4[%c0_7, %c0_8] : memref<1x32xf32, #tpu.memory_space<vmem>>, vector<1x32xf32>
    %cst = arith.constant dense<0.000000e+00> : vector<10xf32>
    %6 = vector.multi_reduction <add>, %1, %cst [1] : vector<10x32xf32> to vector<10xf32>
    %7 = vector.shape_cast %6 : vector<10xf32> to vector<10x1xf32>
    %cst_9 = arith.constant 3.200000e+01 : f32
    %8 = vector.broadcast %cst_9 : f32 to vector<10x1xf32>
    %9 = arith.divf %7, %8 : vector<10x1xf32>
    %10 = vector.broadcast %9 : vector<10x1xf32> to vector<10x32xf32>
    %11 = arith.subf %1, %10 : vector<10x32xf32>
    %12 = arith.mulf %11, %11 : vector<10x32xf32>
    %cst_10 = arith.constant dense<0.000000e+00> : vector<10xf32>
    %13 = vector.multi_reduction <add>, %12, %cst_10 [1] : vector<10x32xf32> to vector<10xf32>
    %14 = vector.shape_cast %13 : vector<10xf32> to vector<10x1xf32>
    %cst_11 = arith.constant 3.200000e+01 : f32
    %15 = vector.broadcast %cst_11 : f32 to vector<10x1xf32>
    %16 = arith.divf %14, %15 : vector<10x1xf32>
    %cst_12 = arith.constant 9.99999974E-6 : f32
    %17 = vector.broadcast %cst_12 : f32 to vector<10x1xf32>
    %18 = arith.addf %16, %17 : vector<10x1xf32>
    %19 = math.rsqrt %18 : vector<10x1xf32>
    %20 = vector.broadcast %9 : vector<10x1xf32> to vector<10x32xf32>
    %21 = arith.subf %1, %20 : vector<10x32xf32>
    %22 = vector.broadcast %19 : vector<10x1xf32> to vector<10x32xf32>
    %23 = arith.mulf %21, %22 : vector<10x32xf32>
    %24 = vector.broadcast %4 : vector<1x32xf32> to vector<10x32xf32>
    %25 = arith.mulf %23, %24 : vector<10x32xf32>
    %26 = vector.broadcast %5 : vector<1x32xf32> to vector<10x32xf32>
    %27 = arith.addf %25, %26 : vector<10x32xf32>
    %c0_13 = arith.constant 0 : index
    %c0_14 = arith.constant 0 : index
    %28 = vector.load %arg5[%c0_13, %c0_14] : memref<1x32xf32, #tpu.memory_space<vmem>>, vector<1x32xf32>
    %c0_15 = arith.constant 0 : index
    %c0_16 = arith.constant 0 : index
    %29 = vector.load %arg6[%c0_15, %c0_16] : memref<1x32xf32, #tpu.memory_space<vmem>>, vector<1x32xf32>
    %cst_17 = arith.constant dense<0.000000e+00> : vector<10xf32>
    %30 = vector.multi_reduction <add>, %3, %cst_17 [1] : vector<10x32xf32> to vector<10xf32>
    %31 = vector.shape_cast %30 : vector<10xf32> to vector<10x1xf32>
    %cst_18 = arith.constant 3.200000e+01 : f32
    %32 = vector.broadcast %cst_18 : f32 to vector<10x1xf32>
    %33 = arith.divf %31, %32 : vector<10x1xf32>
    %34 = vector.broadcast %33 : vector<10x1xf32> to vector<10x32xf32>
    %35 = arith.subf %3, %34 : vector<10x32xf32>
    %36 = arith.mulf %35, %35 : vector<10x32xf32>
    %cst_19 = arith.constant dense<0.000000e+00> : vector<10xf32>
    %37 = vector.multi_reduction <add>, %36, %cst_19 [1] : vector<10x32xf32> to vector<10xf32>
    %38 = vector.shape_cast %37 : vector<10xf32> to vector<10x1xf32>
    %cst_20 = arith.constant 3.200000e+01 : f32
    %39 = vector.broadcast %cst_20 : f32 to vector<10x1xf32>
    %40 = arith.divf %38, %39 : vector<10x1xf32>
    %cst_21 = arith.constant 9.99999974E-6 : f32
    %41 = vector.broadcast %cst_21 : f32 to vector<10x1xf32>
    %42 = arith.addf %40, %41 : vector<10x1xf32>
    %43 = math.rsqrt %42 : vector<10x1xf32>
    %44 = vector.broadcast %33 : vector<10x1xf32> to vector<10x32xf32>
    %45 = arith.subf %3, %44 : vector<10x32xf32>
    %46 = vector.broadcast %43 : vector<10x1xf32> to vector<10x32xf32>
    %47 = arith.mulf %45, %46 : vector<10x32xf32>
    %48 = vector.broadcast %28 : vector<1x32xf32> to vector<10x32xf32>
    %49 = arith.mulf %47, %48 : vector<10x32xf32>
    %50 = vector.broadcast %29 : vector<1x32xf32> to vector<10x32xf32>
    %51 = arith.addf %49, %50 : vector<10x32xf32>
    %c0_22 = arith.constant 0 : index
    %c0_23 = arith.constant 0 : index
    %52 = vector.load %arg7[%c0_22, %c0_23] : memref<32x32xf32, #tpu.memory_space<vmem>>, vector<32x32xf32>
    %cst_24 = arith.constant dense<0.000000e+00> : vector<10x32xf32>
    %53 = tpu.matmul %27, %52, %cst_24 {dimension_numbers = #tpu.dot_dimension_numbers<[1], [0], [0], [1], [0, 0, 1, 1], [], []>} : vector<10x32xf32>, vector<32x32xf32>, vector<10x32xf32> -> vector<10x32xf32>
    %c0_25 = arith.constant 0 : index
    %c0_26 = arith.constant 0 : index
    %54 = vector.load %arg8[%c0_25, %c0_26] : memref<1x32xf32, #tpu.memory_space<vmem>>, vector<1x32xf32>
    %55 = vector.broadcast %54 : vector<1x32xf32> to vector<10x32xf32>
    %56 = arith.addf %53, %55 : vector<10x32xf32>
    %c0_27 = arith.constant 0 : index
    %c0_28 = arith.constant 0 : index
    %57 = vector.load %arg9[%c0_27, %c0_28] : memref<32x64xf32, #tpu.memory_space<vmem>>, vector<32x64xf32>
    %cst_29 = arith.constant dense<0.000000e+00> : vector<10x64xf32>
    %58 = tpu.matmul %51, %57, %cst_29 {dimension_numbers = #tpu.dot_dimension_numbers<[1], [0], [0], [1], [0, 0, 1, 1], [], []>} : vector<10x32xf32>, vector<32x64xf32>, vector<10x64xf32> -> vector<10x64xf32>
    %c0_30 = arith.constant 0 : index
    %c0_31 = arith.constant 0 : index
    %59 = vector.load %arg10[%c0_30, %c0_31] : memref<1x64xf32, #tpu.memory_space<vmem>>, vector<1x64xf32>
    %60 = vector.broadcast %59 : vector<1x64xf32> to vector<10x64xf32>
    %61 = arith.addf %58, %60 : vector<10x64xf32>
    %62 = vector.extract_strided_slice %61 {offsets = [0, 0], sizes = [10, 32], strides = [1, 1]} : vector<10x64xf32> to vector<10x32xf32>
    %63 = vector.extract_strided_slice %61 {offsets = [0, 32], sizes = [10, 32], strides = [1, 1]} : vector<10x64xf32> to vector<10x32xf32>
    %64 = tpu.transpose %62, [1, 0] : vector<10x32xf32> -> vector<32x10xf32>
    %cst_32 = arith.constant dense<0.000000e+00> : vector<10x10xf32>
    %65 = tpu.matmul %56, %64, %cst_32 {dimension_numbers = #tpu.dot_dimension_numbers<[1], [0], [0], [1], [0, 0, 1, 1], [], []>} : vector<10x32xf32>, vector<32x10xf32>, vector<10x10xf32> -> vector<10x10xf32>
    %cst_33 = arith.constant 0.176776692 : f32
    %66 = vector.broadcast %cst_33 : f32 to vector<10x10xf32>
    %67 = arith.mulf %65, %66 : vector<10x10xf32>
    %cst_34 = arith.constant dense<0xFF800000> : vector<10xf32>
    %68 = vector.multi_reduction <maximumf>, %67, %cst_34 [1] : vector<10x10xf32> to vector<10xf32>
    %69 = vector.shape_cast %68 : vector<10xf32> to vector<10x1xf32>
    %70 = vector.broadcast %69 : vector<10x1xf32> to vector<10x10xf32>
    %71 = arith.subf %67, %70 : vector<10x10xf32>
    %72 = math.exp %71 : vector<10x10xf32>
    %cst_35 = arith.constant dense<0.000000e+00> : vector<10xf32>
    %73 = vector.multi_reduction <add>, %72, %cst_35 [1] : vector<10x10xf32> to vector<10xf32>
    %74 = vector.shape_cast %73 : vector<10xf32> to vector<10x1xf32>
    %75 = tpu.reciprocal %74 {approx = true} : vector<10x1xf32> -> vector<10x1xf32>
    %76 = vector.broadcast %75 : vector<10x1xf32> to vector<10x10xf32>
    %77 = arith.mulf %72, %76 : vector<10x10xf32>
    %cst_36 = arith.constant dense<0.000000e+00> : vector<10x32xf32>
    %78 = tpu.matmul %77, %63, %cst_36 {dimension_numbers = #tpu.dot_dimension_numbers<[1], [0], [0], [1], [0, 0, 1, 1], [], []>} : vector<10x10xf32>, vector<10x32xf32>, vector<10x32xf32> -> vector<10x32xf32>
    %c0_37 = arith.constant 0 : index
    %c0_38 = arith.constant 0 : index
    %79 = vector.load %arg11[%c0_37, %c0_38] : memref<32x32xf32, #tpu.memory_space<vmem>>, vector<32x32xf32>
    %cst_39 = arith.constant dense<0.000000e+00> : vector<10x32xf32>
    %80 = tpu.matmul %78, %79, %cst_39 {dimension_numbers = #tpu.dot_dimension_numbers<[1], [0], [0], [1], [0, 0, 1, 1], [], []>} : vector<10x32xf32>, vector<32x32xf32>, vector<10x32xf32> -> vector<10x32xf32>
    %c0_40 = arith.constant 0 : index
    %c0_41 = arith.constant 0 : index
    %81 = vector.load %arg12[%c0_40, %c0_41] : memref<1x32xf32, #tpu.memory_space<vmem>>, vector<1x32xf32>
    %82 = vector.broadcast %81 : vector<1x32xf32> to vector<10x32xf32>
    %83 = arith.addf %80, %82 : vector<10x32xf32>
    %84 = arith.addf %1, %83 : vector<10x32xf32>
    %c0_42 = arith.constant 0 : index
    %c0_43 = arith.constant 0 : index
    %c0_44 = arith.constant 0 : index
    %85 = vector.load %arg13[%c0_42, %c0_43, %c0_44] : memref<1x10x32xf32, #tpu.memory_space<vmem>>, vector<1x10x32xf32>
    %86 = vector.shape_cast %85 : vector<1x10x32xf32> to vector<10x32xf32>
    %87 = vector.shape_cast %84 : vector<10x32xf32> to vector<1x10x32xf32>
    tpu.vector_store %arg13[%c0_42, %c0_43, %c0_44], %87 {strides = array<i32>} : memref<1x10x32xf32, #tpu.memory_space<vmem>>, vector<1x10x32xf32>,
    return
  }
  func.func @transform_0(%arg0: i32) -> (i32, i32, i32) {
    %c0_i32 = arith.constant 0 : i32
    %c0_i32_0 = arith.constant 0 : i32
    %c0_i32_1 = arith.constant 0 : i32
    return %arg0, %c0_i32, %c0_i32_0 : i32, i32, i32
  }
  func.func @transform_1(%arg0: i32) -> (i32, i32, i32) {
    %c0_i32 = arith.constant 0 : i32
    %c0_i32_0 = arith.constant 0 : i32
    %c0_i32_1 = arith.constant 0 : i32
    return %arg0, %c0_i32, %c0_i32_0 : i32, i32, i32
  }
  func.func @transform_2(%arg0: i32) -> (i32, i32) {
    %c0_i32 = arith.constant 0 : i32
    %c0_i32_0 = arith.constant 0 : i32
    %c0_i32_1 = arith.constant 0 : i32
    return %c0_i32, %c0_i32_0 : i32, i32
  }
  func.func @transform_3(%arg0: i32) -> (i32, i32) {
    %c0_i32 = arith.constant 0 : i32
    %c0_i32_0 = arith.constant 0 : i32
    %c0_i32_1 = arith.constant 0 : i32
    return %c0_i32, %c0_i32_0 : i32, i32
  }
  func.func @transform_4(%arg0: i32) -> (i32, i32) {
    %c0_i32 = arith.constant 0 : i32
    %c0_i32_0 = arith.constant 0 : i32
    %c0_i32_1 = arith.constant 0 : i32
    return %c0_i32, %c0_i32_0 : i32, i32
  }
  func.func @transform_5(%arg0: i32) -> (i32, i32) {
    %c0_i32 = arith.constant 0 : i32
    %c0_i32_0 = arith.constant 0 : i32
    %c0_i32_1 = arith.constant 0 : i32
    return %c0_i32, %c0_i32_0 : i32, i32
  }
  func.func @transform_6(%arg0: i32) -> (i32, i32) {
    %c0_i32 = arith.constant 0 : i32
    %c0_i32_0 = arith.constant 0 : i32
    %c0_i32_1 = arith.constant 0 : i32
    return %c0_i32, %c0_i32_0 : i32, i32
  }
  func.func @transform_7(%arg0: i32) -> (i32, i32) {
    %c0_i32 = arith.constant 0 : i32
    %c0_i32_0 = arith.constant 0 : i32
    %c0_i32_1 = arith.constant 0 : i32
    return %c0_i32, %c0_i32_0 : i32, i32
  }
  func.func @transform_8(%arg0: i32) -> (i32, i32) {
    %c0_i32 = arith.constant 0 : i32
    %c0_i32_0 = arith.constant 0 : i32
    %c0_i32_1 = arith.constant 0 : i32
    return %c0_i32, %c0_i32_0 : i32, i32
  }
  func.func @transform_9(%arg0: i32) -> (i32, i32) {
    %c0_i32 = arith.constant 0 : i32
    %c0_i32_0 = arith.constant 0 : i32
    %c0_i32_1 = arith.constant 0 : i32
    return %c0_i32, %c0_i32_0 : i32, i32
  }
  func.func @transform_10(%arg0: i32) -> (i32, i32) {
    %c0_i32 = arith.constant 0 : i32
    %c0_i32_0 = arith.constant 0 : i32
    %c0_i32_1 = arith.constant 0 : i32
    return %c0_i32, %c0_i32_0 : i32, i32
  }
  func.func @transform_11(%arg0: i32) -> (i32, i32) {
    %c0_i32 = arith.constant 0 : i32
    %c0_i32_0 = arith.constant 0 : i32
    %c0_i32_1 = arith.constant 0 : i32
    return %c0_i32, %c0_i32_0 : i32, i32
  }
  func.func @transform_12(%arg0: i32) -> (i32, i32, i32) {
    %c0_i32 = arith.constant 0 : i32
    %c0_i32_0 = arith.constant 0 : i32
    %c0_i32_1 = arith.constant 0 : i32
    return %arg0, %c0_i32, %c0_i32_0 : i32, i32, i32
  }
}

module attributes {stable_mosaic.version = 11 : i64} {
  func.func @_attn_block_kernel(%arg0: i32, %arg1: memref<1x16x32xf32, #tpu.memory_space<vmem>>, %arg2: memref<1x10x32xf32, #tpu.memory_space<vmem>>, %arg3: memref<1x32xf32, #tpu.memory_space<vmem>>, %arg4: memref<1x32xf32, #tpu.memory_space<vmem>>, %arg5: memref<1x32xf32, #tpu.memory_space<vmem>>, %arg6: memref<1x32xf32, #tpu.memory_space<vmem>>, %arg7: memref<32x32xf32, #tpu.memory_space<vmem>>, %arg8: memref<1x32xf32, #tpu.memory_space<vmem>>, %arg9: memref<32x64xf32, #tpu.memory_space<vmem>>, %arg10: memref<1x64xf32, #tpu.memory_space<vmem>>, %arg11: memref<32x32xf32, #tpu.memory_space<vmem>>, %arg12: memref<1x32xf32, #tpu.memory_space<vmem>>, %arg13: memref<1x16x32xf32, #tpu.memory_space<vmem>>) attributes {dimension_semantics = [#tpu.dimension_semantics<parallel>], iteration_bounds = array<i64: 2>, scalar_prefetch = 0 : i64, scratch_operands = 0 : i64, tpu.core_type = #tpu.core_type<tc>, window_params = [{transform_indices = @transform_0, window_bounds = array<i64: 1, 16, 32>}, {transform_indices = @transform_1, window_bounds = array<i64: 1, 10, 32>}, {pipeline_mode = #tpu.pipeline_mode<synchronous>, transform_indices = @transform_2, window_bounds = array<i64: 1, 32>}, {pipeline_mode = #tpu.pipeline_mode<synchronous>, transform_indices = @transform_3, window_bounds = array<i64: 1, 32>}, {pipeline_mode = #tpu.pipeline_mode<synchronous>, transform_indices = @transform_4, window_bounds = array<i64: 1, 32>}, {pipeline_mode = #tpu.pipeline_mode<synchronous>, transform_indices = @transform_5, window_bounds = array<i64: 1, 32>}, {pipeline_mode = #tpu.pipeline_mode<synchronous>, transform_indices = @transform_6, window_bounds = array<i64: 32, 32>}, {pipeline_mode = #tpu.pipeline_mode<synchronous>, transform_indices = @transform_7, window_bounds = array<i64: 1, 32>}, {pipeline_mode = #tpu.pipeline_mode<synchronous>, transform_indices = @transform_8, window_bounds = array<i64: 32, 64>}, {pipeline_mode = #tpu.pipeline_mode<synchronous>, transform_indices = @transform_9, window_bounds = array<i64: 1, 64>}, {pipeline_mode = #tpu.pipeline_mode<synchronous>, transform_indices = @transform_10, window_bounds = array<i64: 32, 32>}, {pipeline_mode = #tpu.pipeline_mode<synchronous>, transform_indices = @transform_11, window_bounds = array<i64: 1, 32>}, {transform_indices = @transform_12, window_bounds = array<i64: 1, 16, 32>}]} {
    %c0 = arith.constant 0 : index
    %c0_0 = arith.constant 0 : index
    %c0_1 = arith.constant 0 : index
    %0 = vector.load %arg1[%c0, %c0_0, %c0_1] : memref<1x16x32xf32, #tpu.memory_space<vmem>>, vector<1x16x32xf32>
    %1 = vector.shape_cast %0 : vector<1x16x32xf32> to vector<16x32xf32>
    %c0_2 = arith.constant 0 : index
    %c0_3 = arith.constant 0 : index
    %c0_4 = arith.constant 0 : index
    %2 = vector.load %arg2[%c0_2, %c0_3, %c0_4] : memref<1x10x32xf32, #tpu.memory_space<vmem>>, vector<1x10x32xf32>
    %3 = vector.shape_cast %2 : vector<1x10x32xf32> to vector<10x32xf32>
    %c0_5 = arith.constant 0 : index
    %c0_6 = arith.constant 0 : index
    %4 = vector.load %arg3[%c0_5, %c0_6] : memref<1x32xf32, #tpu.memory_space<vmem>>, vector<1x32xf32>
    %c0_7 = arith.constant 0 : index
    %c0_8 = arith.constant 0 : index
    %5 = vector.load %arg4[%c0_7, %c0_8] : memref<1x32xf32, #tpu.memory_space<vmem>>, vector<1x32xf32>
    %cst = arith.constant dense<0.000000e+00> : vector<16xf32>
    %6 = vector.multi_reduction <add>, %1, %cst [1] : vector<16x32xf32> to vector<16xf32>
    %7 = vector.shape_cast %6 : vector<16xf32> to vector<16x1xf32>
    %cst_9 = arith.constant 3.200000e+01 : f32
    %8 = vector.broadcast %cst_9 : f32 to vector<16x1xf32>
    %9 = arith.divf %7, %8 : vector<16x1xf32>
    %10 = vector.broadcast %9 : vector<16x1xf32> to vector<16x32xf32>
    %11 = arith.subf %1, %10 : vector<16x32xf32>
    %12 = arith.mulf %11, %11 : vector<16x32xf32>
    %cst_10 = arith.constant dense<0.000000e+00> : vector<16xf32>
    %13 = vector.multi_reduction <add>, %12, %cst_10 [1] : vector<16x32xf32> to vector<16xf32>
    %14 = vector.shape_cast %13 : vector<16xf32> to vector<16x1xf32>
    %cst_11 = arith.constant 3.200000e+01 : f32
    %15 = vector.broadcast %cst_11 : f32 to vector<16x1xf32>
    %16 = arith.divf %14, %15 : vector<16x1xf32>
    %cst_12 = arith.constant 9.99999974E-6 : f32
    %17 = vector.broadcast %cst_12 : f32 to vector<16x1xf32>
    %18 = arith.addf %16, %17 : vector<16x1xf32>
    %19 = math.rsqrt %18 : vector<16x1xf32>
    %20 = vector.broadcast %9 : vector<16x1xf32> to vector<16x32xf32>
    %21 = arith.subf %1, %20 : vector<16x32xf32>
    %22 = vector.broadcast %19 : vector<16x1xf32> to vector<16x32xf32>
    %23 = arith.mulf %21, %22 : vector<16x32xf32>
    %24 = vector.broadcast %4 : vector<1x32xf32> to vector<16x32xf32>
    %25 = arith.mulf %23, %24 : vector<16x32xf32>
    %26 = vector.broadcast %5 : vector<1x32xf32> to vector<16x32xf32>
    %27 = arith.addf %25, %26 : vector<16x32xf32>
    %c0_13 = arith.constant 0 : index
    %c0_14 = arith.constant 0 : index
    %28 = vector.load %arg5[%c0_13, %c0_14] : memref<1x32xf32, #tpu.memory_space<vmem>>, vector<1x32xf32>
    %c0_15 = arith.constant 0 : index
    %c0_16 = arith.constant 0 : index
    %29 = vector.load %arg6[%c0_15, %c0_16] : memref<1x32xf32, #tpu.memory_space<vmem>>, vector<1x32xf32>
    %cst_17 = arith.constant dense<0.000000e+00> : vector<10xf32>
    %30 = vector.multi_reduction <add>, %3, %cst_17 [1] : vector<10x32xf32> to vector<10xf32>
    %31 = vector.shape_cast %30 : vector<10xf32> to vector<10x1xf32>
    %cst_18 = arith.constant 3.200000e+01 : f32
    %32 = vector.broadcast %cst_18 : f32 to vector<10x1xf32>
    %33 = arith.divf %31, %32 : vector<10x1xf32>
    %34 = vector.broadcast %33 : vector<10x1xf32> to vector<10x32xf32>
    %35 = arith.subf %3, %34 : vector<10x32xf32>
    %36 = arith.mulf %35, %35 : vector<10x32xf32>
    %cst_19 = arith.constant dense<0.000000e+00> : vector<10xf32>
    %37 = vector.multi_reduction <add>, %36, %cst_19 [1] : vector<10x32xf32> to vector<10xf32>
    %38 = vector.shape_cast %37 : vector<10xf32> to vector<10x1xf32>
    %cst_20 = arith.constant 3.200000e+01 : f32
    %39 = vector.broadcast %cst_20 : f32 to vector<10x1xf32>
    %40 = arith.divf %38, %39 : vector<10x1xf32>
    %cst_21 = arith.constant 9.99999974E-6 : f32
    %41 = vector.broadcast %cst_21 : f32 to vector<10x1xf32>
    %42 = arith.addf %40, %41 : vector<10x1xf32>
    %43 = math.rsqrt %42 : vector<10x1xf32>
    %44 = vector.broadcast %33 : vector<10x1xf32> to vector<10x32xf32>
    %45 = arith.subf %3, %44 : vector<10x32xf32>
    %46 = vector.broadcast %43 : vector<10x1xf32> to vector<10x32xf32>
    %47 = arith.mulf %45, %46 : vector<10x32xf32>
    %48 = vector.broadcast %28 : vector<1x32xf32> to vector<10x32xf32>
    %49 = arith.mulf %47, %48 : vector<10x32xf32>
    %50 = vector.broadcast %29 : vector<1x32xf32> to vector<10x32xf32>
    %51 = arith.addf %49, %50 : vector<10x32xf32>
    %c0_22 = arith.constant 0 : index
    %c0_23 = arith.constant 0 : index
    %52 = vector.load %arg7[%c0_22, %c0_23] : memref<32x32xf32, #tpu.memory_space<vmem>>, vector<32x32xf32>
    %cst_24 = arith.constant dense<0.000000e+00> : vector<16x32xf32>
    %53 = tpu.matmul %27, %52, %cst_24 {dimension_numbers = #tpu.dot_dimension_numbers<[1], [0], [0], [1], [0, 0, 1, 1], [], []>} : vector<16x32xf32>, vector<32x32xf32>, vector<16x32xf32> -> vector<16x32xf32>
    %c0_25 = arith.constant 0 : index
    %c0_26 = arith.constant 0 : index
    %54 = vector.load %arg8[%c0_25, %c0_26] : memref<1x32xf32, #tpu.memory_space<vmem>>, vector<1x32xf32>
    %55 = vector.broadcast %54 : vector<1x32xf32> to vector<16x32xf32>
    %56 = arith.addf %53, %55 : vector<16x32xf32>
    %c0_27 = arith.constant 0 : index
    %c0_28 = arith.constant 0 : index
    %57 = vector.load %arg9[%c0_27, %c0_28] : memref<32x64xf32, #tpu.memory_space<vmem>>, vector<32x64xf32>
    %cst_29 = arith.constant dense<0.000000e+00> : vector<10x64xf32>
    %58 = tpu.matmul %51, %57, %cst_29 {dimension_numbers = #tpu.dot_dimension_numbers<[1], [0], [0], [1], [0, 0, 1, 1], [], []>} : vector<10x32xf32>, vector<32x64xf32>, vector<10x64xf32> -> vector<10x64xf32>
    %c0_30 = arith.constant 0 : index
    %c0_31 = arith.constant 0 : index
    %59 = vector.load %arg10[%c0_30, %c0_31] : memref<1x64xf32, #tpu.memory_space<vmem>>, vector<1x64xf32>
    %60 = vector.broadcast %59 : vector<1x64xf32> to vector<10x64xf32>
    %61 = arith.addf %58, %60 : vector<10x64xf32>
    %62 = vector.extract_strided_slice %61 {offsets = [0, 0], sizes = [10, 32], strides = [1, 1]} : vector<10x64xf32> to vector<10x32xf32>
    %63 = vector.extract_strided_slice %61 {offsets = [0, 32], sizes = [10, 32], strides = [1, 1]} : vector<10x64xf32> to vector<10x32xf32>
    %64 = tpu.transpose %62, [1, 0] : vector<10x32xf32> -> vector<32x10xf32>
    %cst_32 = arith.constant dense<0.000000e+00> : vector<16x10xf32>
    %65 = tpu.matmul %56, %64, %cst_32 {dimension_numbers = #tpu.dot_dimension_numbers<[1], [0], [0], [1], [0, 0, 1, 1], [], []>} : vector<16x32xf32>, vector<32x10xf32>, vector<16x10xf32> -> vector<16x10xf32>
    %cst_33 = arith.constant 0.176776692 : f32
    %66 = vector.broadcast %cst_33 : f32 to vector<16x10xf32>
    %67 = arith.mulf %65, %66 : vector<16x10xf32>
    %cst_34 = arith.constant dense<0xFF800000> : vector<16xf32>
    %68 = vector.multi_reduction <maximumf>, %67, %cst_34 [1] : vector<16x10xf32> to vector<16xf32>
    %69 = vector.shape_cast %68 : vector<16xf32> to vector<16x1xf32>
    %70 = vector.broadcast %69 : vector<16x1xf32> to vector<16x10xf32>
    %71 = arith.subf %67, %70 : vector<16x10xf32>
    %72 = math.exp %71 : vector<16x10xf32>
    %cst_35 = arith.constant dense<0.000000e+00> : vector<16xf32>
    %73 = vector.multi_reduction <add>, %72, %cst_35 [1] : vector<16x10xf32> to vector<16xf32>
    %74 = vector.shape_cast %73 : vector<16xf32> to vector<16x1xf32>
    %75 = tpu.reciprocal %74 {approx = true} : vector<16x1xf32> -> vector<16x1xf32>
    %76 = vector.broadcast %75 : vector<16x1xf32> to vector<16x10xf32>
    %77 = arith.mulf %72, %76 : vector<16x10xf32>
    %cst_36 = arith.constant dense<0.000000e+00> : vector<16x32xf32>
    %78 = tpu.matmul %77, %63, %cst_36 {dimension_numbers = #tpu.dot_dimension_numbers<[1], [0], [0], [1], [0, 0, 1, 1], [], []>} : vector<16x10xf32>, vector<10x32xf32>, vector<16x32xf32> -> vector<16x32xf32>
    %c0_37 = arith.constant 0 : index
    %c0_38 = arith.constant 0 : index
    %79 = vector.load %arg11[%c0_37, %c0_38] : memref<32x32xf32, #tpu.memory_space<vmem>>, vector<32x32xf32>
    %cst_39 = arith.constant dense<0.000000e+00> : vector<16x32xf32>
    %80 = tpu.matmul %78, %79, %cst_39 {dimension_numbers = #tpu.dot_dimension_numbers<[1], [0], [0], [1], [0, 0, 1, 1], [], []>} : vector<16x32xf32>, vector<32x32xf32>, vector<16x32xf32> -> vector<16x32xf32>
    %c0_40 = arith.constant 0 : index
    %c0_41 = arith.constant 0 : index
    %81 = vector.load %arg12[%c0_40, %c0_41] : memref<1x32xf32, #tpu.memory_space<vmem>>, vector<1x32xf32>
    %82 = vector.broadcast %81 : vector<1x32xf32> to vector<16x32xf32>
    %83 = arith.addf %80, %82 : vector<16x32xf32>
    %84 = arith.addf %1, %83 : vector<16x32xf32>
    %c0_42 = arith.constant 0 : index
    %c0_43 = arith.constant 0 : index
    %c0_44 = arith.constant 0 : index
    %85 = vector.load %arg13[%c0_42, %c0_43, %c0_44] : memref<1x16x32xf32, #tpu.memory_space<vmem>>, vector<1x16x32xf32>
    %86 = vector.shape_cast %85 : vector<1x16x32xf32> to vector<16x32xf32>
    %87 = vector.shape_cast %84 : vector<16x32xf32> to vector<1x16x32xf32>
    tpu.vector_store %arg13[%c0_42, %c0_43, %c0_44], %87 {strides = array<i32>} : memref<1x16x32xf32, #tpu.memory_space<vmem>>, vector<1x16x32xf32>,
    return
  }
  func.func @transform_0(%arg0: i32) -> (i32, i32, i32) {
    %c0_i32 = arith.constant 0 : i32
    %c0_i32_0 = arith.constant 0 : i32
    %c0_i32_1 = arith.constant 0 : i32
    return %arg0, %c0_i32, %c0_i32_0 : i32, i32, i32
  }
  func.func @transform_1(%arg0: i32) -> (i32, i32, i32) {
    %c0_i32 = arith.constant 0 : i32
    %c0_i32_0 = arith.constant 0 : i32
    %c0_i32_1 = arith.constant 0 : i32
    return %arg0, %c0_i32, %c0_i32_0 : i32, i32, i32
  }
  func.func @transform_2(%arg0: i32) -> (i32, i32) {
    %c0_i32 = arith.constant 0 : i32
    %c0_i32_0 = arith.constant 0 : i32
    %c0_i32_1 = arith.constant 0 : i32
    return %c0_i32, %c0_i32_0 : i32, i32
  }
  func.func @transform_3(%arg0: i32) -> (i32, i32) {
    %c0_i32 = arith.constant 0 : i32
    %c0_i32_0 = arith.constant 0 : i32
    %c0_i32_1 = arith.constant 0 : i32
    return %c0_i32, %c0_i32_0 : i32, i32
  }
  func.func @transform_4(%arg0: i32) -> (i32, i32) {
    %c0_i32 = arith.constant 0 : i32
    %c0_i32_0 = arith.constant 0 : i32
    %c0_i32_1 = arith.constant 0 : i32
    return %c0_i32, %c0_i32_0 : i32, i32
  }
  func.func @transform_5(%arg0: i32) -> (i32, i32) {
    %c0_i32 = arith.constant 0 : i32
    %c0_i32_0 = arith.constant 0 : i32
    %c0_i32_1 = arith.constant 0 : i32
    return %c0_i32, %c0_i32_0 : i32, i32
  }
  func.func @transform_6(%arg0: i32) -> (i32, i32) {
    %c0_i32 = arith.constant 0 : i32
    %c0_i32_0 = arith.constant 0 : i32
    %c0_i32_1 = arith.constant 0 : i32
    return %c0_i32, %c0_i32_0 : i32, i32
  }
  func.func @transform_7(%arg0: i32) -> (i32, i32) {
    %c0_i32 = arith.constant 0 : i32
    %c0_i32_0 = arith.constant 0 : i32
    %c0_i32_1 = arith.constant 0 : i32
    return %c0_i32, %c0_i32_0 : i32, i32
  }
  func.func @transform_8(%arg0: i32) -> (i32, i32) {
    %c0_i32 = arith.constant 0 : i32
    %c0_i32_0 = arith.constant 0 : i32
    %c0_i32_1 = arith.constant 0 : i32
    return %c0_i32, %c0_i32_0 : i32, i32
  }
  func.func @transform_9(%arg0: i32) -> (i32, i32) {
    %c0_i32 = arith.constant 0 : i32
    %c0_i32_0 = arith.constant 0 : i32
    %c0_i32_1 = arith.constant 0 : i32
    return %c0_i32, %c0_i32_0 : i32, i32
  }
  func.func @transform_10(%arg0: i32) -> (i32, i32) {
    %c0_i32 = arith.constant 0 : i32
    %c0_i32_0 = arith.constant 0 : i32
    %c0_i32_1 = arith.constant 0 : i32
    return %c0_i32, %c0_i32_0 : i32, i32
  }
  func.func @transform_11(%arg0: i32) -> (i32, i32) {
    %c0_i32 = arith.constant 0 : i32
    %c0_i32_0 = arith.constant 0 : i32
    %c0_i32_1 = arith.constant 0 : i32
    return %c0_i32, %c0_i32_0 : i32, i32
  }
  func.func @transform_12(%arg0: i32) -> (i32, i32, i32) {
    %c0_i32 = arith.constant 0 : i32
    %c0_i32_0 = arith.constant 0 : i32
    %c0_i32_1 = arith.constant 0 : i32
    return %arg0, %c0_i32, %c0_i32_0 : i32, i32, i32
  }
}

module attributes {stable_mosaic.version = 11 : i64} {
  func.func @_ffn_block_kernel(%arg0: i32, %arg1: memref<1x16x32xf32, #tpu.memory_space<vmem>>, %arg2: memref<1x32xf32, #tpu.memory_space<vmem>>, %arg3: memref<1x32xf32, #tpu.memory_space<vmem>>, %arg4: memref<32x128xf32, #tpu.memory_space<vmem>>, %arg5: memref<1x128xf32, #tpu.memory_space<vmem>>, %arg6: memref<128x32xf32, #tpu.memory_space<vmem>>, %arg7: memref<1x32xf32, #tpu.memory_space<vmem>>, %arg8: memref<1x16x32xf32, #tpu.memory_space<vmem>>) attributes {dimension_semantics = [#tpu.dimension_semantics<parallel>], iteration_bounds = array<i64: 2>, scalar_prefetch = 0 : i64, scratch_operands = 0 : i64, tpu.core_type = #tpu.core_type<tc>, window_params = [{transform_indices = @transform_0, window_bounds = array<i64: 1, 16, 32>}, {pipeline_mode = #tpu.pipeline_mode<synchronous>, transform_indices = @transform_1, window_bounds = array<i64: 1, 32>}, {pipeline_mode = #tpu.pipeline_mode<synchronous>, transform_indices = @transform_2, window_bounds = array<i64: 1, 32>}, {pipeline_mode = #tpu.pipeline_mode<synchronous>, transform_indices = @transform_3, window_bounds = array<i64: 32, 128>}, {pipeline_mode = #tpu.pipeline_mode<synchronous>, transform_indices = @transform_4, window_bounds = array<i64: 1, 128>}, {pipeline_mode = #tpu.pipeline_mode<synchronous>, transform_indices = @transform_5, window_bounds = array<i64: 128, 32>}, {pipeline_mode = #tpu.pipeline_mode<synchronous>, transform_indices = @transform_6, window_bounds = array<i64: 1, 32>}, {transform_indices = @transform_7, window_bounds = array<i64: 1, 16, 32>}]} {
    %c0 = arith.constant 0 : index
    %c0_0 = arith.constant 0 : index
    %c0_1 = arith.constant 0 : index
    %0 = vector.load %arg1[%c0, %c0_0, %c0_1] : memref<1x16x32xf32, #tpu.memory_space<vmem>>, vector<1x16x32xf32>
    %1 = vector.shape_cast %0 : vector<1x16x32xf32> to vector<16x32xf32>
    %c0_2 = arith.constant 0 : index
    %c0_3 = arith.constant 0 : index
    %2 = vector.load %arg2[%c0_2, %c0_3] : memref<1x32xf32, #tpu.memory_space<vmem>>, vector<1x32xf32>
    %c0_4 = arith.constant 0 : index
    %c0_5 = arith.constant 0 : index
    %3 = vector.load %arg3[%c0_4, %c0_5] : memref<1x32xf32, #tpu.memory_space<vmem>>, vector<1x32xf32>
    %cst = arith.constant dense<0.000000e+00> : vector<16xf32>
    %4 = vector.multi_reduction <add>, %1, %cst [1] : vector<16x32xf32> to vector<16xf32>
    %5 = vector.shape_cast %4 : vector<16xf32> to vector<16x1xf32>
    %cst_6 = arith.constant 3.200000e+01 : f32
    %6 = vector.broadcast %cst_6 : f32 to vector<16x1xf32>
    %7 = arith.divf %5, %6 : vector<16x1xf32>
    %8 = vector.broadcast %7 : vector<16x1xf32> to vector<16x32xf32>
    %9 = arith.subf %1, %8 : vector<16x32xf32>
    %10 = arith.mulf %9, %9 : vector<16x32xf32>
    %cst_7 = arith.constant dense<0.000000e+00> : vector<16xf32>
    %11 = vector.multi_reduction <add>, %10, %cst_7 [1] : vector<16x32xf32> to vector<16xf32>
    %12 = vector.shape_cast %11 : vector<16xf32> to vector<16x1xf32>
    %cst_8 = arith.constant 3.200000e+01 : f32
    %13 = vector.broadcast %cst_8 : f32 to vector<16x1xf32>
    %14 = arith.divf %12, %13 : vector<16x1xf32>
    %cst_9 = arith.constant 9.99999974E-6 : f32
    %15 = vector.broadcast %cst_9 : f32 to vector<16x1xf32>
    %16 = arith.addf %14, %15 : vector<16x1xf32>
    %17 = math.rsqrt %16 : vector<16x1xf32>
    %18 = vector.broadcast %7 : vector<16x1xf32> to vector<16x32xf32>
    %19 = arith.subf %1, %18 : vector<16x32xf32>
    %20 = vector.broadcast %17 : vector<16x1xf32> to vector<16x32xf32>
    %21 = arith.mulf %19, %20 : vector<16x32xf32>
    %22 = vector.broadcast %2 : vector<1x32xf32> to vector<16x32xf32>
    %23 = arith.mulf %21, %22 : vector<16x32xf32>
    %24 = vector.broadcast %3 : vector<1x32xf32> to vector<16x32xf32>
    %25 = arith.addf %23, %24 : vector<16x32xf32>
    %c0_10 = arith.constant 0 : index
    %c0_11 = arith.constant 0 : index
    %26 = vector.load %arg4[%c0_10, %c0_11] : memref<32x128xf32, #tpu.memory_space<vmem>>, vector<32x128xf32>
    %cst_12 = arith.constant dense<0.000000e+00> : vector<16x128xf32>
    %27 = tpu.matmul %25, %26, %cst_12 {dimension_numbers = #tpu.dot_dimension_numbers<[1], [0], [0], [1], [0, 0, 1, 1], [], []>} : vector<16x32xf32>, vector<32x128xf32>, vector<16x128xf32> -> vector<16x128xf32>
    %c0_13 = arith.constant 0 : index
    %c0_14 = arith.constant 0 : index
    %28 = vector.load %arg5[%c0_13, %c0_14] : memref<1x128xf32, #tpu.memory_space<vmem>>, vector<1x128xf32>
    %29 = vector.broadcast %28 : vector<1x128xf32> to vector<16x128xf32>
    %30 = arith.addf %27, %29 : vector<16x128xf32>
    %31 = arith.mulf %30, %30 : vector<16x128xf32>
    %32 = arith.mulf %30, %31 : vector<16x128xf32>
    %cst_15 = arith.constant 4.471500e-02 : f32
    %33 = vector.broadcast %cst_15 : f32 to vector<16x128xf32>
    %34 = arith.mulf %33, %32 : vector<16x128xf32>
    %35 = arith.addf %30, %34 : vector<16x128xf32>
    %cst_16 = arith.constant 0.797884583 : f32
    %36 = vector.broadcast %cst_16 : f32 to vector<16x128xf32>
    %37 = arith.mulf %36, %35 : vector<16x128xf32>
    %38 = math.tanh %37 : vector<16x128xf32>
    %cst_17 = arith.constant 1.000000e+00 : f32
    %39 = vector.broadcast %cst_17 : f32 to vector<16x128xf32>
    %40 = arith.addf %39, %38 : vector<16x128xf32>
    %cst_18 = arith.constant 5.000000e-01 : f32
    %41 = vector.broadcast %cst_18 : f32 to vector<16x128xf32>
    %42 = arith.mulf %41, %40 : vector<16x128xf32>
    %43 = arith.mulf %30, %42 : vector<16x128xf32>
    %c0_19 = arith.constant 0 : index
    %c0_20 = arith.constant 0 : index
    %44 = vector.load %arg6[%c0_19, %c0_20] : memref<128x32xf32, #tpu.memory_space<vmem>>, vector<128x32xf32>
    %cst_21 = arith.constant dense<0.000000e+00> : vector<16x32xf32>
    %45 = tpu.matmul %43, %44, %cst_21 {dimension_numbers = #tpu.dot_dimension_numbers<[1], [0], [0], [1], [0, 0, 1, 1], [], []>} : vector<16x128xf32>, vector<128x32xf32>, vector<16x32xf32> -> vector<16x32xf32>
    %c0_22 = arith.constant 0 : index
    %c0_23 = arith.constant 0 : index
    %46 = vector.load %arg7[%c0_22, %c0_23] : memref<1x32xf32, #tpu.memory_space<vmem>>, vector<1x32xf32>
    %47 = vector.broadcast %46 : vector<1x32xf32> to vector<16x32xf32>
    %48 = arith.addf %45, %47 : vector<16x32xf32>
    %49 = arith.addf %1, %48 : vector<16x32xf32>
    %c0_24 = arith.constant 0 : index
    %c0_25 = arith.constant 0 : index
    %c0_26 = arith.constant 0 : index
    %50 = vector.load %arg8[%c0_24, %c0_25, %c0_26] : memref<1x16x32xf32, #tpu.memory_space<vmem>>, vector<1x16x32xf32>
    %51 = vector.shape_cast %50 : vector<1x16x32xf32> to vector<16x32xf32>
    %52 = vector.shape_cast %49 : vector<16x32xf32> to vector<1x16x32xf32>
    tpu.vector_store %arg8[%c0_24, %c0_25, %c0_26], %52 {strides = array<i32>} : memref<1x16x32xf32, #tpu.memory_space<vmem>>, vector<1x16x32xf32>,
    return
  }
  func.func @transform_0(%arg0: i32) -> (i32, i32, i32) {
    %c0_i32 = arith.constant 0 : i32
    %c0_i32_0 = arith.constant 0 : i32
    %c0_i32_1 = arith.constant 0 : i32
    return %arg0, %c0_i32, %c0_i32_0 : i32, i32, i32
  }
  func.func @transform_1(%arg0: i32) -> (i32, i32) {
    %c0_i32 = arith.constant 0 : i32
    %c0_i32_0 = arith.constant 0 : i32
    %c0_i32_1 = arith.constant 0 : i32
    return %c0_i32, %c0_i32_0 : i32, i32
  }
  func.func @transform_2(%arg0: i32) -> (i32, i32) {
    %c0_i32 = arith.constant 0 : i32
    %c0_i32_0 = arith.constant 0 : i32
    %c0_i32_1 = arith.constant 0 : i32
    return %c0_i32, %c0_i32_0 : i32, i32
  }
  func.func @transform_3(%arg0: i32) -> (i32, i32) {
    %c0_i32 = arith.constant 0 : i32
    %c0_i32_0 = arith.constant 0 : i32
    %c0_i32_1 = arith.constant 0 : i32
    return %c0_i32, %c0_i32_0 : i32, i32
  }
  func.func @transform_4(%arg0: i32) -> (i32, i32) {
    %c0_i32 = arith.constant 0 : i32
    %c0_i32_0 = arith.constant 0 : i32
    %c0_i32_1 = arith.constant 0 : i32
    return %c0_i32, %c0_i32_0 : i32, i32
  }
  func.func @transform_5(%arg0: i32) -> (i32, i32) {
    %c0_i32 = arith.constant 0 : i32
    %c0_i32_0 = arith.constant 0 : i32
    %c0_i32_1 = arith.constant 0 : i32
    return %c0_i32, %c0_i32_0 : i32, i32
  }
  func.func @transform_6(%arg0: i32) -> (i32, i32) {
    %c0_i32 = arith.constant 0 : i32
    %c0_i32_0 = arith.constant 0 : i32
    %c0_i32_1 = arith.constant 0 : i32
    return %c0_i32, %c0_i32_0 : i32, i32
  }
  func.func @transform_7(%arg0: i32) -> (i32, i32, i32) {
    %c0_i32 = arith.constant 0 : i32
    %c0_i32_0 = arith.constant 0 : i32
    %c0_i32_1 = arith.constant 0 : i32
    return %arg0, %c0_i32, %c0_i32_0 : i32, i32, i32
  }
}

module attributes {stable_mosaic.version = 11 : i64} {
  func.func @_linear_kernel(%arg0: memref<32x32xf32, #tpu.memory_space<vmem>>, %arg1: memref<32x48xf32, #tpu.memory_space<vmem>>, %arg2: memref<1x48xf32, #tpu.memory_space<vmem>>, %arg3: memref<32x48xf32, #tpu.memory_space<vmem>>) attributes {dimension_semantics = [], scalar_prefetch = 0 : i64, scratch_operands = 0 : i64, tpu.core_type = #tpu.core_type<tc>} {
    %c0 = arith.constant 0 : index
    %c0_0 = arith.constant 0 : index
    %0 = vector.load %arg0[%c0, %c0_0] : memref<32x32xf32, #tpu.memory_space<vmem>>, vector<32x32xf32>
    %c0_1 = arith.constant 0 : index
    %c0_2 = arith.constant 0 : index
    %1 = vector.load %arg1[%c0_1, %c0_2] : memref<32x48xf32, #tpu.memory_space<vmem>>, vector<32x48xf32>
    %cst = arith.constant dense<0.000000e+00> : vector<32x48xf32>
    %2 = tpu.matmul %0, %1, %cst {dimension_numbers = #tpu.dot_dimension_numbers<[1], [0], [0], [1], [0, 0, 1, 1], [], []>} : vector<32x32xf32>, vector<32x48xf32>, vector<32x48xf32> -> vector<32x48xf32>
    %c0_3 = arith.constant 0 : index
    %c0_4 = arith.constant 0 : index
    %3 = vector.load %arg2[%c0_3, %c0_4] : memref<1x48xf32, #tpu.memory_space<vmem>>, vector<1x48xf32>
    %4 = vector.broadcast %3 : vector<1x48xf32> to vector<32x48xf32>
    %5 = arith.addf %2, %4 : vector<32x48xf32>
    %c0_5 = arith.constant 0 : index
    %c0_6 = arith.constant 0 : index
    %6 = vector.load %arg3[%c0_5, %c0_6] : memref<32x48xf32, #tpu.memory_space<vmem>>, vector<32x48xf32>
    tpu.vector_store %arg3[%c0_5, %c0_6], %5 {strides = array<i32>} : memref<32x48xf32, #tpu.memory_space<vmem>>, vector<32x48xf32>,
    return
  }
}

</mosaic_0001>

<bundles_post_ra>
// kernel: rin_forward.15
= control target key start
LH: loop header
LB: loop body
LE: loop exit
PB: predicated region body
PF: predicated region fallthrough
CT: control target
= control target key end

     0   :  { %s437_s15 = smov 0   ;;  %s481_s0 = inlined_call_operand.vmem [shape: f32[2,16,48], index: 0, kind: input, shape index: {}]   ;;  %s482_s1 = inlined_call_operand.vmem [shape: f32[48,32], index: 1, kind: input, shape index: {}]   ;;  %s483_s2 = inlined_call_operand.vmem [shape: f32[1,32], index: 2, kind: input, shape index: {}]   ;;  %s484_s3 = inlined_call_operand.vmem [shape: f32[1,16,32], index: 3, kind: input, shape index: {}]   ;;  %s485_s4 = inlined_call_operand.vmem [shape: f32[2,16,32], index: 4, kind: output, shape index: {}]  }
   0x1 LB: > { %s357_s16 = sadd.s32 4294967295, %s410_s15   ;;  %p361_p0 = scmp.ge.s32.totalorder %s410_s15, 1  ;;  %s410_s15 = sphi %s437_s15, %s14_s15  }
   0x2   : > { %p162_p1 = scmp.lt.s32.totalorder %s410_s15, 3 }
   0x4   : > { %p163_p2 = pnand %p361_p0, %p162_p1 }
   0x5   : > { %p188_p3 = scmp.lt.s32.totalorder (!%p163_p2), %s357_s16, 1 }
   0x6   : > { %166 = sbr.rel (%p163_p2) target bundleno = 224 (0xe0), region = 36 }
   0xb   : > { %v205_v0 = vld [vmem:[%s482_s1 + $0x28] sm:$0xff]  ;;  %v204_v1 = vld [vmem:[%s482_s1 + $0x20] sm:$0xff]  ;;  %v203_v2 = vld [vmem:[%s482_s1 + $0x18] sm:$0xff]  ;;  %s487_s16 = smov (!%p188_p3, %s357_s16), 1  ;;  %vm213_vm0 = vcmask 392192   ;;  %vm299_vm1 = vcmask 261120  }
   0xc   : > { %381 = vmatprep.subr.mxu0 %v205_v0  ;;  %v202_v3 = vld [vmem:[%s482_s1 + $0x10] sm:$0xff]  ;;  %s371_s25 = sshll.u32 %s487_s16, 4  ;;  %v201_v4 = vld [vmem:[%s482_s1 + $0x8] sm:$0xff]  ;;  %v200_v6 = vld [vmem:[%s482_s1] sm:$0xff] }
   0xd   : > { %382 = vmatpush3.msra.mxu0 %v205_v0  ;;  %s192_s28 = scalar_lea.vmem %s481_s0, %s371_s25  ;;  %v366_v8 = vld [vmem:[%s483_s2] ss:$0 sm:$0xff]  ;;  %v296_v10 = vld [vmem:[%s484_s3 + $0x8] sm:$0xff]  ;;  %s197_s13 = scalar_lea.vmem %s485_s4, %s371_s25 }
   0xe   : > { %383 = vmatprep.subr.mxu0 %v204_v1  ;;  %v198_v5 = vld [vmem:[%s192_s28] sm:$0xff]  ;;  %v199_v7 = vld [vmem:[%s192_s28 + $0x8] sm:$0xff] }
   0xf   : > { %384 = vmatpush3.msra.mxu0 %v204_v1  ;;  %393 = vmatprep.mubr.msk.f32.mxu0 %vm213_vm0, %v198_v5  ;;  %v295_v13 = vld [vmem:[%s484_s3] sm:$0xff] }
  0x10   : > { %385 = vmatprep.subr.mxu0 %v203_v2 }
  0x11   : > { %386 = vmatpush3.msra.mxu0 %v203_v2 }
  0x12   : > { %387 = vmatprep.subr.mxu0 %v202_v3 }
  0x13   : > { %388 = vmatpush3.msra.mxu0 %v202_v3 }
  0x14   : > { %389 = vmatprep.subr.mxu0 %v201_v4 }
  0x15   : > { %390 = vmatpush3.msra.mxu0 %v201_v4 }
  0x16   : > { %391 = vmatprep.subr.mxu0 %v200_v6 }
  0x17   : > { %392 = vmatpush3.msra.mxu0 %v200_v6 }
  0x18   : > { %394 = vmatmul.mubr.msk.f32.vlgmr.msra.gmra.mxu0 %vm213_vm0, %v199_v7 }
  0xd8   : > { %v395_v9 = vpop.f32.mrf.mxu0 }
  0xd9   : > { %v292_v11 = vadd.f32 %v395_v9, %v366_v8 }
  0xda   : > { %v286_v12 = vpop.f32.mrf.mxu0 }
  0xdb   : > { %v298_v14 = vadd.f32 %v296_v10, %v292_v11  ;;  %v287_v15 = vadd.f32 %v366_v8, %v286_v12 }
  0xdd   : > { %301 = vst.msk [vmem:[%s197_s13 + $0x8] sm:$0xff] %vm299_vm1, %v298_v14  ;;  %v297_v16 = vadd.f32 %v295_v13, %v287_v15 }
  0xdf   : > { %300 = vst.msk [vmem:[%s197_s13] sm:$0xff] %vm299_vm1, %v297_v16 }
  0xe0 PF: > { %s14_s15 = sadd.s32 1, %s410_s15  }
  0xe1   : > { %p11_p4 = scmp.ge.s32.totalorder %s14_s15, 4  }
  0xe3   :  { %13 = sbr.rel (!%p11_p4) target bundleno = 1 (0x1), region = 66 }

// kernel: rin_forward.16
= control target key start
LH: loop header
LB: loop body
LE: loop exit
PB: predicated region body
PF: predicated region fallthrough
CT: control target
= control target key end

     0   :  { %vm33_vm0 = vcmask 1040384   ;;  %vm29_vm1 = vcmask 7168   ;;  %v239_v0 = vmov 0.0   ;;  %vm240_vm2 = vmmov 0   ;;  %s298_s1 = inlined_call_operand.vmem [shape: f32[1,32], index: 1, kind: input, shape index: {}]   ;;  %s299_s0 = inlined_call_operand.vmem [shape: f32[2,1], index: 0, kind: input, shape index: {}]   ;;  %s300_s3 = inlined_call_operand.vmem [shape: f32[32,32], index: 3, kind: input, shape index: {}]   ;;  %s301_s2 = inlined_call_operand.vmem [shape: f32[1,32], index: 2, kind: input, shape index: {}, may-alias: {2,4}]   ;;  %s302_s4 = inlined_call_operand.vmem [shape: f32[1,32], index: 4, kind: input, shape index: {}, may-alias: {2,4}]   ;;  %s303_s5 = inlined_call_operand.vmem [shape: f32[2,32], index: 5, kind: output, shape index: {}]  }
   0x1   :  { %219 = vmatprep.subr.mxu0 %v239_v0  ;;  %v21_v1 = vld [vmem:[%s298_s1] sm:$0x1]  ;;  %221 = vmatprep.mubr.msk.f32.mxu0 %vm240_vm2, %v239_v0  ;;  %v119_v3 = vld [vmem:[%s300_s3 + $0x18] sm:$0xff]  ;;  %v118_v4 = vld [vmem:[%s300_s3 + $0x10] sm:$0xff]  ;;  %vm127_vm3 = vcmask 261120   ;;  %vm201_vm4 = vcmask 254976  }
   0x2   :  { %v20_v2 = vld [vmem:[%s299_s0] sm:$0x3]  ;;  %220 = vmatpush3.msk.msra.mxu0 %vm33_vm0, %v21_v1  ;;  %224 = vmatprep.subr.mxu1 %v239_v0  ;;  %v117_v5 = vld [vmem:[%s300_s3 + $0x8] sm:$0xff] }
   0x3   :  { %222 = vmatmul.mubr.msk.f32.vlgmr.msra.gmra.mxu0 %vm29_vm1, %v20_v2  ;;  %232 = vmatprep.mubr.msk.f32.mxu1 %vm240_vm2, %v239_v0  ;;  %v116_v6 = vld [vmem:[%s300_s3] sm:$0xff] }
   0x4   :  { %225 = vmatpush3.msra.mxu1 %v119_v3  ;;  %v207_v7 = vld [vmem:[%s301_s2] ss:$0 sm:$0xff] }
   0x5   :  { %226 = vmatprep.subr.mxu1 %v239_v0  ;;  %v210_v20 = vld [vmem:[%s302_s4] ss:$0 sm:$0xff] }
   0x6   :  { %227 = vmatpush3.msra.mxu1 %v118_v4 }
   0x7   :  { %228 = vmatprep.subr.mxu1 %v239_v0 }
   0x8   :  { %229 = vmatpush3.msra.mxu1 %v117_v5 }
   0x9   :  { %230 = vmatprep.subr.mxu1 %v239_v0 }
   0xa   :  { %231 = vmatpush3.msra.mxu1 %v116_v6 }
  0xc3   :  { %v103_v8 = vpop.f32.mrf.mxu0 }
  0xc4   :  { %v104_v9 = vadd.f32 %v207_v7, %v103_v8 }
  0xc5   :  { %v223_v10 = vpop.f32.mrf.mxu0 }
  0xc6   :  { %v107_v11 = vmul.f32 %v104_v9, %v104_v9 }
  0xc8   :  { %v108_v12 = vmul.f32 %v107_v11, %v104_v9 }
  0xca   :  { %v109_v13 = vmul.f32 0.044715, %v108_v12 }
  0xcc   :  { %v110_v14 = vadd.f32 %v109_v13, %v104_v9 }
  0xce   :  { %v111_v15 = vmul.f32 0.7978846, %v110_v14 }
  0xd0   :  { %237 = vtanh.f32 %v111_v15 }
  0xdd   :  { %v238_v16 = vpop.eup %237 }
  0xde   :  { %v113_v17 = vadd.f32 1.0, %v238_v16 }
  0xe0   :  { %v114_v18 = vmul.f32 0.5, %v113_v17 }
  0xe2   :  { %v115_v19 = vmul.f32 %v114_v18, %v104_v9 }
  0xe4   :  { %233 = vmatmul.mubr.msk.f32.vlgmr.msra.gmra.mxu1 %vm127_vm3, %v115_v19 }
 0x1a4   :  { %v197_v21 = vpop.f32.mrf.mxu1 }
 0x1a5   :  { %v198_v22 = vadd.f32 %v210_v20, %v197_v21 }
 0x1a6   :  { %v234_v23 = vpop.f32.mrf.mxu1 }
 0x1a7   :  { %202 = vst.msk [vmem:[%s303_s5] sm:$0x3] %vm201_vm4, %v198_v22 }

// kernel: rin_forward.18
= control target key start
LH: loop header
LB: loop body
LE: loop exit
PB: predicated region body
PF: predicated region fallthrough
CT: control target
= control target key end

     0   :  { %s748_s24 = smov 0   ;;  %s862_s0 = inlined_call_operand.vmem [shape: f32[2,10,32], index: 0, kind: input, shape index: {}]   ;;  %s863_s1 = inlined_call_operand.vmem [shape: f32[1,32], index: 1, kind: input, shape index: {}]   ;;  %s864_s2 = inlined_call_operand.vmem [shape: f32[1,32], index: 2, kind: input, shape index: {}, may-alias: {2,6}]   ;;  %s865_s3 = inlined_call_operand.vmem [shape: f32[32,128], index: 3, kind: input, shape index: {}]   ;;  %s866_s4 = inlined_call_operand.vmem [shape: f32[1,128], index: 4, kind: input, shape index: {}]   ;;  %s867_s5 = inlined_call_operand.vmem [shape: f32[128,32], index: 5, kind: input, shape index: {}]   ;;  %s868_s6 = inlined_call_operand.vmem [shape: f32[1,32], index: 6, kind: input, shape index: {}, may-alias: {2,6}]   ;;  %s869_s7 = inlined_call_operand.vmem [shape: f32[2,10,32], index: 7, kind: output, shape index: {}]  }
   0x1 LB: > { %s595_s25 = sadd.s32 4294967295, %s706_s24   ;;  %p599_p0 = scmp.ge.s32.totalorder %s706_s24, 1  ;;  %s706_s24 = sphi %s748_s24, %s17_s24  }
   0x2   : > { %p237_p1 = scmp.lt.s32.totalorder %s706_s24, 3 }
   0x4   : > { %p238_p2 = pnand %p599_p0, %p237_p1 }
   0x5   : > { %p269_p3 = scmp.lt.s32.totalorder (!%p238_p2), %s595_s25, 1 }
   0x6   : > { %241 = sbr.rel (%p238_p2) target bundleno = 755 (0x2f3), region = 48 }
   0xb   : > { %s871_s25 = smov (!%p269_p3, %s595_s25), 1  ;;  %vm283_vm0 = vcmask 261120   ;;  %vm287_vm1 = vcmask 254976   ;;  %v331_v14 = vld [vmem:[%s865_s3 + $0x18] sm:$0xff]  ;;  %v330_v15 = vld [vmem:[%s865_s3 + $0x10] sm:$0xff]  ;;  %v329_v16 = vld [vmem:[%s865_s3 + $0x8] sm:$0xff] }
   0xc   : > { %s612_s26 = sshll.u32 %s871_s25, 4  ;;  %638 = vmatprep.subr.mxu0 %v331_v14  ;;  %v328_v17 = vld [vmem:[%s865_s3] sm:$0xff]  ;;  %v453_v34 = vld [vmem:[%s867_s5 + $0x78] sm:$0xff]  ;;  %v452_v35 = vld [vmem:[%s867_s5 + $0x70] sm:$0xff] }
   0xd   : > { %s273_s29 = scalar_lea.vmem %s862_s0, %s612_s26  ;;  %639 = vmatpush3.msra.mxu0 %v331_v14  ;;  %v604_v25 = vld [vmem:[%s863_s1] ss:$0 sm:$0xff]  ;;  %649 = vmatprep.subr.mxu1 %v453_v34  ;;  %v451_v36 = vld [vmem:[%s867_s5 + $0x68] sm:$0xff]  ;;  %v449_v38 = vld [vmem:[%s867_s5 + $0x58] sm:$0xff]  ;;  %s278_s17 = scalar_lea.vmem %s869_s7, %s612_s26 }
   0xe   : > { %v764_v0 = vld [vmem:[%s273_s29] sm:$0xff]  ;;  %v766_v1 = vld [vmem:[%s273_s29 + $0x8] sm:$0x3]  ;;  %640 = vmatprep.subr.mxu0 %v330_v15  ;;  %650 = vmatpush3.msra.mxu1 %v453_v34  ;;  %v448_v39 = vld [vmem:[%s867_s5 + $0x50] sm:$0xff] }
   0xf   : > { %v284_v2 = vsel %vm283_vm0, %v764_v0, 0.0  ;;  %v288_v3 = vsel %vm287_vm1, %v766_v1, 0.0  ;;  %641 = vmatpush3.msra.mxu0 %v330_v15  ;;  %v605_v27 = vld [vmem:[%s864_s2] ss:$0 sm:$0xff]  ;;  %651 = vmatprep.subr.mxu1 %v452_v35  ;;  %v447_v40 = vld [vmem:[%s867_s5 + $0x48] sm:$0xff]  ;;  %v445_v42 = vld [vmem:[%s867_s5 + $0x38] sm:$0xff] }
  0x10   : > { %285 = vadd.xlane.f32.xlu0 %v284_v2  ;;  %642 = vmatprep.subr.mxu0 %v329_v16  ;;  %v450_v37 = vld [vmem:[%s867_s5 + $0x60] sm:$0xff]  ;;  %v444_v43 = vld [vmem:[%s867_s5 + $0x30] sm:$0xff]  ;;  %v443_v44 = vld [vmem:[%s867_s5 + $0x28] sm:$0xff] }
  0x11   : > { %643 = vmatpush3.msra.mxu0 %v329_v16  ;;  %652 = vmatpush3.msra.mxu1 %v452_v35  ;;  %v446_v41 = vld [vmem:[%s867_s5 + $0x40] sm:$0xff]  ;;  %v441_v46 = vld [vmem:[%s867_s5 + $0x18] sm:$0xff]  ;;  %v440_v47 = vld [vmem:[%s867_s5 + $0x10] sm:$0xff] }
  0x12   : > { %644 = vmatprep.subr.mxu0 %v328_v17  ;;  %653 = vmatprep.subr.mxu1 %v451_v36  ;;  %v442_v45 = vld [vmem:[%s867_s5 + $0x20] sm:$0xff]  ;;  %v439_v48 = vld [vmem:[%s867_s5 + $0x8] sm:$0xff] }
  0x13   : > { %645 = vmatpush3.msra.mxu0 %v328_v17  ;;  %654 = vmatpush3.msra.mxu1 %v451_v36  ;;  %v438_v49 = vld [vmem:[%s867_s5] sm:$0xff] }
  0x14   : > { %289 = vadd.xlane.f32.xlu0 %v288_v3  ;;  %655 = vmatprep.subr.mxu1 %v450_v37  ;;  %v606_v50 = vld [vmem:[%s866_s4] ss:$0 sm:$0xff] }
  0x15   : > { %656 = vmatpush3.msra.mxu1 %v450_v37 }
  0x16   : > { %657 = vmatprep.subr.mxu1 %v449_v38 }
  0x17   : > { %658 = vmatpush3.msra.mxu1 %v449_v38 }
  0x18   : > { %659 = vmatprep.subr.mxu1 %v448_v39 }
  0x19   : > { %660 = vmatpush3.msra.mxu1 %v448_v39 }
  0x1a   : > { %661 = vmatprep.subr.mxu1 %v447_v40 }
  0x1b   : > { %662 = vmatpush3.msra.mxu1 %v447_v40 }
  0x1c   : > { %663 = vmatprep.subr.mxu1 %v446_v41 }
  0x1d   : > { %664 = vmatpush3.msra.mxu1 %v446_v41 }
  0x1e   : > { %665 = vmatprep.subr.mxu1 %v445_v42 }
  0x1f   : > { %666 = vmatpush3.msra.mxu1 %v445_v42 }
  0x20   : > { %667 = vmatprep.subr.mxu1 %v444_v43 }
  0x21   : > { %668 = vmatpush3.msra.mxu1 %v444_v43 }
  0x22   : > { %669 = vmatprep.subr.mxu1 %v443_v44 }
  0x23   : > { %670 = vmatpush3.msra.mxu1 %v443_v44 }
  0x24   : > { %671 = vmatprep.subr.mxu1 %v442_v45 }
  0x25   : > { %672 = vmatpush3.msra.mxu1 %v442_v45 }
  0x26   : > { %673 = vmatprep.subr.mxu1 %v441_v46 }
  0x27   : > { %674 = vmatpush3.msra.mxu1 %v441_v46 }
  0x28   : > { %675 = vmatprep.subr.mxu1 %v440_v47 }
  0x29   : > { %676 = vmatpush3.msra.mxu1 %v440_v47 }
  0x2a   : > { %677 = vmatprep.subr.mxu1 %v439_v48 }
  0x2b   : > { %678 = vmatpush3.msra.mxu1 %v439_v48 }
  0x2c   : > { %679 = vmatprep.subr.mxu1 %v438_v49 }
  0x2d   : > { %680 = vmatpush3.msra.mxu1 %v438_v49 }
  0x99   : > { %v286_v4 = vpop.xlane.xlu0 %285 }
  0x9a   : > { %v292_v5 = vmul.f32 0.03125, %v286_v4 }
  0x9c   : > { %v294_v6 = vsub.f32 %v764_v0, %v292_v5 }
  0x9d   : > { %v290_v7 = vpop.xlane.xlu0 %289 }
  0x9e   : > { %v293_v8 = vmul.f32 0.03125, %v290_v7  ;;  %v296_v9 = vmul.f32 %v294_v6, %v294_v6 }
  0xa0   : > { %v295_v10 = vsub.f32 %v766_v1, %v293_v8  ;;  %v298_v11 = vsel %vm283_vm0, %v296_v9, 0.0 }
  0xa1   : > { %299 = vadd.xlane.f32.xlu1 %v298_v11  ;;  %v609_v11 = vld [vmem:[%s868_s6] ss:$0 sm:$0xff] }
  0xa2   : > { %v297_v12 = vmul.f32 %v295_v10, %v295_v10 }
  0xa4   : > { %v301_v13 = vsel %vm287_vm1, %v297_v12, 0.0 }
  0xa5   : > { %302 = vadd.xlane.f32.xlu1 %v301_v13 }
 0x12a   : > { %v300_v18 = vpop.xlane.xlu1 %299 }
 0x12b   : > { %v304_v19 = vmul.f32 0.03125, %v300_v18 }
 0x12d   : > { %v306_v20 = vadd.f32 1e-05, %v304_v19 }
 0x12e   : > { %v303_v21 = vpop.xlane.xlu1 %302 }
 0x12f   : > { %692 = vrsqrt.f32 %v306_v20  ;;  %v305_v22 = vmul.f32 0.03125, %v303_v21 }
 0x131   : > { %v307_v23 = vadd.f32 1e-05, %v305_v22 }
 0x133   : > { %694 = vrsqrt.f32 %v307_v23 }
 0x13c   : > { %v693_v24 = vpop.eup %692 }
 0x13d   : > { %v310_v26 = vmul.f32 %v693_v24, %v294_v6 }
 0x13f   : > { %v318_v28 = vmul.f32 %v604_v25, %v310_v26 }
 0x140   : > { %v695_v29 = vpop.eup %694 }
 0x141   : > { %v311_v30 = vmul.f32 %v695_v29, %v295_v10  ;;  %v326_v31 = vadd.f32 %v605_v27, %v318_v28 }
 0x143   : > { %v319_v32 = vmul.f32 %v604_v25, %v311_v30  ;;  %646 = vmatprep.mubr.msk.f32.mxu0 %vm283_vm0, %v326_v31 }
 0x145   : > { %v327_v33 = vadd.f32 %v605_v27, %v319_v32 }
 0x147   : > { %647 = vmatmul.mubr.msk.f32.vlgmr.msra.gmra.mxu0 %vm283_vm0, %v327_v33 }
 0x207   : > { %v648_v51 = vpop.f32.mrf.mxu0 }
 0x208   : > { %v417_v52 = vadd.f32 %v648_v51, %v606_v50 }
 0x209   : > { %v411_v53 = vpop.f32.mrf.mxu0 }
 0x20a   : > { %v421_v54 = vmul.f32 %v417_v52, %v417_v52  ;;  %v412_v55 = vadd.f32 %v606_v50, %v411_v53 }
 0x20c   : > { %v423_v56 = vmul.f32 %v421_v54, %v417_v52  ;;  %v420_v57 = vmul.f32 %v412_v55, %v412_v55 }
 0x20e   : > { %v425_v58 = vmul.f32 0.044715, %v423_v56  ;;  %v422_v59 = vmul.f32 %v420_v57, %v412_v55 }
 0x210   : > { %v427_v60 = vadd.f32 %v425_v58, %v417_v52  ;;  %v424_v61 = vmul.f32 0.044715, %v422_v59 }
 0x212   : > { %v429_v62 = vmul.f32 0.7978846, %v427_v60  ;;  %v426_v63 = vadd.f32 %v424_v61, %v412_v55 }
 0x214   : > { %696 = vtanh.f32 %v429_v62  ;;  %v428_v2 = vmul.f32 0.7978846, %v426_v63 }
 0x216   : > { %698 = vtanh.f32 %v428_v2 }
 0x221   : > { %v697_v3 = vpop.eup %696 }
 0x222   : > { %v433_v4 = vadd.f32 1.0, %v697_v3 }
 0x223   : > { %v699_v5 = vpop.eup %698 }
 0x224   : > { %v432_v6 = vadd.f32 1.0, %v699_v5  ;;  %v435_v7 = vmul.f32 0.5, %v433_v4 }
 0x226   : > { %v434_v8 = vmul.f32 0.5, %v432_v6  ;;  %v437_v10 = vmul.f32 %v435_v7, %v417_v52 }
 0x228   : > { %v436_v9 = vmul.f32 %v434_v8, %v412_v55 }
 0x22a   : > { %681 = vmatprep.mubr.f32.mxu1 %v436_v9 }
 0x22b   : > { %682 = vmatmul.mubr.f32.vlgmr.msra.gmra.mxu1 %v437_v10 }
 0x2eb   : > { %v683_v12 = vpop.f32.mrf.mxu1 }
 0x2ec   : > { %v533_v13 = vadd.f32 %v683_v12, %v609_v11 }
 0x2ed   : > { %v527_v14 = vpop.f32.mrf.mxu1 }
 0x2ee   : > { %v537_v15 = vadd.f32 %v533_v13, %v766_v1  ;;  %v528_v16 = vadd.f32 %v609_v11, %v527_v14 }
 0x2f0   : > { %539 = vst.msk [vmem:[%s278_s17 + $0x8] sm:$0x3] %vm287_vm1, %v537_v15  ;;  %v536_v17 = vadd.f32 %v528_v16, %v764_v0 }
 0x2f2   : > { %538 = vst.msk [vmem:[%s278_s17] sm:$0xff] %vm283_vm0, %v536_v17 }
 0x2f3 PF: > { %s17_s24 = sadd.s32 1, %s706_s24  }
 0x2f4   : > { %p14_p4 = scmp.ge.s32.totalorder %s17_s24, 4  }
 0x2f6   :  { %16 = sbr.rel (!%p14_p4) target bundleno = 1 (0x1), region = 78 }

// kernel: rin_forward.17
= control target key start
LH: loop header
LB: loop body
LE: loop exit
PB: predicated region body
PF: predicated region fallthrough
CT: control target
= control target key end

     0   :  { %s1283_s21 = smov 0   ;;  %s1413_s0 = inlined_call_operand.vmem [shape: f32[2,10,32], index: 0, kind: input, shape index: {}]   ;;  %s1414_s1 = inlined_call_operand.vmem [shape: f32[2,16,32], index: 1, kind: input, shape index: {}]   ;;  %s1415_s2 = inlined_call_operand.vmem [shape: f32[1,32], index: 2, kind: input, shape index: {}, may-alias: {2,4}]   ;;  %s1416_s3 = inlined_call_operand.vmem [shape: f32[1,32], index: 3, kind: input, shape index: {}, may-alias: {3,5,7,11}]   ;;  %s1417_s4 = inlined_call_operand.vmem [shape: f32[1,32], index: 4, kind: input, shape index: {}, may-alias: {2,4}]   ;;  %s1418_s5 = inlined_call_operand.vmem [shape: f32[1,32], index: 5, kind: input, shape index: {}, may-alias: {3,5,7,11}]   ;;  %s1419_s6 = inlined_call_operand.vmem [shape: f32[32,32], index: 6, kind: input, shape index: {}]   ;;  %s1420_s7 = inlined_call_operand.vmem [shape: f32[1,32], index: 7, kind: input, shape index: {}, may-alias: {3,5,7,11}]   ;;  %s1421_s8 = inlined_call_operand.vmem [shape: f32[32,64], index: 8, kind: input, shape index: {}]   ;;  %s1422_s9 = inlined_call_operand.vmem [shape: f32[1,64], index: 9, kind: input, shape index: {}]   ;;  %s1423_s10 = inlined_call_operand.vmem [shape: f32[32,32], index: 10, kind: input, shape index: {}]   ;;  %s1424_s11 = inlined_call_operand.vmem [shape: f32[1,32], index: 11, kind: input, shape index: {}, may-alias: {3,5,7,11}]   ;;  %s1425_s12 = inlined_call_operand.vmem [shape: f32[2,10,32], index: 12, kind: output, shape index: {}]  }
   0x1 LB: > { %s1076_s22 = sadd.s32 4294967295, %s1215_s21   ;;  %p1080_p0 = scmp.ge.s32.totalorder %s1215_s21, 1  ;;  %s1215_s21 = sphi %s1283_s21, %s22_s21  }
   0x2   : > { %p372_p1 = scmp.lt.s32.totalorder %s1215_s21, 3 }
   0x4   : > { %p373_p2 = pnand %p1080_p0, %p372_p1 }
   0x5   : > { %p419_p3 = scmp.lt.s32.totalorder (!%p373_p2), %s1076_s22, 1 }
   0x6   : > { %376 = sbr.rel (%p373_p2) target bundleno = 1437 (0x59d), region = 68 }
   0xb   : > { %s1427_s22 = smov (!%p419_p3, %s1076_s22), 1  ;;  %vm440_vm0 = vcmask 261120   ;;  %vm444_vm1 = vcmask 254976   ;;  %v624_v28 = vld [vmem:[%s1421_s8 + $0x18] sm:$0xff]  ;;  %v623_v29 = vld [vmem:[%s1421_s8 + $0x10] sm:$0xff]  ;;  %v622_v31 = vld [vmem:[%s1421_s8 + $0x8] sm:$0xff] }
   0xc   : > { %s1291_s23 = sshll.u32 %s1427_s22, 4  ;;  %v532_v30 = vld [vmem:[%s1419_s6 + $0x18] sm:$0xff]  ;;  %1148 = vmatprep.subr.mxu1 %v624_v28  ;;  %v531_v32 = vld [vmem:[%s1419_s6 + $0x10] sm:$0xff]  ;;  %v621_v33 = vld [vmem:[%s1421_s8] sm:$0xff]  ;;  %vm806_vm2 = vcmask 123904   ;;  %vm802_vm3 = vcmask 130048  }
   0xd   : > { %s428_s26 = scalar_lea.vmem %s1414_s1, %s1291_s23  ;;  %s423_s29 = scalar_lea.vmem %s1413_s0, %s1291_s23  ;;  %1137 = vmatprep.subr.mxu0 %v532_v30  ;;  %1149 = vmatpush3.msra.mxu1 %v624_v28  ;;  %v530_v34 = vld [vmem:[%s1419_s6 + $0x8] sm:$0xff]  ;;  %v529_v35 = vld [vmem:[%s1419_s6] sm:$0xff] }
   0xe   : > { %v436_v0 = vld [vmem:[%s428_s26] sm:$0xff]  ;;  %v437_v1 = vld [vmem:[%s428_s26 + $0x8] sm:$0xff]  ;;  %1138 = vmatpush3.msra.mxu0 %v532_v30  ;;  %1150 = vmatprep.subr.mxu1 %v623_v29  ;;  %s1217_s26 = smov 96   ;;  %s433_s22 = scalar_lea.vmem %s1425_s12, %s1291_s23 }
   0xf   : > { %v487_v2 = vsel %vm440_vm0, %v436_v0, 0.0  ;;  %v1302_v3 = vld [vmem:[%s423_s29] sm:$0xff]  ;;  %v1304_v4 = vld [vmem:[%s423_s29 + $0x8] sm:$0x3]  ;;  %v490_v6 = vsel %vm440_vm0, %v437_v1, 0.0  ;;  %1151 = vmatpush3.msra.mxu1 %v623_v29  ;;  %1139 = vmatprep.subr.mxu0 %v531_v32 }
  0x10   : > { %488 = vadd.xlane.f32.xlu0 %v487_v2  ;;  %v441_v5 = vsel %vm440_vm0, %v1302_v3, 0.0  ;;  %v445_v7 = vsel %vm444_vm1, %v1304_v4, 0.0  ;;  %1152 = vmatprep.subr.mxu1 %v622_v31  ;;  %v1089_v49 = vld [vmem:[%s1417_s4] ss:$0 sm:$0xff] }
  0x11   : > { %442 = vadd.xlane.f32.xlu1 %v441_v5  ;;  %1153 = vmatpush3.msra.mxu1 %v622_v31  ;;  %v1090_v51 = vld [vmem:[%s1418_s5] ss:$0 sm:$0xff] }
  0x12   : > { %1154 = vmatprep.subr.mxu1 %v621_v33  ;;  %1140 = vmatpush3.msra.mxu0 %v531_v32  ;;  %v1087_v54 = vld [vmem:[%s1415_s2] ss:$0 sm:$0xff] }
  0x13   : > { %1155 = vmatpush3.msra.mxu1 %v621_v33  ;;  %1141 = vmatprep.subr.mxu0 %v530_v34  ;;  %v1088_v59 = vld [vmem:[%s1416_s3] ss:$0 sm:$0xff] }
  0x14   : > { %491 = vadd.xlane.f32.xlu0 %v490_v6  ;;  %1142 = vmatpush3.msra.mxu0 %v530_v34  ;;  %v1094_v6 = vld [vmem:[%s1422_s9] ss:$0 sm:$0xff] }
  0x15   : > { %446 = vadd.xlane.f32.xlu1 %v445_v7  ;;  %1143 = vmatprep.subr.mxu0 %v529_v35 }
  0x16   : > { %1144 = vmatpush3.msra.mxu0 %v529_v35 }
  0x99   : > { %v489_v8 = vpop.xlane.xlu0 %488 }
  0x9a   : > { %v493_v9 = vmul.f32 0.03125, %v489_v8  ;;  %v443_v10 = vpop.xlane.xlu1 %442 }
  0x9b   : > { %v449_v11 = vmul.f32 0.03125, %v443_v10 }
  0x9c   : > { %v495_v12 = vsub.f32 %v436_v0, %v493_v9 }
  0x9d   : > { %v492_v13 = vpop.xlane.xlu0 %491  ;;  %v1312_v14 = vsub.f32 %v1302_v3, %v449_v11 }
  0x9e   : > { %v494_v15 = vmul.f32 0.03125, %v492_v13  ;;  %v497_v16 = vmul.f32 %v495_v12, %v495_v12  ;;  %v447_v17 = vpop.xlane.xlu1 %446 }
  0x9f   : > { %v450_v18 = vmul.f32 0.03125, %v447_v17  ;;  %v453_v19 = vmul.f32 %v1312_v14, %v1312_v14 }
  0xa0   : > { %v496_v20 = vsub.f32 %v437_v1, %v494_v15  ;;  %v499_v21 = vsel %vm440_vm0, %v497_v16, 0.0 }
  0xa1   : > { %500 = vadd.xlane.f32.xlu0 %v499_v21  ;;  %v1318_v22 = vsub.f32 %v1304_v4, %v450_v18  ;;  %v455_v24 = vsel %vm440_vm0, %v453_v19, 0.0 }
  0xa2   : > { %v498_v23 = vmul.f32 %v496_v20, %v496_v20 }
  0xa3   : > { %v454_v25 = vmul.f32 %v1318_v22, %v1318_v22 }
  0xa4   : > { %v502_v26 = vsel %vm440_vm0, %v498_v23, 0.0 }
  0xa5   : > { %503 = vadd.xlane.f32.xlu1 %v502_v26  ;;  %456 = vadd.xlane.f32.xlu0 %v455_v24  ;;  %v458_v27 = vsel %vm444_vm1, %v454_v25, 0.0 }
  0xa9   : > { %459 = vadd.xlane.f32.xlu1 %v458_v27 }
 0x12a   : > { %v501_v36 = vpop.xlane.xlu0 %500 }
 0x12b   : > { %v505_v37 = vmul.f32 0.03125, %v501_v36  ;;  %v916_v36 = vld [vmem:[%s1423_s10 + $0x18] sm:$0xff] }
 0x12d   : > { %v507_v38 = vadd.f32 1e-05, %v505_v37 }
 0x12e   : > { %v457_v39 = vpop.xlane.xlu0 %456  ;;  %v504_v40 = vpop.xlane.xlu1 %503 }
 0x12f   : > { %1193 = vrsqrt.f32 %v507_v38  ;;  %v461_v41 = vmul.f32 0.03125, %v457_v39  ;;  %v506_v42 = vmul.f32 0.03125, %v504_v40 }
 0x131   : > { %v463_v43 = vadd.f32 1e-05, %v461_v41  ;;  %v508_v44 = vadd.f32 1e-05, %v506_v42  ;;  %v915_v41 = vld [vmem:[%s1423_s10 + $0x10] sm:$0xff]  ;;  %v914_v42 = vld [vmem:[%s1423_s10 + $0x8] sm:$0xff] }
 0x132   : > { %v460_v45 = vpop.xlane.xlu1 %459 }
 0x133   : > { %1195 = vrsqrt.f32 %v463_v43  ;;  %v462_v46 = vmul.f32 0.03125, %v460_v45  ;;  %v913_v43 = vld [vmem:[%s1423_s10] sm:$0xff] }
 0x134   : > { %1197 = vrsqrt.f32 %v508_v44 }
 0x135   : > { %v464_v47 = vadd.f32 1e-05, %v462_v46  ;;  %v1103_v46 = vld [vmem:[%s1424_s11] ss:$0 sm:$0xff] }
 0x137   : > { %1199 = vrsqrt.f32 %v464_v47 }
 0x13c   : > { %v1194_v48 = vpop.eup %1193 }
 0x13d   : > { %v511_v50 = vmul.f32 %v1194_v48, %v495_v12  ;;  %v1091_v12 = vld [vmem:[%s1420_s7] ss:$0 sm:$0xff] }
 0x13f   : > { %v519_v52 = vmul.f32 %v1089_v49, %v511_v50 }
 0x140   : > { %v1196_v53 = vpop.eup %1195 }
 0x141   : > { %v1198_v55 = vpop.eup %1197  ;;  %v527_v56 = vadd.f32 %v1090_v51, %v519_v52  ;;  %v467_v57 = vmul.f32 %v1196_v53, %v1312_v14 }
 0x142   : > { %v512_v58 = vmul.f32 %v1198_v55, %v496_v20 }
 0x143   : > { %1156 = vmatprep.mubr.msk.f32.mxu1 %vm440_vm0, %v527_v56  ;;  %v475_v60 = vmul.f32 %v1087_v54, %v467_v57 }
 0x144   : > { %v1200_v61 = vpop.eup %1199  ;;  %v520_v62 = vmul.f32 %v1089_v49, %v512_v58 }
 0x145   : > { %v468_v63 = vmul.f32 %v1200_v61, %v1318_v22  ;;  %v483_v0 = vadd.f32 %v1088_v59, %v475_v60 }
 0x146   : > { %v528_v1 = vadd.f32 %v1090_v51, %v520_v62 }
 0x147   : > { %v476_v2 = vmul.f32 %v1087_v54, %v468_v63  ;;  %1145 = vmatprep.mubr.msk.f32.mxu0 %vm440_vm0, %v483_v0 }
 0x148   : > { %1157 = vmatmul.mubr.msk.f32.vlgmr.msra.gmra.mxu1 %vm440_vm0, %v528_v1 }
 0x149   : > { %v484_v5 = vadd.f32 %v1088_v59, %v476_v2 }
 0x14b   : > { %1146 = vmatmul.mubr.msk.f32.vlgmr.msra.gmra.mxu0 %vm440_vm0, %v484_v5 }
 0x208   : > { %v1158_v7 = vpop.f32.mrf.mxu1 }
 0x209   : > { %v710_v8 = vadd.f32 %v1158_v7, %v1094_v6 }
 0x20a   : > { %v704_v9 = vpop.f32.mrf.mxu1 }
 0x20b   : > { %v705_v10 = vadd.f32 %v1094_v6, %v704_v9  ;;  %1159 = vmatprep.subr.msk.mxu0 %vm440_vm0, %v710_v8  ;;  %v1147_v11 = vpop.f32.mrf.mxu0 }
 0x20c   : > { %1160 = vmatpush3.xpose.msk.msra.mxu0 %vm440_vm0, %v710_v8  ;;  %v618_v15 = vadd.f32 %v1147_v11, %v1091_v12 }
 0x20d   : > { %1161 = vmatprep.subr.msk.mxu0 %vm440_vm0, %v705_v10  ;;  %v612_v13 = vpop.f32.mrf.mxu0 }
 0x20e   : > { %v613_v14 = vadd.f32 %v1091_v12, %v612_v13 }
 0x210   : > { %1162 = vmatpush3.xpose.msk.msra.mxu0 %vm440_vm0, %v705_v10  ;;  %1163 = vmatprep.mubr.msk.f32.mxu0 %vm440_vm0, %v613_v14 }
 0x213   : > { %1164 = vmatmul.mubr.msk.f32.vlgmr.msra.gmra.mxu0 %vm440_vm0, %v618_v15 }
 0x2d3   : > { %v1165_v16 = vpop.f32.mrf.mxu0 }
 0x2d4   : > { %v801_v17 = vmul.f32 0.17677669, %v1165_v16 }
 0x2d5   : > { %v791_v18 = vpop.f32.mrf.mxu0 }
 0x2d6   : > { %v800_v19 = vmul.f32 0.17677669, %v791_v18  ;;  %v807_v20 = vsel %vm806_vm2, %v801_v17, -inf }
 0x2d7   : > { %808 = vmax.xlane.f32.xlu1 %v807_v20 }
 0x2d8   : > { %v803_v21 = vsel %vm802_vm3, %v800_v19, -inf }
 0x2d9   : > { %804 = vmax.xlane.f32.xlu0 %v803_v21 }
 0x360   : > { %v809_v22 = vpop.xlane.xlu1 %808 }
 0x361   : > { %v811_v23 = vsub.f32 %v801_v17, %v809_v22 }
 0x362   : > { %v805_v24 = vpop.xlane.xlu0 %804 }
 0x363   : > { %v814_v25 = vmul.f32 1.442695, %v811_v23  ;;  %v810_v26 = vsub.f32 %v800_v19, %v805_v24 }
 0x365   : > { %1201 = vpow2.f32 %v814_v25  ;;  %v812_v27 = vmul.f32 1.442695, %v810_v26 }
 0x367   : > { %1203 = vpow2.f32 %v812_v27 }
 0x372   : > { %v1202_v28 = vpop.eup %1201 }
 0x373   : > { %v819_v29 = vsel %vm806_vm2, %v1202_v28, 0.0 }
 0x374   : > { %v1204_v30 = vpop.eup %1203  ;;  %820 = vadd.xlane.f32.xlu1 %v819_v29 }
 0x375   : > { %v816_v31 = vsel %vm802_vm3, %v1204_v30, 0.0 }
 0x376   : > { %817 = vadd.xlane.f32.xlu0 %v816_v31 }
 0x385   : > { %826 = vrot.lane.b32.xlu1 %v705_v10, %s1217_s26 }
 0x38c   : > { %828 = vrot.lane.b32.xlu0 %v710_v8, %s1217_s26 }
 0x3fd   : > { %v821_v32 = vpop.xlane.xlu1 %820 }
 0x3fe   : > { %1205 = vrcp.f32 %v821_v32 }
 0x3ff   : > { %v818_v33 = vpop.xlane.xlu0 %817 }
 0x400   : > { %1207 = vrcp.f32 %v818_v33 }
 0x401   : > { %v827_v35 = vpop.permute.xlu1 %826 }
 0x403   : > { %v829_v34 = vpop.permute.xlu0 %828 }
 0x404   : > { %1166 = vmatprep.subr.mxu1 %v829_v34 }
 0x405   : > { %1167 = vmatpush3.msra.mxu1 %v829_v34 }
 0x406   : > { %1168 = vmatprep.subr.mxu1 %v827_v35 }
 0x407   : > { %1169 = vmatpush3.msra.mxu1 %v827_v35 }
 0x408   : > { %1173 = vmatprep.subr.mxu1 %v916_v36 }
 0x40b   : > { %v1206_v37 = vpop.eup %1205 }
 0x40c   : > { %v825_v40 = vmul.f32 %v1206_v37, %v1202_v28 }
 0x40d   : > { %v1208_v38 = vpop.eup %1207 }
 0x40e   : > { %v824_v39 = vmul.f32 %v1208_v38, %v1204_v30 }
 0x410   : > { %1170 = vmatprep.mubr.msk.f32.mxu1 %vm802_vm3, %v824_v39 }
 0x411   : > { %1171 = vmatmul.mubr.msk.f32.vlgmr.msra.gmra.mxu1 %vm802_vm3, %v825_v40 }
 0x412   : > { %1174 = vmatpush3.msra.mxu1 %v916_v36 }
 0x413   : > { %1175 = vmatprep.subr.mxu1 %v915_v41 }
 0x414   : > { %1176 = vmatpush3.msra.mxu1 %v915_v41 }
 0x415   : > { %1177 = vmatprep.subr.mxu1 %v914_v42 }
 0x416   : > { %1178 = vmatpush3.msra.mxu1 %v914_v42 }
 0x417   : > { %1179 = vmatprep.subr.mxu1 %v913_v43 }
 0x418   : > { %1180 = vmatpush3.msra.mxu1 %v913_v43 }
 0x4d1   : > { %v1172_v44 = vpop.f32.mrf.mxu1 }
 0x4d3   : > { %v904_v45 = vpop.f32.mrf.mxu1 }
 0x4d4   : > { %1181 = vmatprep.mubr.msk.f32.mxu1 %vm440_vm0, %v904_v45 }
 0x4d5   : > { %1182 = vmatmul.mubr.msk.f32.vlgmr.msra.gmra.mxu1 %vm440_vm0, %v1172_v44 }
 0x595   : > { %v1183_v47 = vpop.f32.mrf.mxu1 }
 0x596   : > { %v1002_v48 = vadd.f32 %v1183_v47, %v1103_v46 }
 0x597   : > { %v996_v49 = vpop.f32.mrf.mxu1 }
 0x598   : > { %v1006_v50 = vadd.f32 %v1002_v48, %v1304_v4  ;;  %v997_v51 = vadd.f32 %v1103_v46, %v996_v49 }
 0x59a   : > { %1008 = vst.msk [vmem:[%s433_s22 + $0x8] sm:$0x3] %vm444_vm1, %v1006_v50  ;;  %v1005_v52 = vadd.f32 %v997_v51, %v1302_v3 }
 0x59c   : > { %1007 = vst.msk [vmem:[%s433_s22] sm:$0xff] %vm440_vm0, %v1005_v52 }
 0x59d PF: > { %s22_s21 = sadd.s32 1, %s1215_s21  }
 0x59e   : > { %p19_p4 = scmp.ge.s32.totalorder %s22_s21, 4  }
 0x5a0   :  { %21 = sbr.rel (!%p19_p4) target bundleno = 1 (0x1), region = 101 }

// kernel: rin_forward.22
= control target key start
LH: loop header
LB: loop body
LE: loop exit
PB: predicated region body
PF: predicated region fallthrough
CT: control target
= control target key end

     0   :  { %s747_s24 = smov 0   ;;  %s861_s0 = inlined_call_operand.vmem [shape: f32[2,16,32], index: 0, kind: input, shape index: {}]   ;;  %s862_s1 = inlined_call_operand.vmem [shape: f32[1,32], index: 1, kind: input, shape index: {}]   ;;  %s863_s2 = inlined_call_operand.vmem [shape: f32[1,32], index: 2, kind: input, shape index: {}, may-alias: {2,6}]   ;;  %s864_s3 = inlined_call_operand.vmem [shape: f32[32,128], index: 3, kind: input, shape index: {}]   ;;  %s865_s4 = inlined_call_operand.vmem [shape: f32[1,128], index: 4, kind: input, shape index: {}]   ;;  %s866_s5 = inlined_call_operand.vmem [shape: f32[128,32], index: 5, kind: input, shape index: {}]   ;;  %s867_s6 = inlined_call_operand.vmem [shape: f32[1,32], index: 6, kind: input, shape index: {}, may-alias: {2,6}]   ;;  %s868_s7 = inlined_call_operand.vmem [shape: f32[2,16,32], index: 7, kind: output, shape index: {}]  }
   0x1 LB: > { %s594_s25 = sadd.s32 4294967295, %s705_s24   ;;  %p598_p0 = scmp.ge.s32.totalorder %s705_s24, 1  ;;  %s705_s24 = sphi %s747_s24, %s17_s24  }
   0x2   : > { %p237_p1 = scmp.lt.s32.totalorder %s705_s24, 3 }
   0x4   : > { %p238_p2 = pnand %p598_p0, %p237_p1 }
   0x5   : > { %p269_p3 = scmp.lt.s32.totalorder (!%p238_p2), %s594_s25, 1 }
   0x6   : > { %241 = sbr.rel (%p238_p2) target bundleno = 755 (0x2f3), region = 48 }
   0xb   : > { %s870_s25 = smov (!%p269_p3, %s594_s25), 1  ;;  %vm283_vm0 = vcmask 261120   ;;  %v330_v14 = vld [vmem:[%s864_s3 + $0x18] sm:$0xff]  ;;  %v329_v15 = vld [vmem:[%s864_s3 + $0x10] sm:$0xff]  ;;  %v328_v16 = vld [vmem:[%s864_s3 + $0x8] sm:$0xff] }
   0xc   : > { %s611_s26 = sshll.u32 %s870_s25, 4  ;;  %637 = vmatprep.subr.mxu0 %v330_v14  ;;  %v327_v17 = vld [vmem:[%s864_s3] sm:$0xff]  ;;  %v452_v34 = vld [vmem:[%s866_s5 + $0x78] sm:$0xff]  ;;  %v451_v35 = vld [vmem:[%s866_s5 + $0x70] sm:$0xff] }
   0xd   : > { %s273_s29 = scalar_lea.vmem %s861_s0, %s611_s26  ;;  %638 = vmatpush3.msra.mxu0 %v330_v14  ;;  %v603_v25 = vld [vmem:[%s862_s1] ss:$0 sm:$0xff]  ;;  %648 = vmatprep.subr.mxu1 %v452_v34  ;;  %v450_v36 = vld [vmem:[%s866_s5 + $0x68] sm:$0xff]  ;;  %v448_v38 = vld [vmem:[%s866_s5 + $0x58] sm:$0xff]  ;;  %s278_s17 = scalar_lea.vmem %s868_s7, %s611_s26 }
   0xe   : > { %v763_v0 = vld [vmem:[%s273_s29] sm:$0xff]  ;;  %v765_v1 = vld [vmem:[%s273_s29 + $0x8] sm:$0xff]  ;;  %639 = vmatprep.subr.mxu0 %v329_v15  ;;  %649 = vmatpush3.msra.mxu1 %v452_v34  ;;  %v447_v39 = vld [vmem:[%s866_s5 + $0x50] sm:$0xff] }
   0xf   : > { %v284_v2 = vsel %vm283_vm0, %v763_v0, 0.0  ;;  %v287_v3 = vsel %vm283_vm0, %v765_v1, 0.0  ;;  %640 = vmatpush3.msra.mxu0 %v329_v15  ;;  %v604_v27 = vld [vmem:[%s863_s2] ss:$0 sm:$0xff]  ;;  %650 = vmatprep.subr.mxu1 %v451_v35  ;;  %v446_v40 = vld [vmem:[%s866_s5 + $0x48] sm:$0xff]  ;;  %v444_v42 = vld [vmem:[%s866_s5 + $0x38] sm:$0xff] }
  0x10   : > { %285 = vadd.xlane.f32.xlu0 %v284_v2  ;;  %641 = vmatprep.subr.mxu0 %v328_v16  ;;  %v449_v37 = vld [vmem:[%s866_s5 + $0x60] sm:$0xff]  ;;  %v443_v43 = vld [vmem:[%s866_s5 + $0x30] sm:$0xff]  ;;  %v442_v44 = vld [vmem:[%s866_s5 + $0x28] sm:$0xff] }
  0x11   : > { %642 = vmatpush3.msra.mxu0 %v328_v16  ;;  %651 = vmatpush3.msra.mxu1 %v451_v35  ;;  %v445_v41 = vld [vmem:[%s866_s5 + $0x40] sm:$0xff]  ;;  %v440_v46 = vld [vmem:[%s866_s5 + $0x18] sm:$0xff]  ;;  %v439_v47 = vld [vmem:[%s866_s5 + $0x10] sm:$0xff] }
  0x12   : > { %643 = vmatprep.subr.mxu0 %v327_v17  ;;  %652 = vmatprep.subr.mxu1 %v450_v36  ;;  %v441_v45 = vld [vmem:[%s866_s5 + $0x20] sm:$0xff]  ;;  %v438_v48 = vld [vmem:[%s866_s5 + $0x8] sm:$0xff] }
  0x13   : > { %644 = vmatpush3.msra.mxu0 %v327_v17  ;;  %653 = vmatpush3.msra.mxu1 %v450_v36  ;;  %v437_v49 = vld [vmem:[%s866_s5] sm:$0xff] }
  0x14   : > { %288 = vadd.xlane.f32.xlu0 %v287_v3  ;;  %654 = vmatprep.subr.mxu1 %v449_v37  ;;  %v605_v50 = vld [vmem:[%s865_s4] ss:$0 sm:$0xff] }
  0x15   : > { %655 = vmatpush3.msra.mxu1 %v449_v37 }
  0x16   : > { %656 = vmatprep.subr.mxu1 %v448_v38 }
  0x17   : > { %657 = vmatpush3.msra.mxu1 %v448_v38 }
  0x18   : > { %658 = vmatprep.subr.mxu1 %v447_v39 }
  0x19   : > { %659 = vmatpush3.msra.mxu1 %v447_v39 }
  0x1a   : > { %660 = vmatprep.subr.mxu1 %v446_v40 }
  0x1b   : > { %661 = vmatpush3.msra.mxu1 %v446_v40 }
  0x1c   : > { %662 = vmatprep.subr.mxu1 %v445_v41 }
  0x1d   : > { %663 = vmatpush3.msra.mxu1 %v445_v41 }
  0x1e   : > { %664 = vmatprep.subr.mxu1 %v444_v42 }
  0x1f   : > { %665 = vmatpush3.msra.mxu1 %v444_v42 }
  0x20   : > { %666 = vmatprep.subr.mxu1 %v443_v43 }
  0x21   : > { %667 = vmatpush3.msra.mxu1 %v443_v43 }
  0x22   : > { %668 = vmatprep.subr.mxu1 %v442_v44 }
  0x23   : > { %669 = vmatpush3.msra.mxu1 %v442_v44 }
  0x24   : > { %670 = vmatprep.subr.mxu1 %v441_v45 }
  0x25   : > { %671 = vmatpush3.msra.mxu1 %v441_v45 }
  0x26   : > { %672 = vmatprep.subr.mxu1 %v440_v46 }
  0x27   : > { %673 = vmatpush3.msra.mxu1 %v440_v46 }
  0x28   : > { %674 = vmatprep.subr.mxu1 %v439_v47 }
  0x29   : > { %675 = vmatpush3.msra.mxu1 %v439_v47 }
  0x2a   : > { %676 = vmatprep.subr.mxu1 %v438_v48 }
  0x2b   : > { %677 = vmatpush3.msra.mxu1 %v438_v48 }
  0x2c   : > { %678 = vmatprep.subr.mxu1 %v437_v49 }
  0x2d   : > { %679 = vmatpush3.msra.mxu1 %v437_v49 }
  0x99   : > { %v286_v4 = vpop.xlane.xlu0 %285 }
  0x9a   : > { %v291_v5 = vmul.f32 0.03125, %v286_v4 }
  0x9c   : > { %v293_v6 = vsub.f32 %v763_v0, %v291_v5 }
  0x9d   : > { %v289_v7 = vpop.xlane.xlu0 %288 }
  0x9e   : > { %v292_v8 = vmul.f32 0.03125, %v289_v7  ;;  %v295_v9 = vmul.f32 %v293_v6, %v293_v6 }
  0xa0   : > { %v294_v10 = vsub.f32 %v765_v1, %v292_v8  ;;  %v297_v11 = vsel %vm283_vm0, %v295_v9, 0.0 }
  0xa1   : > { %298 = vadd.xlane.f32.xlu1 %v297_v11  ;;  %v608_v11 = vld [vmem:[%s867_s6] ss:$0 sm:$0xff] }
  0xa2   : > { %v296_v12 = vmul.f32 %v294_v10, %v294_v10 }
  0xa4   : > { %v300_v13 = vsel %vm283_vm0, %v296_v12, 0.0 }
  0xa5   : > { %301 = vadd.xlane.f32.xlu1 %v300_v13 }
 0x12a   : > { %v299_v18 = vpop.xlane.xlu1 %298 }
 0x12b   : > { %v303_v19 = vmul.f32 0.03125, %v299_v18 }
 0x12d   : > { %v305_v20 = vadd.f32 1e-05, %v303_v19 }
 0x12e   : > { %v302_v21 = vpop.xlane.xlu1 %301 }
 0x12f   : > { %691 = vrsqrt.f32 %v305_v20  ;;  %v304_v22 = vmul.f32 0.03125, %v302_v21 }
 0x131   : > { %v306_v23 = vadd.f32 1e-05, %v304_v22 }
 0x133   : > { %693 = vrsqrt.f32 %v306_v23 }
 0x13c   : > { %v692_v24 = vpop.eup %691 }
 0x13d   : > { %v309_v26 = vmul.f32 %v692_v24, %v293_v6 }
 0x13f   : > { %v317_v28 = vmul.f32 %v603_v25, %v309_v26 }
 0x140   : > { %v694_v29 = vpop.eup %693 }
 0x141   : > { %v310_v30 = vmul.f32 %v694_v29, %v294_v10  ;;  %v325_v31 = vadd.f32 %v604_v27, %v317_v28 }
 0x143   : > { %v318_v32 = vmul.f32 %v603_v25, %v310_v30  ;;  %645 = vmatprep.mubr.msk.f32.mxu0 %vm283_vm0, %v325_v31 }
 0x145   : > { %v326_v33 = vadd.f32 %v604_v27, %v318_v32 }
 0x147   : > { %646 = vmatmul.mubr.msk.f32.vlgmr.msra.gmra.mxu0 %vm283_vm0, %v326_v33 }
 0x207   : > { %v647_v51 = vpop.f32.mrf.mxu0 }
 0x208   : > { %v416_v52 = vadd.f32 %v647_v51, %v605_v50 }
 0x209   : > { %v410_v53 = vpop.f32.mrf.mxu0 }
 0x20a   : > { %v420_v54 = vmul.f32 %v416_v52, %v416_v52  ;;  %v411_v55 = vadd.f32 %v605_v50, %v410_v53 }
 0x20c   : > { %v422_v56 = vmul.f32 %v420_v54, %v416_v52  ;;  %v419_v57 = vmul.f32 %v411_v55, %v411_v55 }
 0x20e   : > { %v424_v58 = vmul.f32 0.044715, %v422_v56  ;;  %v421_v59 = vmul.f32 %v419_v57, %v411_v55 }
 0x210   : > { %v426_v60 = vadd.f32 %v424_v58, %v416_v52  ;;  %v423_v61 = vmul.f32 0.044715, %v421_v59 }
 0x212   : > { %v428_v62 = vmul.f32 0.7978846, %v426_v60  ;;  %v425_v63 = vadd.f32 %v423_v61, %v411_v55 }
 0x214   : > { %695 = vtanh.f32 %v428_v62  ;;  %v427_v2 = vmul.f32 0.7978846, %v425_v63 }
 0x216   : > { %697 = vtanh.f32 %v427_v2 }
 0x221   : > { %v696_v3 = vpop.eup %695 }
 0x222   : > { %v432_v4 = vadd.f32 1.0, %v696_v3 }
 0x223   : > { %v698_v5 = vpop.eup %697 }
 0x224   : > { %v431_v6 = vadd.f32 1.0, %v698_v5  ;;  %v434_v7 = vmul.f32 0.5, %v432_v4 }
 0x226   : > { %v433_v8 = vmul.f32 0.5, %v431_v6  ;;  %v436_v10 = vmul.f32 %v434_v7, %v416_v52 }
 0x228   : > { %v435_v9 = vmul.f32 %v433_v8, %v411_v55 }
 0x22a   : > { %680 = vmatprep.mubr.f32.mxu1 %v435_v9 }
 0x22b   : > { %681 = vmatmul.mubr.f32.vlgmr.msra.gmra.mxu1 %v436_v10 }
 0x2eb   : > { %v682_v12 = vpop.f32.mrf.mxu1 }
 0x2ec   : > { %v532_v13 = vadd.f32 %v682_v12, %v608_v11 }
 0x2ed   : > { %v526_v14 = vpop.f32.mrf.mxu1 }
 0x2ee   : > { %v536_v15 = vadd.f32 %v532_v13, %v765_v1  ;;  %v527_v16 = vadd.f32 %v608_v11, %v526_v14 }
 0x2f0   : > { %538 = vst.msk [vmem:[%s278_s17 + $0x8] sm:$0xff] %vm283_vm0, %v536_v15  ;;  %v535_v17 = vadd.f32 %v527_v16, %v763_v0 }
 0x2f2   : > { %537 = vst.msk [vmem:[%s278_s17] sm:$0xff] %vm283_vm0, %v535_v17 }
 0x2f3 PF: > { %s17_s24 = sadd.s32 1, %s705_s24  }
 0x2f4   : > { %p14_p4 = scmp.ge.s32.totalorder %s17_s24, 4  }
 0x2f6   :  { %16 = sbr.rel (!%p14_p4) target bundleno = 1 (0x1), region = 78 }

// kernel: rin_forward.19
= control target key start
LH: loop header
LB: loop body
LE: loop exit
PB: predicated region body
PF: predicated region fallthrough
CT: control target
= control target key end

     0   :  { %s1286_s21 = smov 0   ;;  %s1416_s0 = inlined_call_operand.vmem [shape: f32[2,10,32], index: 0, kind: input, shape index: {}, may-alias: {0,1}]   ;;  %s1417_s1 = inlined_call_operand.vmem [shape: f32[2,10,32], index: 1, kind: input, shape index: {}, may-alias: {0,1}]   ;;  %s1418_s2 = inlined_call_operand.vmem [shape: f32[1,32], index: 2, kind: input, shape index: {}, may-alias: {2,4}]   ;;  %s1419_s3 = inlined_call_operand.vmem [shape: f32[1,32], index: 3, kind: input, shape index: {}, may-alias: {3,5,7,11}]   ;;  %s1420_s4 = inlined_call_operand.vmem [shape: f32[1,32], index: 4, kind: input, shape index: {}, may-alias: {2,4}]   ;;  %s1421_s5 = inlined_call_operand.vmem [shape: f32[1,32], index: 5, kind: input, shape index: {}, may-alias: {3,5,7,11}]   ;;  %s1422_s6 = inlined_call_operand.vmem [shape: f32[32,32], index: 6, kind: input, shape index: {}]   ;;  %s1423_s7 = inlined_call_operand.vmem [shape: f32[1,32], index: 7, kind: input, shape index: {}, may-alias: {3,5,7,11}]   ;;  %s1424_s8 = inlined_call_operand.vmem [shape: f32[32,64], index: 8, kind: input, shape index: {}]   ;;  %s1425_s9 = inlined_call_operand.vmem [shape: f32[1,64], index: 9, kind: input, shape index: {}]   ;;  %s1426_s10 = inlined_call_operand.vmem [shape: f32[32,32], index: 10, kind: input, shape index: {}]   ;;  %s1427_s11 = inlined_call_operand.vmem [shape: f32[1,32], index: 11, kind: input, shape index: {}, may-alias: {3,5,7,11}]   ;;  %s1428_s12 = inlined_call_operand.vmem [shape: f32[2,10,32], index: 12, kind: output, shape index: {}]  }
   0x1 LB: > { %s1078_s22 = sadd.s32 4294967295, %s1218_s21   ;;  %p1082_p0 = scmp.ge.s32.totalorder %s1218_s21, 1  ;;  %s1218_s21 = sphi %s1286_s21, %s22_s21  }
   0x2   : > { %p372_p1 = scmp.lt.s32.totalorder %s1218_s21, 3 }
   0x4   : > { %p373_p2 = pnand %p1082_p0, %p372_p1 }
   0x5   : > { %p419_p3 = scmp.lt.s32.totalorder (!%p373_p2), %s1078_s22, 1 }
   0x6   : > { %376 = sbr.rel (%p373_p2) target bundleno = 1437 (0x59d), region = 68 }
   0xb   : > { %s1430_s22 = smov (!%p419_p3, %s1078_s22), 1  ;;  %vm440_vm0 = vcmask 261120   ;;  %vm444_vm1 = vcmask 254976   ;;  %v624_v28 = vld [vmem:[%s1424_s8 + $0x18] sm:$0xff]  ;;  %v623_v29 = vld [vmem:[%s1424_s8 + $0x10] sm:$0xff]  ;;  %v622_v31 = vld [vmem:[%s1424_s8 + $0x8] sm:$0xff] }
   0xc   : > { %s1294_s23 = sshll.u32 %s1430_s22, 4  ;;  %v532_v30 = vld [vmem:[%s1422_s6 + $0x18] sm:$0xff]  ;;  %1151 = vmatprep.subr.mxu1 %v624_v28  ;;  %v531_v32 = vld [vmem:[%s1422_s6 + $0x10] sm:$0xff]  ;;  %v621_v33 = vld [vmem:[%s1424_s8] sm:$0xff]  ;;  %vm806_vm2 = vcmask 74752   ;;  %vm802_vm3 = vcmask 80896  }
   0xd   : > { %s428_s26 = scalar_lea.vmem %s1417_s1, %s1294_s23  ;;  %s423_s29 = scalar_lea.vmem %s1416_s0, %s1294_s23  ;;  %1140 = vmatprep.subr.mxu0 %v532_v30  ;;  %1152 = vmatpush3.msra.mxu1 %v624_v28  ;;  %v530_v34 = vld [vmem:[%s1422_s6 + $0x8] sm:$0xff]  ;;  %v529_v35 = vld [vmem:[%s1422_s6] sm:$0xff]  ;;  %vm837_vm4 = vcmask 1041408  }
   0xe   : > { %v436_v0 = vld [vmem:[%s428_s26] sm:$0xff]  ;;  %v437_v1 = vld [vmem:[%s428_s26 + $0x8] sm:$0x3]  ;;  %1141 = vmatpush3.msra.mxu0 %v532_v30  ;;  %1153 = vmatprep.subr.mxu1 %v623_v29  ;;  %s1220_s26 = smov 96   ;;  %s433_s22 = scalar_lea.vmem %s1428_s12, %s1294_s23 }
   0xf   : > { %v487_v2 = vsel %vm440_vm0, %v436_v0, 0.0  ;;  %v1305_v3 = vld [vmem:[%s423_s29] sm:$0xff]  ;;  %v1307_v4 = vld [vmem:[%s423_s29 + $0x8] sm:$0x3]  ;;  %v490_v6 = vsel %vm444_vm1, %v437_v1, 0.0  ;;  %1154 = vmatpush3.msra.mxu1 %v623_v29  ;;  %1142 = vmatprep.subr.mxu0 %v531_v32 }
  0x10   : > { %488 = vadd.xlane.f32.xlu0 %v487_v2  ;;  %v441_v5 = vsel %vm440_vm0, %v1305_v3, 0.0  ;;  %v445_v7 = vsel %vm444_vm1, %v1307_v4, 0.0  ;;  %1155 = vmatprep.subr.mxu1 %v622_v31  ;;  %v1091_v49 = vld [vmem:[%s1420_s4] ss:$0 sm:$0xff] }
  0x11   : > { %442 = vadd.xlane.f32.xlu1 %v441_v5  ;;  %1156 = vmatpush3.msra.mxu1 %v622_v31  ;;  %v1092_v51 = vld [vmem:[%s1421_s5] ss:$0 sm:$0xff] }
  0x12   : > { %1157 = vmatprep.subr.mxu1 %v621_v33  ;;  %1143 = vmatpush3.msra.mxu0 %v531_v32  ;;  %v1089_v54 = vld [vmem:[%s1418_s2] ss:$0 sm:$0xff] }
  0x13   : > { %1158 = vmatpush3.msra.mxu1 %v621_v33  ;;  %1144 = vmatprep.subr.mxu0 %v530_v34  ;;  %v1090_v59 = vld [vmem:[%s1419_s3] ss:$0 sm:$0xff] }
  0x14   : > { %491 = vadd.xlane.f32.xlu0 %v490_v6  ;;  %1145 = vmatpush3.msra.mxu0 %v530_v34  ;;  %v1096_v6 = vld [vmem:[%s1425_s9] ss:$0 sm:$0xff] }
  0x15   : > { %446 = vadd.xlane.f32.xlu1 %v445_v7  ;;  %1146 = vmatprep.subr.mxu0 %v529_v35 }
  0x16   : > { %1147 = vmatpush3.msra.mxu0 %v529_v35 }
  0x99   : > { %v489_v8 = vpop.xlane.xlu0 %488 }
  0x9a   : > { %v493_v9 = vmul.f32 0.03125, %v489_v8  ;;  %v443_v10 = vpop.xlane.xlu1 %442 }
  0x9b   : > { %v449_v11 = vmul.f32 0.03125, %v443_v10 }
  0x9c   : > { %v495_v12 = vsub.f32 %v436_v0, %v493_v9 }
  0x9d   : > { %v492_v13 = vpop.xlane.xlu0 %491  ;;  %v1315_v14 = vsub.f32 %v1305_v3, %v449_v11 }
  0x9e   : > { %v494_v15 = vmul.f32 0.03125, %v492_v13  ;;  %v497_v16 = vmul.f32 %v495_v12, %v495_v12  ;;  %v447_v17 = vpop.xlane.xlu1 %446 }
  0x9f   : > { %v450_v18 = vmul.f32 0.03125, %v447_v17  ;;  %v453_v19 = vmul.f32 %v1315_v14, %v1315_v14 }
  0xa0   : > { %v496_v20 = vsub.f32 %v437_v1, %v494_v15  ;;  %v499_v21 = vsel %vm440_vm0, %v497_v16, 0.0 }
  0xa1   : > { %500 = vadd.xlane.f32.xlu0 %v499_v21  ;;  %v1321_v22 = vsub.f32 %v1307_v4, %v450_v18  ;;  %v455_v24 = vsel %vm440_vm0, %v453_v19, 0.0 }
  0xa2   : > { %v498_v23 = vmul.f32 %v496_v20, %v496_v20 }
  0xa3   : > { %v454_v25 = vmul.f32 %v1321_v22, %v1321_v22 }
  0xa4   : > { %v502_v26 = vsel %vm444_vm1, %v498_v23, 0.0 }
  0xa5   : > { %503 = vadd.xlane.f32.xlu1 %v502_v26  ;;  %456 = vadd.xlane.f32.xlu0 %v455_v24  ;;  %v458_v27 = vsel %vm444_vm1, %v454_v25, 0.0 }
  0xa9   : > { %459 = vadd.xlane.f32.xlu1 %v458_v27 }
 0x12a   : > { %v501_v36 = vpop.xlane.xlu0 %500 }
 0x12b   : > { %v505_v37 = vmul.f32 0.03125, %v501_v36  ;;  %v918_v36 = vld [vmem:[%s1426_s10 + $0x18] sm:$0xff] }
 0x12d   : > { %v507_v38 = vadd.f32 1e-05, %v505_v37 }
 0x12e   : > { %v457_v39 = vpop.xlane.xlu0 %456  ;;  %v504_v40 = vpop.xlane.xlu1 %503 }
 0x12f   : > { %1196 = vrsqrt.f32 %v507_v38  ;;  %v461_v41 = vmul.f32 0.03125, %v457_v39  ;;  %v506_v42 = vmul.f32 0.03125, %v504_v40 }
 0x131   : > { %v463_v43 = vadd.f32 1e-05, %v461_v41  ;;  %v508_v44 = vadd.f32 1e-05, %v506_v42  ;;  %v917_v41 = vld [vmem:[%s1426_s10 + $0x10] sm:$0xff]  ;;  %v916_v42 = vld [vmem:[%s1426_s10 + $0x8] sm:$0xff] }
 0x132   : > { %v460_v45 = vpop.xlane.xlu1 %459 }
 0x133   : > { %1198 = vrsqrt.f32 %v463_v43  ;;  %v462_v46 = vmul.f32 0.03125, %v460_v45  ;;  %v915_v43 = vld [vmem:[%s1426_s10] sm:$0xff] }
 0x134   : > { %1200 = vrsqrt.f32 %v508_v44 }
 0x135   : > { %v464_v47 = vadd.f32 1e-05, %v462_v46  ;;  %v1106_v46 = vld [vmem:[%s1427_s11] ss:$0 sm:$0xff] }
 0x137   : > { %1202 = vrsqrt.f32 %v464_v47 }
 0x13c   : > { %v1197_v48 = vpop.eup %1196 }
 0x13d   : > { %v511_v50 = vmul.f32 %v1197_v48, %v495_v12  ;;  %v1093_v12 = vld [vmem:[%s1423_s7] ss:$0 sm:$0xff] }
 0x13f   : > { %v519_v52 = vmul.f32 %v1091_v49, %v511_v50 }
 0x140   : > { %v1199_v53 = vpop.eup %1198 }
 0x141   : > { %v1201_v55 = vpop.eup %1200  ;;  %v527_v56 = vadd.f32 %v1092_v51, %v519_v52  ;;  %v467_v57 = vmul.f32 %v1199_v53, %v1315_v14 }
 0x142   : > { %v512_v58 = vmul.f32 %v1201_v55, %v496_v20 }
 0x143   : > { %1159 = vmatprep.mubr.msk.f32.mxu1 %vm440_vm0, %v527_v56  ;;  %v475_v60 = vmul.f32 %v1089_v54, %v467_v57 }
 0x144   : > { %v1203_v61 = vpop.eup %1202  ;;  %v520_v62 = vmul.f32 %v1091_v49, %v512_v58 }
 0x145   : > { %v468_v63 = vmul.f32 %v1203_v61, %v1321_v22  ;;  %v483_v0 = vadd.f32 %v1090_v59, %v475_v60 }
 0x146   : > { %v528_v1 = vadd.f32 %v1092_v51, %v520_v62 }
 0x147   : > { %v476_v2 = vmul.f32 %v1089_v54, %v468_v63  ;;  %1148 = vmatprep.mubr.msk.f32.mxu0 %vm440_vm0, %v483_v0 }
 0x148   : > { %1160 = vmatmul.mubr.msk.f32.vlgmr.msra.gmra.mxu1 %vm440_vm0, %v528_v1 }
 0x149   : > { %v484_v5 = vadd.f32 %v1090_v59, %v476_v2 }
 0x14b   : > { %1149 = vmatmul.mubr.msk.f32.vlgmr.msra.gmra.mxu0 %vm440_vm0, %v484_v5 }
 0x208   : > { %v1161_v7 = vpop.f32.mrf.mxu1 }
 0x209   : > { %v710_v8 = vadd.f32 %v1161_v7, %v1096_v6 }
 0x20a   : > { %v704_v9 = vpop.f32.mrf.mxu1 }
 0x20b   : > { %v705_v10 = vadd.f32 %v1096_v6, %v704_v9  ;;  %1162 = vmatprep.subr.msk.mxu0 %vm440_vm0, %v710_v8  ;;  %v1150_v11 = vpop.f32.mrf.mxu0 }
 0x20c   : > { %1163 = vmatpush3.xpose.msk.msra.mxu0 %vm440_vm0, %v710_v8  ;;  %v618_v15 = vadd.f32 %v1150_v11, %v1093_v12 }
 0x20d   : > { %1164 = vmatprep.subr.msk.mxu0 %vm440_vm0, %v705_v10  ;;  %v612_v13 = vpop.f32.mrf.mxu0 }
 0x20e   : > { %v613_v14 = vadd.f32 %v1093_v12, %v612_v13 }
 0x210   : > { %1165 = vmatpush3.xpose.msk.msra.mxu0 %vm440_vm0, %v705_v10  ;;  %1166 = vmatprep.mubr.msk.f32.mxu0 %vm440_vm0, %v613_v14 }
 0x213   : > { %1167 = vmatmul.mubr.msk.f32.vlgmr.msra.gmra.mxu0 %vm440_vm0, %v618_v15 }
 0x2d3   : > { %v1168_v16 = vpop.f32.mrf.mxu0 }
 0x2d4   : > { %v801_v17 = vmul.f32 0.17677669, %v1168_v16 }
 0x2d5   : > { %v791_v18 = vpop.f32.mrf.mxu0 }
 0x2d6   : > { %v800_v19 = vmul.f32 0.17677669, %v791_v18  ;;  %v807_v20 = vsel %vm806_vm2, %v801_v17, -inf }
 0x2d7   : > { %808 = vmax.xlane.f32.xlu1 %v807_v20 }
 0x2d8   : > { %v803_v21 = vsel %vm802_vm3, %v800_v19, -inf }
 0x2d9   : > { %804 = vmax.xlane.f32.xlu0 %v803_v21 }
 0x360   : > { %v809_v22 = vpop.xlane.xlu1 %808 }
 0x361   : > { %v811_v23 = vsub.f32 %v801_v17, %v809_v22 }
 0x362   : > { %v805_v24 = vpop.xlane.xlu0 %804 }
 0x363   : > { %v814_v25 = vmul.f32 1.442695, %v811_v23  ;;  %v810_v26 = vsub.f32 %v800_v19, %v805_v24 }
 0x365   : > { %1204 = vpow2.f32 %v814_v25  ;;  %v812_v27 = vmul.f32 1.442695, %v810_v26 }
 0x367   : > { %1206 = vpow2.f32 %v812_v27 }
 0x372   : > { %v1205_v28 = vpop.eup %1204 }
 0x373   : > { %v819_v29 = vsel %vm806_vm2, %v1205_v28, 0.0 }
 0x374   : > { %v1207_v30 = vpop.eup %1206  ;;  %820 = vadd.xlane.f32.xlu1 %v819_v29 }
 0x375   : > { %v816_v31 = vsel %vm802_vm3, %v1207_v30, 0.0 }
 0x376   : > { %817 = vadd.xlane.f32.xlu0 %v816_v31 }
 0x385   : > { %826 = vrot.lane.b32.xlu1 %v705_v10, %s1220_s26 }
 0x38c   : > { %828 = vrot.lane.b32.xlu0 %v710_v8, %s1220_s26 }
 0x3fd   : > { %v821_v32 = vpop.xlane.xlu1 %820 }
 0x3fe   : > { %1208 = vrcp.f32 %v821_v32 }
 0x3ff   : > { %v818_v33 = vpop.xlane.xlu0 %817 }
 0x400   : > { %1210 = vrcp.f32 %v818_v33 }
 0x401   : > { %v827_v35 = vpop.permute.xlu1 %826 }
 0x403   : > { %v829_v34 = vpop.permute.xlu0 %828 }
 0x404   : > { %1169 = vmatprep.subr.msk.mxu1 %vm837_vm4, %v829_v34 }
 0x405   : > { %1170 = vmatpush3.msk.msra.mxu1 %vm837_vm4, %v829_v34 }
 0x406   : > { %1171 = vmatprep.subr.mxu1 %v827_v35 }
 0x407   : > { %1172 = vmatpush3.msra.mxu1 %v827_v35 }
 0x408   : > { %1176 = vmatprep.subr.mxu1 %v918_v36 }
 0x40b   : > { %v1209_v37 = vpop.eup %1208 }
 0x40c   : > { %v825_v40 = vmul.f32 %v1209_v37, %v1205_v28 }
 0x40d   : > { %v1211_v38 = vpop.eup %1210 }
 0x40e   : > { %v824_v39 = vmul.f32 %v1211_v38, %v1207_v30 }
 0x410   : > { %1173 = vmatprep.mubr.msk.f32.mxu1 %vm802_vm3, %v824_v39 }
 0x411   : > { %1174 = vmatmul.mubr.msk.f32.vlgmr.msra.gmra.mxu1 %vm802_vm3, %v825_v40 }
 0x412   : > { %1177 = vmatpush3.msra.mxu1 %v918_v36 }
 0x413   : > { %1178 = vmatprep.subr.mxu1 %v917_v41 }
 0x414   : > { %1179 = vmatpush3.msra.mxu1 %v917_v41 }
 0x415   : > { %1180 = vmatprep.subr.mxu1 %v916_v42 }
 0x416   : > { %1181 = vmatpush3.msra.mxu1 %v916_v42 }
 0x417   : > { %1182 = vmatprep.subr.mxu1 %v915_v43 }
 0x418   : > { %1183 = vmatpush3.msra.mxu1 %v915_v43 }
 0x4d1   : > { %v1175_v44 = vpop.f32.mrf.mxu1 }
 0x4d3   : > { %v906_v45 = vpop.f32.mrf.mxu1 }
 0x4d4   : > { %1184 = vmatprep.mubr.msk.f32.mxu1 %vm440_vm0, %v906_v45 }
 0x4d5   : > { %1185 = vmatmul.mubr.msk.f32.vlgmr.msra.gmra.mxu1 %vm440_vm0, %v1175_v44 }
 0x595   : > { %v1186_v47 = vpop.f32.mrf.mxu1 }
 0x596   : > { %v1004_v48 = vadd.f32 %v1186_v47, %v1106_v46 }
 0x597   : > { %v998_v49 = vpop.f32.mrf.mxu1 }
 0x598   : > { %v1008_v50 = vadd.f32 %v1004_v48, %v1307_v4  ;;  %v999_v51 = vadd.f32 %v1106_v46, %v998_v49 }
 0x59a   : > { %1010 = vst.msk [vmem:[%s433_s22 + $0x8] sm:$0x3] %vm444_vm1, %v1008_v50  ;;  %v1007_v52 = vadd.f32 %v999_v51, %v1305_v3 }
 0x59c   : > { %1009 = vst.msk [vmem:[%s433_s22] sm:$0xff] %vm440_vm0, %v1007_v52 }
 0x59d PF: > { %s22_s21 = sadd.s32 1, %s1218_s21  }
 0x59e   : > { %p19_p4 = scmp.ge.s32.totalorder %s22_s21, 4  }
 0x5a0   :  { %21 = sbr.rel (!%p19_p4) target bundleno = 1 (0x1), region = 101 }

// kernel: rin_forward.21
= control target key start
LH: loop header
LB: loop body
LE: loop exit
PB: predicated region body
PF: predicated region fallthrough
CT: control target
= control target key end

     0   :  { %s1285_s21 = smov 0   ;;  %s1415_s0 = inlined_call_operand.vmem [shape: f32[2,16,32], index: 0, kind: input, shape index: {}]   ;;  %s1416_s1 = inlined_call_operand.vmem [shape: f32[2,10,32], index: 1, kind: input, shape index: {}]   ;;  %s1417_s2 = inlined_call_operand.vmem [shape: f32[1,32], index: 2, kind: input, shape index: {}, may-alias: {2,4}]   ;;  %s1418_s3 = inlined_call_operand.vmem [shape: f32[1,32], index: 3, kind: input, shape index: {}, may-alias: {3,5,7,11}]   ;;  %s1419_s4 = inlined_call_operand.vmem [shape: f32[1,32], index: 4, kind: input, shape index: {}, may-alias: {2,4}]   ;;  %s1420_s5 = inlined_call_operand.vmem [shape: f32[1,32], index: 5, kind: input, shape index: {}, may-alias: {3,5,7,11}]   ;;  %s1421_s6 = inlined_call_operand.vmem [shape: f32[32,32], index: 6, kind: input, shape index: {}]   ;;  %s1422_s7 = inlined_call_operand.vmem [shape: f32[1,32], index: 7, kind: input, shape index: {}, may-alias: {3,5,7,11}]   ;;  %s1423_s8 = inlined_call_operand.vmem [shape: f32[32,64], index: 8, kind: input, shape index: {}]   ;;  %s1424_s9 = inlined_call_operand.vmem [shape: f32[1,64], index: 9, kind: input, shape index: {}]   ;;  %s1425_s10 = inlined_call_operand.vmem [shape: f32[32,32], index: 10, kind: input, shape index: {}]   ;;  %s1426_s11 = inlined_call_operand.vmem [shape: f32[1,32], index: 11, kind: input, shape index: {}, may-alias: {3,5,7,11}]   ;;  %s1427_s12 = inlined_call_operand.vmem [shape: f32[2,16,32], index: 12, kind: output, shape index: {}]  }
   0x1 LB: > { %s1077_s22 = sadd.s32 4294967295, %s1217_s21   ;;  %p1081_p0 = scmp.ge.s32.totalorder %s1217_s21, 1  ;;  %s1217_s21 = sphi %s1285_s21, %s22_s21  }
   0x2   : > { %p372_p1 = scmp.lt.s32.totalorder %s1217_s21, 3 }
   0x4   : > { %p373_p2 = pnand %p1081_p0, %p372_p1 }
   0x5   : > { %p419_p3 = scmp.lt.s32.totalorder (!%p373_p2), %s1077_s22, 1 }
   0x6   : > { %376 = sbr.rel (%p373_p2) target bundleno = 1437 (0x59d), region = 68 }
   0xb   : > { %s1429_s22 = smov (!%p419_p3, %s1077_s22), 1  ;;  %vm440_vm0 = vcmask 261120   ;;  %vm489_vm1 = vcmask 254976   ;;  %v624_v28 = vld [vmem:[%s1423_s8 + $0x18] sm:$0xff]  ;;  %v623_v29 = vld [vmem:[%s1423_s8 + $0x10] sm:$0xff]  ;;  %v622_v31 = vld [vmem:[%s1423_s8 + $0x8] sm:$0xff] }
   0xc   : > { %s1293_s23 = sshll.u32 %s1429_s22, 4  ;;  %v532_v30 = vld [vmem:[%s1421_s6 + $0x18] sm:$0xff]  ;;  %1150 = vmatprep.subr.mxu1 %v624_v28  ;;  %v531_v32 = vld [vmem:[%s1421_s6 + $0x10] sm:$0xff]  ;;  %v621_v33 = vld [vmem:[%s1423_s8] sm:$0xff]  ;;  %vm802_vm2 = vcmask 80896   ;;  %vm836_vm3 = vcmask 1041408  }
   0xd   : > { %s428_s26 = scalar_lea.vmem %s1416_s1, %s1293_s23  ;;  %s423_s29 = scalar_lea.vmem %s1415_s0, %s1293_s23  ;;  %1139 = vmatprep.subr.mxu0 %v532_v30  ;;  %1151 = vmatpush3.msra.mxu1 %v624_v28  ;;  %v530_v34 = vld [vmem:[%s1421_s6 + $0x8] sm:$0xff]  ;;  %v529_v35 = vld [vmem:[%s1421_s6] sm:$0xff] }
   0xe   : > { %v436_v0 = vld [vmem:[%s428_s26] sm:$0xff]  ;;  %v437_v1 = vld [vmem:[%s428_s26 + $0x8] sm:$0x3]  ;;  %1140 = vmatpush3.msra.mxu0 %v532_v30  ;;  %1152 = vmatprep.subr.mxu1 %v623_v29  ;;  %s1219_s26 = smov 96   ;;  %s433_s22 = scalar_lea.vmem %s1427_s12, %s1293_s23 }
   0xf   : > { %v486_v2 = vsel %vm440_vm0, %v436_v0, 0.0  ;;  %v1304_v3 = vld [vmem:[%s423_s29] sm:$0xff]  ;;  %v1306_v4 = vld [vmem:[%s423_s29 + $0x8] sm:$0xff]  ;;  %v490_v6 = vsel %vm489_vm1, %v437_v1, 0.0  ;;  %1153 = vmatpush3.msra.mxu1 %v623_v29  ;;  %1141 = vmatprep.subr.mxu0 %v531_v32 }
  0x10   : > { %487 = vadd.xlane.f32.xlu0 %v486_v2  ;;  %v441_v5 = vsel %vm440_vm0, %v1304_v3, 0.0  ;;  %v444_v7 = vsel %vm440_vm0, %v1306_v4, 0.0  ;;  %1154 = vmatprep.subr.mxu1 %v622_v31  ;;  %v1090_v49 = vld [vmem:[%s1419_s4] ss:$0 sm:$0xff] }
  0x11   : > { %442 = vadd.xlane.f32.xlu1 %v441_v5  ;;  %1155 = vmatpush3.msra.mxu1 %v622_v31  ;;  %v1091_v51 = vld [vmem:[%s1420_s5] ss:$0 sm:$0xff] }
  0x12   : > { %1156 = vmatprep.subr.mxu1 %v621_v33  ;;  %1142 = vmatpush3.msra.mxu0 %v531_v32  ;;  %v1088_v54 = vld [vmem:[%s1417_s2] ss:$0 sm:$0xff] }
  0x13   : > { %1157 = vmatpush3.msra.mxu1 %v621_v33  ;;  %1143 = vmatprep.subr.mxu0 %v530_v34  ;;  %v1089_v59 = vld [vmem:[%s1418_s3] ss:$0 sm:$0xff] }
  0x14   : > { %491 = vadd.xlane.f32.xlu0 %v490_v6  ;;  %1144 = vmatpush3.msra.mxu0 %v530_v34  ;;  %v1095_v6 = vld [vmem:[%s1424_s9] ss:$0 sm:$0xff] }
  0x15   : > { %445 = vadd.xlane.f32.xlu1 %v444_v7  ;;  %1145 = vmatprep.subr.mxu0 %v529_v35 }
  0x16   : > { %1146 = vmatpush3.msra.mxu0 %v529_v35 }
  0x99   : > { %v488_v8 = vpop.xlane.xlu0 %487 }
  0x9a   : > { %v493_v9 = vmul.f32 0.03125, %v488_v8  ;;  %v443_v10 = vpop.xlane.xlu1 %442 }
  0x9b   : > { %v448_v11 = vmul.f32 0.03125, %v443_v10 }
  0x9c   : > { %v495_v12 = vsub.f32 %v436_v0, %v493_v9 }
  0x9d   : > { %v492_v13 = vpop.xlane.xlu0 %491  ;;  %v1314_v14 = vsub.f32 %v1304_v3, %v448_v11 }
  0x9e   : > { %v494_v15 = vmul.f32 0.03125, %v492_v13  ;;  %v497_v16 = vmul.f32 %v495_v12, %v495_v12  ;;  %v446_v17 = vpop.xlane.xlu1 %445 }
  0x9f   : > { %v449_v18 = vmul.f32 0.03125, %v446_v17  ;;  %v452_v19 = vmul.f32 %v1314_v14, %v1314_v14 }
  0xa0   : > { %v496_v20 = vsub.f32 %v437_v1, %v494_v15  ;;  %v499_v21 = vsel %vm440_vm0, %v497_v16, 0.0 }
  0xa1   : > { %500 = vadd.xlane.f32.xlu0 %v499_v21  ;;  %v1320_v22 = vsub.f32 %v1306_v4, %v449_v18  ;;  %v454_v24 = vsel %vm440_vm0, %v452_v19, 0.0 }
  0xa2   : > { %v498_v23 = vmul.f32 %v496_v20, %v496_v20 }
  0xa3   : > { %v453_v25 = vmul.f32 %v1320_v22, %v1320_v22 }
  0xa4   : > { %v502_v26 = vsel %vm489_vm1, %v498_v23, 0.0 }
  0xa5   : > { %503 = vadd.xlane.f32.xlu1 %v502_v26  ;;  %455 = vadd.xlane.f32.xlu0 %v454_v24  ;;  %v457_v27 = vsel %vm440_vm0, %v453_v25, 0.0 }
  0xa9   : > { %458 = vadd.xlane.f32.xlu1 %v457_v27 }
 0x12a   : > { %v501_v36 = vpop.xlane.xlu0 %500 }
 0x12b   : > { %v505_v37 = vmul.f32 0.03125, %v501_v36  ;;  %v917_v36 = vld [vmem:[%s1425_s10 + $0x18] sm:$0xff] }
 0x12d   : > { %v507_v38 = vadd.f32 1e-05, %v505_v37 }
 0x12e   : > { %v456_v39 = vpop.xlane.xlu0 %455  ;;  %v504_v40 = vpop.xlane.xlu1 %503 }
 0x12f   : > { %1195 = vrsqrt.f32 %v507_v38  ;;  %v460_v41 = vmul.f32 0.03125, %v456_v39  ;;  %v506_v42 = vmul.f32 0.03125, %v504_v40 }
 0x131   : > { %v462_v43 = vadd.f32 1e-05, %v460_v41  ;;  %v508_v44 = vadd.f32 1e-05, %v506_v42  ;;  %v916_v41 = vld [vmem:[%s1425_s10 + $0x10] sm:$0xff]  ;;  %v915_v42 = vld [vmem:[%s1425_s10 + $0x8] sm:$0xff] }
 0x132   : > { %v459_v45 = vpop.xlane.xlu1 %458 }
 0x133   : > { %1197 = vrsqrt.f32 %v462_v43  ;;  %v461_v46 = vmul.f32 0.03125, %v459_v45  ;;  %v914_v43 = vld [vmem:[%s1425_s10] sm:$0xff] }
 0x134   : > { %1199 = vrsqrt.f32 %v508_v44 }
 0x135   : > { %v463_v47 = vadd.f32 1e-05, %v461_v46  ;;  %v1105_v46 = vld [vmem:[%s1426_s11] ss:$0 sm:$0xff] }
 0x137   : > { %1201 = vrsqrt.f32 %v463_v47 }
 0x13c   : > { %v1196_v48 = vpop.eup %1195 }
 0x13d   : > { %v511_v50 = vmul.f32 %v1196_v48, %v495_v12  ;;  %v1092_v12 = vld [vmem:[%s1422_s7] ss:$0 sm:$0xff] }
 0x13f   : > { %v519_v52 = vmul.f32 %v1090_v49, %v511_v50 }
 0x140   : > { %v1198_v53 = vpop.eup %1197 }
 0x141   : > { %v1200_v55 = vpop.eup %1199  ;;  %v527_v56 = vadd.f32 %v1091_v51, %v519_v52  ;;  %v466_v57 = vmul.f32 %v1198_v53, %v1314_v14 }
 0x142   : > { %v512_v58 = vmul.f32 %v1200_v55, %v496_v20 }
 0x143   : > { %1158 = vmatprep.mubr.msk.f32.mxu1 %vm440_vm0, %v527_v56  ;;  %v474_v60 = vmul.f32 %v1088_v54, %v466_v57 }
 0x144   : > { %v1202_v61 = vpop.eup %1201  ;;  %v520_v62 = vmul.f32 %v1090_v49, %v512_v58 }
 0x145   : > { %v467_v63 = vmul.f32 %v1202_v61, %v1320_v22  ;;  %v482_v0 = vadd.f32 %v1089_v59, %v474_v60 }
 0x146   : > { %v528_v1 = vadd.f32 %v1091_v51, %v520_v62 }
 0x147   : > { %v475_v2 = vmul.f32 %v1088_v54, %v467_v63  ;;  %1147 = vmatprep.mubr.msk.f32.mxu0 %vm440_vm0, %v482_v0 }
 0x148   : > { %1159 = vmatmul.mubr.msk.f32.vlgmr.msra.gmra.mxu1 %vm440_vm0, %v528_v1 }
 0x149   : > { %v483_v5 = vadd.f32 %v1089_v59, %v475_v2 }
 0x14b   : > { %1148 = vmatmul.mubr.msk.f32.vlgmr.msra.gmra.mxu0 %vm440_vm0, %v483_v5 }
 0x208   : > { %v1160_v7 = vpop.f32.mrf.mxu1 }
 0x209   : > { %v710_v8 = vadd.f32 %v1160_v7, %v1095_v6 }
 0x20a   : > { %v704_v9 = vpop.f32.mrf.mxu1 }
 0x20b   : > { %v705_v10 = vadd.f32 %v1095_v6, %v704_v9  ;;  %1161 = vmatprep.subr.msk.mxu0 %vm440_vm0, %v710_v8  ;;  %v1149_v11 = vpop.f32.mrf.mxu0 }
 0x20c   : > { %1162 = vmatpush3.xpose.msk.msra.mxu0 %vm440_vm0, %v710_v8  ;;  %v618_v15 = vadd.f32 %v1149_v11, %v1092_v12 }
 0x20d   : > { %1163 = vmatprep.subr.msk.mxu0 %vm440_vm0, %v705_v10  ;;  %v612_v13 = vpop.f32.mrf.mxu0 }
 0x20e   : > { %v613_v14 = vadd.f32 %v1092_v12, %v612_v13 }
 0x210   : > { %1164 = vmatpush3.xpose.msk.msra.mxu0 %vm440_vm0, %v705_v10  ;;  %1165 = vmatprep.mubr.msk.f32.mxu0 %vm440_vm0, %v613_v14 }
 0x213   : > { %1166 = vmatmul.mubr.msk.f32.vlgmr.msra.gmra.mxu0 %vm440_vm0, %v618_v15 }
 0x2d3   : > { %v1167_v16 = vpop.f32.mrf.mxu0 }
 0x2d4   : > { %v801_v17 = vmul.f32 0.17677669, %v1167_v16 }
 0x2d5   : > { %v791_v18 = vpop.f32.mrf.mxu0 }
 0x2d6   : > { %v800_v19 = vmul.f32 0.17677669, %v791_v18  ;;  %v806_v20 = vsel %vm802_vm2, %v801_v17, -inf }
 0x2d7   : > { %807 = vmax.xlane.f32.xlu1 %v806_v20 }
 0x2d8   : > { %v803_v21 = vsel %vm802_vm2, %v800_v19, -inf }
 0x2d9   : > { %804 = vmax.xlane.f32.xlu0 %v803_v21 }
 0x360   : > { %v808_v22 = vpop.xlane.xlu1 %807 }
 0x361   : > { %v810_v23 = vsub.f32 %v801_v17, %v808_v22 }
 0x362   : > { %v805_v24 = vpop.xlane.xlu0 %804 }
 0x363   : > { %v813_v25 = vmul.f32 1.442695, %v810_v23  ;;  %v809_v26 = vsub.f32 %v800_v19, %v805_v24 }
 0x365   : > { %1203 = vpow2.f32 %v813_v25  ;;  %v811_v27 = vmul.f32 1.442695, %v809_v26 }
 0x367   : > { %1205 = vpow2.f32 %v811_v27 }
 0x372   : > { %v1204_v28 = vpop.eup %1203 }
 0x373   : > { %v818_v29 = vsel %vm802_vm2, %v1204_v28, 0.0 }
 0x374   : > { %v1206_v30 = vpop.eup %1205  ;;  %819 = vadd.xlane.f32.xlu1 %v818_v29 }
 0x375   : > { %v815_v31 = vsel %vm802_vm2, %v1206_v30, 0.0 }
 0x376   : > { %816 = vadd.xlane.f32.xlu0 %v815_v31 }
 0x385   : > { %825 = vrot.lane.b32.xlu1 %v705_v10, %s1219_s26 }
 0x38c   : > { %827 = vrot.lane.b32.xlu0 %v710_v8, %s1219_s26 }
 0x3fd   : > { %v820_v32 = vpop.xlane.xlu1 %819 }
 0x3fe   : > { %1207 = vrcp.f32 %v820_v32 }
 0x3ff   : > { %v817_v33 = vpop.xlane.xlu0 %816 }
 0x400   : > { %1209 = vrcp.f32 %v817_v33 }
 0x401   : > { %v826_v35 = vpop.permute.xlu1 %825 }
 0x403   : > { %v828_v34 = vpop.permute.xlu0 %827 }
 0x404   : > { %1168 = vmatprep.subr.msk.mxu1 %vm836_vm3, %v828_v34 }
 0x405   : > { %1169 = vmatpush3.msk.msra.mxu1 %vm836_vm3, %v828_v34 }
 0x406   : > { %1170 = vmatprep.subr.mxu1 %v826_v35 }
 0x407   : > { %1171 = vmatpush3.msra.mxu1 %v826_v35 }
 0x408   : > { %1175 = vmatprep.subr.mxu1 %v917_v36 }
 0x40b   : > { %v1208_v37 = vpop.eup %1207 }
 0x40c   : > { %v824_v40 = vmul.f32 %v1208_v37, %v1204_v28 }
 0x40d   : > { %v1210_v38 = vpop.eup %1209 }
 0x40e   : > { %v823_v39 = vmul.f32 %v1210_v38, %v1206_v30 }
 0x410   : > { %1172 = vmatprep.mubr.msk.f32.mxu1 %vm802_vm2, %v823_v39 }
 0x411   : > { %1173 = vmatmul.mubr.msk.f32.vlgmr.msra.gmra.mxu1 %vm802_vm2, %v824_v40 }
 0x412   : > { %1176 = vmatpush3.msra.mxu1 %v917_v36 }
 0x413   : > { %1177 = vmatprep.subr.mxu1 %v916_v41 }
 0x414   : > { %1178 = vmatpush3.msra.mxu1 %v916_v41 }
 0x415   : > { %1179 = vmatprep.subr.mxu1 %v915_v42 }
 0x416   : > { %1180 = vmatpush3.msra.mxu1 %v915_v42 }
 0x417   : > { %1181 = vmatprep.subr.mxu1 %v914_v43 }
 0x418   : > { %1182 = vmatpush3.msra.mxu1 %v914_v43 }
 0x4d1   : > { %v1174_v44 = vpop.f32.mrf.mxu1 }
 0x4d3   : > { %v905_v45 = vpop.f32.mrf.mxu1 }
 0x4d4   : > { %1183 = vmatprep.mubr.msk.f32.mxu1 %vm440_vm0, %v905_v45 }
 0x4d5   : > { %1184 = vmatmul.mubr.msk.f32.vlgmr.msra.gmra.mxu1 %vm440_vm0, %v1174_v44 }
 0x595   : > { %v1185_v47 = vpop.f32.mrf.mxu1 }
 0x596   : > { %v1003_v48 = vadd.f32 %v1185_v47, %v1105_v46 }
 0x597   : > { %v997_v49 = vpop.f32.mrf.mxu1 }
 0x598   : > { %v1007_v50 = vadd.f32 %v1003_v48, %v1306_v4  ;;  %v998_v51 = vadd.f32 %v1105_v46, %v997_v49 }
 0x59a   : > { %1009 = vst.msk [vmem:[%s433_s22 + $0x8] sm:$0xff] %vm440_vm0, %v1007_v50  ;;  %v1006_v52 = vadd.f32 %v998_v51, %v1304_v3 }
 0x59c   : > { %1008 = vst.msk [vmem:[%s433_s22] sm:$0xff] %vm440_vm0, %v1006_v52 }
 0x59d PF: > { %s22_s21 = sadd.s32 1, %s1217_s21  }
 0x59e   : > { %p19_p4 = scmp.ge.s32.totalorder %s22_s21, 4  }
 0x5a0   :  { %21 = sbr.rel (!%p19_p4) target bundleno = 1 (0x1), region = 101 }

// kernel: rin_forward.29
= control target key start
LH: loop header
LB: loop body
LE: loop exit
PB: predicated region body
PF: predicated region fallthrough
CT: control target
= control target key end

     0   :  { %vm29_vm0 = vcmask 261120   ;;  %vm127_vm1 = vcmask 392192   ;;  %s230_s1 = inlined_call_operand.vmem [shape: f32[32,48], index: 1, kind: input, shape index: {}]   ;;  %s231_s0 = inlined_call_operand.vmem [shape: f32[32,32], index: 0, kind: input, shape index: {}]   ;;  %s232_s2 = inlined_call_operand.vmem [shape: f32[1,48], index: 2, kind: input, shape index: {}]   ;;  %s233_s3 = inlined_call_operand.vmem [shape: f32[32,48], index: 3, kind: output, shape index: {}]  }
   0x1   :  { %v21_v0 = vld [vmem:[%s230_s1 + $0x18] sm:$0xff]  ;;  %v20_v1 = vld [vmem:[%s230_s1 + $0x10] sm:$0xff]  ;;  %v19_v2 = vld [vmem:[%s230_s1 + $0x8] sm:$0xff] }
   0x2   :  { %149 = vmatprep.subr.mxu0 %v21_v0  ;;  %163 = vmatprep.subr.mxu1 %v21_v0  ;;  %v18_v3 = vld [vmem:[%s230_s1] sm:$0xff]  ;;  %v16_v5 = vld [vmem:[%s231_s0 + $0x10] sm:$0xff]  ;;  %v15_v6 = vld [vmem:[%s231_s0 + $0x8] sm:$0xff] }
   0x3   :  { %150 = vmatpush3.msra.mxu0 %v21_v0  ;;  %167 = vmatpush3.msra.mxu1 %v21_v0  ;;  %v14_v4 = vld [vmem:[%s231_s0] sm:$0xff]  ;;  %v17_v7 = vld [vmem:[%s231_s0 + $0x18] sm:$0xff] }
   0x4   :  { %151 = vmatprep.subr.mxu0 %v20_v1  ;;  %164 = vmatprep.subr.mxu1 %v20_v1  ;;  %v136_v8 = vld [vmem:[%s232_s2] ss:$0 sm:$0xff] }
   0x5   :  { %152 = vmatpush3.msra.mxu0 %v20_v1  ;;  %168 = vmatpush3.msra.mxu1 %v20_v1 }
   0x6   :  { %153 = vmatprep.subr.mxu0 %v19_v2  ;;  %165 = vmatprep.subr.mxu1 %v19_v2 }
   0x7   :  { %154 = vmatpush3.msra.mxu0 %v19_v2  ;;  %169 = vmatpush3.msra.mxu1 %v19_v2 }
   0x8   :  { %155 = vmatprep.subr.mxu0 %v18_v3  ;;  %166 = vmatprep.subr.mxu1 %v18_v3 }
   0x9   :  { %156 = vmatpush3.msra.mxu0 %v18_v3  ;;  %170 = vmatpush3.msra.mxu1 %v18_v3 }
   0xa   :  { %157 = vmatprep.mubr.msk.f32.mxu0 %vm29_vm0, %v14_v4  ;;  %160 = vmatprep.mubr.msk.f32.mxu1 %vm29_vm0, %v16_v5 }
   0xb   :  { %158 = vmatmul.mubr.msk.f32.vlgmr.msra.gmra.mxu0 %vm29_vm0, %v15_v6  ;;  %161 = vmatmul.mubr.msk.f32.vlgmr.msra.gmra.mxu1 %vm29_vm0, %v17_v7 }
  0xcb   :  { %v159_v9 = vpop.f32.mrf.mxu0  ;;  %v162_v10 = vpop.f32.mrf.mxu1 }
  0xcc   :  { %v114_v11 = vadd.f32 %v159_v9, %v136_v8  ;;  %v124_v12 = vadd.f32 %v162_v10, %v136_v8 }
  0xcd   :  { %v108_v13 = vpop.f32.mrf.mxu0  ;;  %v118_v14 = vpop.f32.mrf.mxu1 }
  0xce   :  { %129 = vst.msk [vmem:[%s233_s3 + $0x8] sm:$0xff] %vm127_vm1, %v114_v11  ;;  %131 = vst.msk [vmem:[%s233_s3 + $0x18] sm:$0xff] %vm127_vm1, %v124_v12  ;;  %v109_v15 = vadd.f32 %v136_v8, %v108_v13  ;;  %v119_v16 = vadd.f32 %v136_v8, %v118_v14 }
  0xd0   :  { %128 = vst.msk [vmem:[%s233_s3] sm:$0xff] %vm127_vm1, %v109_v15  ;;  %130 = vst.msk [vmem:[%s233_s3 + $0x10] sm:$0xff] %vm127_vm1, %v119_v16 }

</bundles_post_ra>
